<compile_context>
chip_gen: v7x
topology: tpu7x:2x2x1
jax: 0.10.0
libtpu: 0.0.40
codegen_flags: <defaults>
</compile_context>

<pallas_src>
import math

import jax
import jax.numpy as jnp
from jax.experimental import pallas as pl
from jax.experimental.pallas import tpu as pltpu


def clustering_kernel(y_ref, d_ref, o_ref):
    # Zero this core's resident (tr, K) partial on its first reduction step.
    @pl.when(pl.program_id(1) == 0)
    def _():
        o_ref[...] = jnp.zeros_like(o_ref)

    # Row-wise softmax over K (dim=1 in the PyTorch module), in f32.
    y = y_ref[...].astype(jnp.float32)                    # (tr, K)
    m = jnp.max(y, axis=1, keepdims=True)
    e = jnp.exp(y - m)
    sm = e / jnp.sum(e, axis=1, keepdims=True)            # (tr, K)

    # Per-row sum over C of the binary pruned mask D.  Accumulate in f32 so
    # sums up to C=2048 stay exact even though D travels as bf16.
    rowsum = jnp.sum(d_ref[...].astype(jnp.float32), axis=1, keepdims=True)  # (tr, 1)

    # partial[r, k] += softmax(Y)[r, k] * rowsum[r]   (elementwise; the
    # cross-row reduce is deferred to the wrapper -> no per-step XLU reduce).
    o_ref[...] += sm * rowsum


def clustering_forward(Y, D, *, tr=512, num_cores=2):
    """Pallas implementation of Clustering.forward(). Returns a (K,) float32.

    Y: (R, K) float parameter.  D: (R, C) binary pruning mask (any float
    dtype; pass bf16 to halve the dominant HBM read).  For a training loop,
    pre-pad / pre-cast the constant D once so the jnp.pad below is a no-op.
    """
    R, K = Y.shape
    R2, C = D.shape
    assert R == R2

    n_tiles = pl.cdiv(R, tr)
    tiles_per_core = pl.cdiv(n_tiles, num_cores)
    r_pad = num_cores * tiles_per_core * tr
    if r_pad != R:
        # Zero padding is exact: padded D rows have rowsum == 0, so their
        # (uniform) softmax rows contribute nothing.
        Y = jnp.pad(Y, ((0, r_pad - R), (0, 0)))
        D = jnp.pad(D, ((0, r_pad - R), (0, 0)))

    partial = pl.pallas_call(
        clustering_kernel,
        out_shape=jax.ShapeDtypeStruct((num_cores, tr, K), jnp.float32),
        grid_spec=pltpu.PrefetchScalarGridSpec(
            num_scalar_prefetch=0,
            # (core split : parallel, row reduction : arbitrary)
            grid=(num_cores, tiles_per_core),
            in_specs=[
                pl.BlockSpec((tr, K), lambda c, i: (c * tiles_per_core + i, 0)),
                pl.BlockSpec((tr, C), lambda c, i: (c * tiles_per_core + i, 0)),
            ],
            # Leading dim squeezed: each core owns one resident (tr, K) slab.
            out_specs=pl.BlockSpec((None, tr, K), lambda c, i: (c, 0, 0)),
        ),
        compiler_params=pltpu.CompilerParams(
            dimension_semantics=("parallel", "arbitrary")),
    )(Y, D)

    # Tiny final reduction (num_cores * tr * K f32 elements) in plain XLA.
    return jnp.sum(partial, axis=(0, 1))


def prune_layer(layer, sparsity, num_idx, num_row):
    """JAX port of prune_layer: binary mask keeping the largest-|.| entries.

    Returned in bf16: the mask is exactly 0/1, so bf16 is lossless and halves
    the HBM traffic of the kernel's dominant read (the D matrix).
    """
    flat = jnp.sort(jnp.abs(layer).reshape(-1))
    threshold = flat[int(num_idx * num_row * sparsity) - 1]
    return (jnp.abs(layer) > threshold).astype(jnp.bfloat16)


if __name__ == "__main__":
    # Module constants: R = num_row = 1000, C = num_idx = 2048, K = 32.
    R, C, K = 1000, 2048, 32
    sparsity = 0.75

    key = jax.random.PRNGKey(0)
    k_fc, k_y = jax.random.split(key)

    # Synthetic "fc" layer -> pruned binary matrix D (R, C), bf16 0/1 mask.
    fc = jax.random.normal(k_fc, (R, C), dtype=jnp.float32)
    D = prune_layer(fc, sparsity, num_idx=C, num_row=R)

    # Y parameter: kaiming_uniform_ on a (R, K) tensor -> fan_in = K,
    # bound = gain * sqrt(3 / fan_in) = sqrt(6 / K) (a=0, leaky_relu gain).
    bound = math.sqrt(6.0 / K)
    Y = jax.random.uniform(k_y, (R, K), dtype=jnp.float32,
                           minval=-bound, maxval=bound)

    out = jax.block_until_ready(clustering_forward(Y, D))

    # Pure-JAX reference (exact forward semantics, f32 throughout).
    sm = jax.nn.softmax(Y, axis=1)
    d_f32 = D.astype(jnp.float32)
    ref = jnp.einsum("rk,r->k", sm, jnp.sum(d_f32, axis=1))

    assert out.shape == (K,) and out.dtype == jnp.float32
    assert jnp.allclose(out, ref, rtol=1e-3, atol=1e-2), (out, ref)

    print("KERNEL_OK")
</pallas_src>

<mosaic_0001>
module attributes {stable_mosaic.version = 11 : i64} {
  func.func @clustering_kernel(%arg0: i32, %arg1: i32, %arg2: memref<512x32xf32, #tpu.memory_space<vmem>>, %arg3: memref<512x2048xbf16, #tpu.memory_space<vmem>>, %arg4: memref<1x512x32xf32, #tpu.memory_space<vmem>>) attributes {dimension_semantics = [#tpu.dimension_semantics<parallel>, #tpu.dimension_semantics<arbitrary>], iteration_bounds = array<i64: 2, 1>, scalar_prefetch = 0 : i64, scratch_operands = 0 : i64, tpu.core_type = #tpu.core_type<tc>, window_params = [{transform_indices = @transform_0, window_bounds = array<i64: 512, 32>}, {transform_indices = @transform_1, window_bounds = array<i64: 512, 2048>}, {transform_indices = @transform_2, window_bounds = array<i64: 1, 512, 32>}]} {
    %c0_i32 = arith.constant 0 : i32
    %0 = arith.cmpi eq, %arg1, %c0_i32 : i32
    %1 = arith.extui %0 : i1 to i32
    %c0_i32_0 = arith.constant 0 : i32
    %2 = arith.cmpi ne, %1, %c0_i32_0 : i32
    scf.if %2 {
      %cst_12 = arith.constant 0.000000e+00 : f32
      %25 = vector.broadcast %cst_12 : f32 to vector<512x32xf32>
      %c0_13 = arith.constant 0 : index
      %c0_14 = arith.constant 0 : index
      %c0_15 = arith.constant 0 : index
      %26 = vector.load %arg4[%c0_13, %c0_14, %c0_15] : memref<1x512x32xf32, #tpu.memory_space<vmem>>, vector<1x512x32xf32>
      %27 = vector.shape_cast %26 : vector<1x512x32xf32> to vector<512x32xf32>
      %28 = vector.shape_cast %25 : vector<512x32xf32> to vector<1x512x32xf32>
      tpu.vector_store %arg4[%c0_13, %c0_14, %c0_15], %28 {strides = array<i32>} : memref<1x512x32xf32, #tpu.memory_space<vmem>>, vector<1x512x32xf32>,
    } else {
    }
    %c0 = arith.constant 0 : index
    %c0_1 = arith.constant 0 : index
    %3 = vector.load %arg2[%c0, %c0_1] : memref<512x32xf32, #tpu.memory_space<vmem>>, vector<512x32xf32>
    %cst = arith.constant dense<0xFF800000> : vector<512xf32>
    %4 = vector.multi_reduction <maximumf>, %3, %cst [1] : vector<512x32xf32> to vector<512xf32>
    %5 = vector.shape_cast %4 : vector<512xf32> to vector<512x1xf32>
    %6 = vector.broadcast %5 : vector<512x1xf32> to vector<512x32xf32>
    %7 = arith.subf %3, %6 : vector<512x32xf32>
    %8 = math.exp %7 : vector<512x32xf32>
    %cst_2 = arith.constant dense<0.000000e+00> : vector<512xf32>
    %9 = vector.multi_reduction <add>, %8, %cst_2 [1] : vector<512x32xf32> to vector<512xf32>
    %10 = vector.shape_cast %9 : vector<512xf32> to vector<512x1xf32>
    %11 = vector.broadcast %10 : vector<512x1xf32> to vector<512x32xf32>
    %12 = arith.divf %8, %11 : vector<512x32xf32>
    %c0_3 = arith.constant 0 : index
    %c0_4 = arith.constant 0 : index
    %13 = vector.load %arg3[%c0_3, %c0_4] : memref<512x2048xbf16, #tpu.memory_space<vmem>>, vector<512x2048xbf16>
    %14 = arith.extf %13 : vector<512x2048xbf16> to vector<512x2048xf32>
    %cst_5 = arith.constant dense<0.000000e+00> : vector<512xf32>
    %15 = vector.multi_reduction <add>, %14, %cst_5 [1] : vector<512x2048xf32> to vector<512xf32>
    %16 = vector.shape_cast %15 : vector<512xf32> to vector<512x1xf32>
    %c0_6 = arith.constant 0 : index
    %c0_7 = arith.constant 0 : index
    %c0_8 = arith.constant 0 : index
    %17 = vector.load %arg4[%c0_6, %c0_7, %c0_8] : memref<1x512x32xf32, #tpu.memory_space<vmem>>, vector<1x512x32xf32>
    %18 = vector.shape_cast %17 : vector<1x512x32xf32> to vector<512x32xf32>
    %19 = vector.broadcast %16 : vector<512x1xf32> to vector<512x32xf32>
    %20 = arith.mulf %12, %19 : vector<512x32xf32>
    %21 = arith.addf %18, %20 : vector<512x32xf32>
    %c0_9 = arith.constant 0 : index
    %c0_10 = arith.constant 0 : index
    %c0_11 = arith.constant 0 : index
    %22 = vector.load %arg4[%c0_9, %c0_10, %c0_11] : memref<1x512x32xf32, #tpu.memory_space<vmem>>, vector<1x512x32xf32>
    %23 = vector.shape_cast %22 : vector<1x512x32xf32> to vector<512x32xf32>
    %24 = vector.shape_cast %21 : vector<512x32xf32> to vector<1x512x32xf32>
    tpu.vector_store %arg4[%c0_9, %c0_10, %c0_11], %24 {strides = array<i32>} : memref<1x512x32xf32, #tpu.memory_space<vmem>>, vector<1x512x32xf32>,
    return
  }
  func.func @transform_0(%arg0: i32, %arg1: i32) -> (i32, i32) {
    %c1_i32 = arith.constant 1 : i32
    %0 = arith.muli %arg0, %c1_i32 : i32
    %1 = arith.addi %0, %arg1 : i32
    %c0_i32 = arith.constant 0 : i32
    %c0_i32_0 = arith.constant 0 : i32
    return %1, %c0_i32 : i32, i32
  }
  func.func @transform_1(%arg0: i32, %arg1: i32) -> (i32, i32) {
    %c1_i32 = arith.constant 1 : i32
    %0 = arith.muli %arg0, %c1_i32 : i32
    %1 = arith.addi %0, %arg1 : i32
    %c0_i32 = arith.constant 0 : i32
    %c0_i32_0 = arith.constant 0 : i32
    return %1, %c0_i32 : i32, i32
  }
  func.func @transform_2(%arg0: i32, %arg1: i32) -> (i32, i32, i32) {
    %c0_i32 = arith.constant 0 : i32
    %c0_i32_0 = arith.constant 0 : i32
    %c0_i32_1 = arith.constant 0 : i32
    return %arg0, %c0_i32, %c0_i32_0 : i32, i32, i32
  }
}

</mosaic_0001>

<bundles_post_ra>
// kernel: tpu_custom_call.1
= control target key start
LH: loop header
LB: loop body
LE: loop exit
PB: predicated region body
PF: predicated region fallthrough
CT: control target
= control target key end

     0   :  { %7 = vsyncpa [#allocation3], 0  ;;  %s8648_s0 = inlined_call_operand.vmem [shape: f32[1024,32], index: 0, kind: input, shape index: {}]   ;;  %s8649_s1 = inlined_call_operand.hbm [shape: bf16[1024,2048], index: 1, kind: input, shape index: {}]   ;;  %s8650_s2 = inlined_call_operand.vmem [shape: f32[2,512,32], index: 2, kind: output, shape index: {}]  }
   0x1   :  { %9 = vsyncpa [#allocation3 + $0x1], 0  ;;  %s4483_s9 = smov 0   ;;  %s4485_s10 = smov 0  }
   0x2   :  { %s4487_s11 = smov 0   ;;  %s4489_s12 = smov 0  }
   0x3   :  { %s4491_s13 = smov 0   ;;  %s4493_s14 = smov 0  }
   0x4 LB: > { %s4017_s15 = sadd.s32 4294967295, %s4462_s14   ;;  %s27_s16 = sadd.s32 1, %s4458_s13  ;;  %s4462_s14 = sphi %s4493_s14, %s15_s14   ;;  %s4458_s13 = sphi %s4491_s13, %s9350_s13   ;;  %s4454_s12 = sphi %s4489_s12, %s9349_s12   ;;  %s4450_s11 = sphi %s4487_s11, %s9348_s11   ;;  %s4446_s10 = sphi %s4485_s10, %s9347_s10   ;;  %s4442_s9 = sphi %s4483_s9, %s9346_s9  }
   0x5   : > { %p29_p0 = scmp.ge.s32.totalorder %s27_s16, 2  ;;  %s64_s17 = sadd.s32 1, %s4450_s11 }
   0x6   : > { %p71_p1 = scmp.ne.s32.totalorder %s4450_s11, %s4446_s10  ;;  %p72_p2 = scmp.eq.s32.totalorder %s4462_s14, 0 }
   0x7   : > { %s9352_s16 = smov (%p29_p0, %s27_s16), 0  ;;  %p77_p4 = scmp.ne.s32.totalorder %s4446_s10, %s4442_s9 }
   0x8   : > { %p4519_p3 = por %p72_p2, %p71_p1  ;;  %s61_s19 = ssub.s32 %s4458_s13, %s9352_s16 }
   0x9   : > { %p78_p5 = scmp.eq.s32.totalorder %s4017_s15, 0  ;;  %p62_p6 = scmp.eq.s32.totalorder %s61_s19, 0 }
   0xa   : > { %p4042_p8 = scmp.lt.s32.totalorder %s4462_s14, 2  ;;  %s138_s22 = sand.u32 1, %s4450_s11  }
   0xb   : > { %p4526_p7 = por %p78_p5, %p77_p4  ;;  %s4034_s23 = sshll.u32 %s4458_s13, 16 }
   0xc   : > { %s4532_s21 = scalar_select %p62_p6, %s4450_s11, %s64_s17  }
   0xd   : > { %s4021_s24 = sshll.u32 %s138_s22, 12  ;;  %s4539_s27 = scalar_lea.hbm %s8649_s1, %s4034_s23 }
   0xe   : > { %s142_s28 = scalar_lea.vmem [#allocation2], %s4021_s24  ;;  %p4543_p9 = pnand %p4042_p8, %p4519_p3 }
   0xf   : > { %s151_s29 = sshll.u32 %s142_s28, 4  ;;  %s4549_s3 = scalar_lea.sflag [#allocation3], %s138_s22  ;;  %s4547_s29 = int_to_ptr.vmem [resolvable:$true] %s151_s29 }
  0x10   : > { %s4382_s4 = scalar_lea.hbm %s4539_s27, 65536  ;;  %p4384_p11 = pneg %p4543_p9 }
  0x11   : > { %p4383_p10 = scmp.ne.s32.totalorder %s4539_s27, %s4382_s4  ;;  %s4387_s7 = scalar_lea.hbm %s8649_s1, 131072 }
  0x12   : > { %p4388_p0 = scmp.lt.u32.totalorder %s4539_s27, %s8649_s1  ;;  %p4389_p1 = scmp.lt.u32.totalorder %s4387_s7, %s4382_s4 }
  0x13   : > { %p4385_p12 = pnand %p4384_p11, %p4383_p10  ;;  %p4391_p3 = scmp.lt.u32.totalorder %s4382_s4, %s4539_s27 }
  0x14   : > { %p4390_p2 = por %p4389_p1, %p4388_p0 }
  0x15   : > { %p4386_p13 = pneg %p4385_p12 }
  0x16   : > { %p4392_p4 = por %p4391_p3, %p4390_p2 }
  0x18   : > { %p4393_p5 = pnand %p4392_p4, %p4386_p13 }
  0x1a   : > { %4396 = shalt.err (!%p4393_p5)
}
  0x1b   : > { %s4397_s15 = scalar_lea.vmem %s4547_s29, 65536  ;;  %s4464_s17 = smov [#allocation2]  }
  0x1c   : > { %p4398_p6 = scmp.ne.s32.totalorder %s4547_s29, %s4397_s15  ;;  %s4402_s18 = sshll.u32 %s4464_s17, 4  ;;  %s4403_s18 = int_to_ptr.vmem [resolvable:$false] %s4402_s18 }
  0x1d   : > { %s4404_s19 = scalar_lea.vmem %s4403_s18, 131072  ;;  %p4405_p12 = scmp.lt.s32.totalorder %s4547_s29, %s4403_s18 }
  0x1e   : > { %p4400_p8 = pnand %p4398_p6, %p4384_p11  ;;  %p4406_p0 = scmp.lt.s32.totalorder %s4404_s19, %s4397_s15 }
  0x20   : > { %p4401_p10 = pneg %p4400_p8  ;;  %p4407_p1 = por %p4406_p0, %p4405_p12 }
  0x22   : > { %p4408_p2 = pnand %p4407_p1, %p4401_p10 }
  0x24   : > { %4411 = shalt.err (!%p4408_p2)
}
  0x25   : > { %s4465_s22 = smov 1024   ;;  %s4466_s23 = smov 64  }
  0x26   : > { %4041 = dma.hbm_to_vmem [thread:$0]  (!%p4543_p9), %s4539_s27, 65536, %s4547_s29, %s4549_s3, %s4465_s22, %s4465_s22, %s4466_s23  }
  0x27   : > { %p4025_p11 = scmp.ge.s32.totalorder %s4462_s14, 1  ;;  %p159_p13 = scmp.lt.s32.totalorder %s4462_s14, 3 }
  0x29   : > { %p160_p3 = pnand %p4025_p11, %p159_p13 }
  0x2b   : > { %163 = sbr.rel (%p160_p3) target bundleno = 964 (0x3c4), region = 28 }
  0x32   : > { %s165_s24 = sand.u32 1, %s4446_s10  }
  0x33   : > { %s4026_s25 = sshll.u32 %s165_s24, 12  ;;  %s166_s26 = scalar_lea.sflag [#allocation3], %s165_s24 }
  0x34   : > { %s4580_s28 = scalar_lea.vmem [#allocation2], %s4026_s25 }
  0x35   : > { %4437 = dma.done.wait (%p4526_p7), %s166_s26, 65536  }
  0x36   : > { %4439 = vsyncadd (%p4526_p7), %s166_s26, 4294901760  ;;  %s4027_s4 = sshll.u32 %s4454_s12, 6  ;;  %vm215_vm0 = vcmask 261120   ;;  %p206_p7 = scmp.lt.s32.totalorder %s4454_s12, 1 }
  0x37   : > { %p198_p4 = scmp.lt.s32.totalorder %s4027_s4, 127 }
  0x38   : > { %s9356_s12 = smov (!%p206_p7, %s4454_s12), 1 }
  0x39   : > { %s9354_s4 = smov (!%p198_p4, %s4027_s4), 127  ;;  %s4035_s20 = sshll.u32 %s9356_s12, 9 }
  0x3a   : > { %s4028_s27 = sshll.u32 %s9354_s4, 3  ;;  %s7958_s6 = scalar_lea.vmem %s8650_s2, %s4035_s20 }
  0x3b   : > { %s4590_s3 = scalar_lea.vmem %s8648_s0, %s4028_s27 }
  0x3c   : > { %v4593_v0 = vld [vmem:[%s4590_s3] sm:$0xff]  ;;  %v4596_v1 = vld [vmem:[%s4590_s3 + $0x10] sm:$0xff]  ;;  %v4599_v2 = vld [vmem:[%s4590_s3 + $0x8] sm:$0xff] }
  0x3d   : > { %v345_v3 = vsel %vm215_vm0, %v4593_v0, -inf  ;;  %v351_v4 = vsel %vm215_vm0, %v4596_v1, -inf  ;;  %v4606_v5 = vld [vmem:[%s4590_s3 + $0x18] sm:$0xff]  ;;  %v348_v6 = vsel %vm215_vm0, %v4599_v2, -inf  ;;  %v4613_v8 = vld [vmem:[%s4590_s3 + $0x20] sm:$0xff]  ;;  %v4616_v9 = vld [vmem:[%s4590_s3 + $0x28] sm:$0xff] }
  0x3e   : > { %346 = vmax.xlane.f32.xlu0 %v345_v3  ;;  %352 = vmax.xlane.f32.xlu1 %v351_v4  ;;  %v354_v7 = vsel %vm215_vm0, %v4606_v5, -inf  ;;  %v357_v10 = vsel %vm215_vm0, %v4613_v8, -inf  ;;  %v360_v11 = vsel %vm215_vm0, %v4616_v9, -inf  ;;  %v4623_v12 = vld [vmem:[%s4590_s3 + $0x30] sm:$0xff]  ;;  %v4626_v13 = vld [vmem:[%s4590_s3 + $0x38] sm:$0xff]  ;;  %v4633_v16 = vld [vmem:[%s4590_s3 + $0x40] sm:$0xff] }
  0x3f   : > { %v363_v14 = vsel %vm215_vm0, %v4623_v12, -inf  ;;  %v366_v15 = vsel %vm215_vm0, %v4626_v13, -inf  ;;  %v4636_v17 = vld [vmem:[%s4590_s3 + $0x48] sm:$0xff]  ;;  %v369_v18 = vsel %vm215_vm0, %v4633_v16, -inf  ;;  %v4643_v20 = vld [vmem:[%s4590_s3 + $0x50] sm:$0xff]  ;;  %v4646_v21 = vld [vmem:[%s4590_s3 + $0x58] sm:$0xff] }
  0x40   : > { %v372_v19 = vsel %vm215_vm0, %v4636_v17, -inf  ;;  %v375_v22 = vsel %vm215_vm0, %v4643_v20, -inf  ;;  %v378_v23 = vsel %vm215_vm0, %v4646_v21, -inf  ;;  %v4653_v24 = vld [vmem:[%s4590_s3 + $0x60] sm:$0xff]  ;;  %v4656_v25 = vld [vmem:[%s4590_s3 + $0x68] sm:$0xff]  ;;  %v4663_v28 = vld [vmem:[%s4590_s3 + $0x70] sm:$0xff] }
  0x41   : > { %v381_v26 = vsel %vm215_vm0, %v4653_v24, -inf  ;;  %v384_v27 = vsel %vm215_vm0, %v4656_v25, -inf  ;;  %v4666_v29 = vld [vmem:[%s4590_s3 + $0x78] sm:$0xff]  ;;  %v387_v30 = vsel %vm215_vm0, %v4663_v28, -inf  ;;  %v4673_v32 = vld [vmem:[%s4590_s3 + $0x80] sm:$0xff]  ;;  %v4676_v33 = vld [vmem:[%s4590_s3 + $0x88] sm:$0xff] }
  0x42   : > { %349 = vmax.xlane.f32.xlu0 %v348_v6  ;;  %355 = vmax.xlane.f32.xlu1 %v354_v7  ;;  %v390_v31 = vsel %vm215_vm0, %v4666_v29, -inf  ;;  %v393_v34 = vsel %vm215_vm0, %v4673_v32, -inf  ;;  %v396_v35 = vsel %vm215_vm0, %v4676_v33, -inf  ;;  %v4683_v36 = vld [vmem:[%s4590_s3 + $0x90] sm:$0xff]  ;;  %v4686_v37 = vld [vmem:[%s4590_s3 + $0x98] sm:$0xff]  ;;  %v4693_v40 = vld [vmem:[%s4590_s3 + $0xa0] sm:$0xff] }
  0x43   : > { %v399_v38 = vsel %vm215_vm0, %v4683_v36, -inf  ;;  %v402_v39 = vsel %vm215_vm0, %v4686_v37, -inf  ;;  %v4696_v41 = vld [vmem:[%s4590_s3 + $0xa8] sm:$0xff]  ;;  %v405_v42 = vsel %vm215_vm0, %v4693_v40, -inf  ;;  %v4703_v44 = vld [vmem:[%s4590_s3 + $0xb0] sm:$0xff]  ;;  %v4706_v45 = vld [vmem:[%s4590_s3 + $0xb8] sm:$0xff] }
  0x44   : > { %v408_v43 = vsel %vm215_vm0, %v4696_v41, -inf  ;;  %v411_v46 = vsel %vm215_vm0, %v4703_v44, -inf  ;;  %v414_v47 = vsel %vm215_vm0, %v4706_v45, -inf  ;;  %v4713_v48 = vld [vmem:[%s4590_s3 + $0xc0] sm:$0xff]  ;;  %v4716_v49 = vld [vmem:[%s4590_s3 + $0xc8] sm:$0xff]  ;;  %v4723_v52 = vld [vmem:[%s4590_s3 + $0xd0] sm:$0xff] }
  0x45   : > { %v417_v50 = vsel %vm215_vm0, %v4713_v48, -inf  ;;  %v420_v51 = vsel %vm215_vm0, %v4716_v49, -inf  ;;  %v4726_v53 = vld [vmem:[%s4590_s3 + $0xd8] sm:$0xff]  ;;  %v423_v54 = vsel %vm215_vm0, %v4723_v52, -inf  ;;  %v4733_v56 = vld [vmem:[%s4590_s3 + $0xe0] sm:$0xff]  ;;  %v4736_v57 = vld [vmem:[%s4590_s3 + $0xe8] sm:$0xff] }
  0x46   : > { %358 = vmax.xlane.f32.xlu0 %v357_v10  ;;  %361 = vmax.xlane.f32.xlu1 %v360_v11  ;;  %v426_v55 = vsel %vm215_vm0, %v4726_v53, -inf  ;;  %v429_v58 = vsel %vm215_vm0, %v4733_v56, -inf  ;;  %v432_v59 = vsel %vm215_vm0, %v4736_v57, -inf  ;;  %v4743_v60 = vld [vmem:[%s4590_s3 + $0xf0] sm:$0xff]  ;;  %v4746_v61 = vld [vmem:[%s4590_s3 + $0xf8] sm:$0xff]  ;;  %v312_v3 = vld [vmem:[%s4590_s3 + $0x100] sm:$0xff] }
  0x47   : > { %v435_v62 = vsel %vm215_vm0, %v4743_v60, -inf  ;;  %v438_v63 = vsel %vm215_vm0, %v4746_v61, -inf  ;;  %v313_v4 = vld [vmem:[%s4590_s3 + $0x108] sm:$0xff]  ;;  %v441_v6 = vsel %vm215_vm0, %v312_v3, -inf  ;;  %v314_v10 = vld [vmem:[%s4590_s3 + $0x110] sm:$0xff]  ;;  %v315_v11 = vld [vmem:[%s4590_s3 + $0x118] sm:$0xff] }
  0x48   : > { %v444_v7 = vsel %vm215_vm0, %v313_v4, -inf  ;;  %v328_v3 = vld [vmem:[%s4590_s3 + $0x180] sm:$0xff]  ;;  %v329_v4 = vld [vmem:[%s4590_s3 + $0x188] sm:$0xff] }
  0x4a   : > { %364 = vmax.xlane.f32.xlu0 %v363_v14  ;;  %367 = vmax.xlane.f32.xlu1 %v366_v15  ;;  %v447_v14 = vsel %vm215_vm0, %v314_v10, -inf  ;;  %v450_v15 = vsel %vm215_vm0, %v315_v11, -inf  ;;  %v330_v10 = vld [vmem:[%s4590_s3 + $0x190] sm:$0xff]  ;;  %v331_v11 = vld [vmem:[%s4590_s3 + $0x198] sm:$0xff] }
  0x4e   : > { %370 = vmax.xlane.f32.xlu0 %v369_v18  ;;  %373 = vmax.xlane.f32.xlu1 %v372_v19  ;;  %v316_v18 = vld [vmem:[%s4590_s3 + $0x120] sm:$0xff]  ;;  %v317_v19 = vld [vmem:[%s4590_s3 + $0x128] sm:$0xff] }
  0x52   : > { %376 = vmax.xlane.f32.xlu0 %v375_v22  ;;  %379 = vmax.xlane.f32.xlu1 %v378_v23  ;;  %v453_v22 = vsel %vm215_vm0, %v316_v18, -inf  ;;  %v456_v23 = vsel %vm215_vm0, %v317_v19, -inf  ;;  %v332_v18 = vld [vmem:[%s4590_s3 + $0x1a0] sm:$0xff]  ;;  %v333_v19 = vld [vmem:[%s4590_s3 + $0x1a8] sm:$0xff] }
  0x56   : > { %382 = vmax.xlane.f32.xlu0 %v381_v26  ;;  %385 = vmax.xlane.f32.xlu1 %v384_v27  ;;  %v318_v26 = vld [vmem:[%s4590_s3 + $0x130] sm:$0xff]  ;;  %v319_v27 = vld [vmem:[%s4590_s3 + $0x138] sm:$0xff] }
  0x5a   : > { %388 = vmax.xlane.f32.xlu0 %v387_v30  ;;  %391 = vmax.xlane.f32.xlu1 %v390_v31  ;;  %v459_v30 = vsel %vm215_vm0, %v318_v26, -inf  ;;  %v462_v31 = vsel %vm215_vm0, %v319_v27, -inf  ;;  %v334_v26 = vld [vmem:[%s4590_s3 + $0x1b0] sm:$0xff]  ;;  %v335_v27 = vld [vmem:[%s4590_s3 + $0x1b8] sm:$0xff] }
  0x5e   : > { %394 = vmax.xlane.f32.xlu0 %v393_v34  ;;  %397 = vmax.xlane.f32.xlu1 %v396_v35  ;;  %v320_v34 = vld [vmem:[%s4590_s3 + $0x140] sm:$0xff]  ;;  %v321_v35 = vld [vmem:[%s4590_s3 + $0x148] sm:$0xff] }
  0x62   : > { %400 = vmax.xlane.f32.xlu0 %v399_v38  ;;  %403 = vmax.xlane.f32.xlu1 %v402_v39  ;;  %v465_v38 = vsel %vm215_vm0, %v320_v34, -inf  ;;  %v468_v39 = vsel %vm215_vm0, %v321_v35, -inf  ;;  %v336_v34 = vld [vmem:[%s4590_s3 + $0x1c0] sm:$0xff]  ;;  %v337_v35 = vld [vmem:[%s4590_s3 + $0x1c8] sm:$0xff] }
  0x66   : > { %406 = vmax.xlane.f32.xlu0 %v405_v42  ;;  %409 = vmax.xlane.f32.xlu1 %v408_v43  ;;  %v322_v42 = vld [vmem:[%s4590_s3 + $0x150] sm:$0xff]  ;;  %v323_v43 = vld [vmem:[%s4590_s3 + $0x158] sm:$0xff] }
  0x6a   : > { %412 = vmax.xlane.f32.xlu0 %v411_v46  ;;  %415 = vmax.xlane.f32.xlu1 %v414_v47  ;;  %v471_v46 = vsel %vm215_vm0, %v322_v42, -inf  ;;  %v474_v47 = vsel %vm215_vm0, %v323_v43, -inf  ;;  %v338_v42 = vld [vmem:[%s4590_s3 + $0x1d0] sm:$0xff]  ;;  %v339_v43 = vld [vmem:[%s4590_s3 + $0x1d8] sm:$0xff] }
  0x6e   : > { %418 = vmax.xlane.f32.xlu0 %v417_v50  ;;  %421 = vmax.xlane.f32.xlu1 %v420_v51  ;;  %v324_v50 = vld [vmem:[%s4590_s3 + $0x160] sm:$0xff]  ;;  %v325_v51 = vld [vmem:[%s4590_s3 + $0x168] sm:$0xff] }
  0x72   : > { %424 = vmax.xlane.f32.xlu0 %v423_v54  ;;  %427 = vmax.xlane.f32.xlu1 %v426_v55  ;;  %v477_v54 = vsel %vm215_vm0, %v324_v50, -inf  ;;  %v480_v55 = vsel %vm215_vm0, %v325_v51, -inf  ;;  %v340_v50 = vld [vmem:[%s4590_s3 + $0x1e0] sm:$0xff]  ;;  %v341_v51 = vld [vmem:[%s4590_s3 + $0x1e8] sm:$0xff] }
  0x76   : > { %430 = vmax.xlane.f32.xlu0 %v429_v58  ;;  %433 = vmax.xlane.f32.xlu1 %v432_v59  ;;  %v326_v58 = vld [vmem:[%s4590_s3 + $0x170] sm:$0xff]  ;;  %v327_v59 = vld [vmem:[%s4590_s3 + $0x178] sm:$0xff] }
  0x7a   : > { %436 = vmax.xlane.f32.xlu0 %v435_v62  ;;  %439 = vmax.xlane.f32.xlu1 %v438_v63  ;;  %v483_v62 = vsel %vm215_vm0, %v326_v58, -inf  ;;  %v486_v63 = vsel %vm215_vm0, %v327_v59, -inf  ;;  %v342_v58 = vld [vmem:[%s4590_s3 + $0x1f0] sm:$0xff]  ;;  %v343_v59 = vld [vmem:[%s4590_s3 + $0x1f8] sm:$0xff] }
  0x7e   : > { %442 = vmax.xlane.f32.xlu0 %v441_v6  ;;  %445 = vmax.xlane.f32.xlu1 %v444_v7  ;;  %v489_v6 = vsel %vm215_vm0, %v328_v3, -inf  ;;  %v492_v7 = vsel %vm215_vm0, %v329_v4, -inf  ;;  %v1049_v3 = vld [vmem:[%s4580_s28] sm:$0xff] }
  0x7f   : > { %v1561_v4 = vunpack.c.l.bf16 %v1049_v3 }
  0x82   : > { %448 = vmax.xlane.f32.xlu0 %v447_v14  ;;  %451 = vmax.xlane.f32.xlu1 %v450_v15  ;;  %v495_v14 = vsel %vm215_vm0, %v330_v10, -inf  ;;  %v498_v15 = vsel %vm215_vm0, %v331_v11, -inf }
  0x86   : > { %454 = vmax.xlane.f32.xlu0 %v453_v22  ;;  %457 = vmax.xlane.f32.xlu1 %v456_v23  ;;  %v501_v22 = vsel %vm215_vm0, %v332_v18, -inf  ;;  %v504_v23 = vsel %vm215_vm0, %v333_v19, -inf }
  0x8a   : > { %460 = vmax.xlane.f32.xlu0 %v459_v30  ;;  %463 = vmax.xlane.f32.xlu1 %v462_v31  ;;  %v507_v30 = vsel %vm215_vm0, %v334_v26, -inf  ;;  %v510_v31 = vsel %vm215_vm0, %v335_v27, -inf  ;;  %v1051_v26 = vld [vmem:[%s4580_s28 + $0x10] sm:$0xff]  ;;  %v1058_v27 = vld [vmem:[%s4580_s28 + $0x48] sm:$0xff] }
  0x8e   : > { %466 = vmax.xlane.f32.xlu0 %v465_v38  ;;  %469 = vmax.xlane.f32.xlu1 %v468_v39  ;;  %v513_v38 = vsel %vm215_vm0, %v336_v34, -inf  ;;  %v516_v39 = vsel %vm215_vm0, %v337_v35, -inf  ;;  %v1565_v35 = vunpack.c.l.bf16 %v1051_v26 }
  0x92   : > { %472 = vmax.xlane.f32.xlu0 %v471_v46  ;;  %475 = vmax.xlane.f32.xlu1 %v474_v47  ;;  %v519_v46 = vsel %vm215_vm0, %v338_v42, -inf  ;;  %v522_v47 = vsel %vm215_vm0, %v339_v43, -inf }
  0x96   : > { %478 = vmax.xlane.f32.xlu0 %v477_v54  ;;  %481 = vmax.xlane.f32.xlu1 %v480_v55  ;;  %v525_v54 = vsel %vm215_vm0, %v340_v50, -inf  ;;  %v528_v55 = vsel %vm215_vm0, %v341_v51, -inf  ;;  %v1580_v51 = vunpack.c.h.bf16 %v1058_v27 }
  0x9a   : > { %484 = vmax.xlane.f32.xlu0 %v483_v62  ;;  %487 = vmax.xlane.f32.xlu1 %v486_v63  ;;  %v531_v62 = vsel %vm215_vm0, %v342_v58, -inf  ;;  %v534_v63 = vsel %vm215_vm0, %v343_v59, -inf  ;;  %v1059_v58 = vld [vmem:[%s4580_s28 + $0x50] sm:$0xff] }
  0x9b   : > { %v1067_v59 = vld [vmem:[%s4580_s28 + $0x90] sm:$0xff] }
  0x9e   : > { %490 = vmax.xlane.f32.xlu0 %v489_v6  ;;  %493 = vmax.xlane.f32.xlu1 %v492_v7  ;;  %v1562_v6 = vunpack.c.h.bf16 %v1049_v3  ;;  %v1050_v7 = vld [vmem:[%s4580_s28 + $0x8] sm:$0xff] }
  0x9f   : > { %v1563_v10 = vunpack.c.l.bf16 %v1050_v7  ;;  %v1564_v18 = vunpack.c.h.bf16 %v1050_v7 }
  0xa0   : > { %v2585_v11 = vadd.f32 %v1562_v6, %v1561_v4  ;;  %v1581_v6 = vunpack.c.l.bf16 %v1059_v58 }
  0xa2   : > { %496 = vmax.xlane.f32.xlu0 %v495_v14  ;;  %499 = vmax.xlane.f32.xlu1 %v498_v15  ;;  %v1057_v14 = vld [vmem:[%s4580_s28 + $0x40] sm:$0xff]  ;;  %v2586_v19 = vadd.f32 %v2585_v11, %v1563_v10  ;;  %v1597_v10 = vunpack.c.l.bf16 %v1067_v59 }
  0xa3   : > { %v1065_v15 = vld [vmem:[%s4580_s28 + $0x80] sm:$0xff] }
  0xa4   : > { %v1594_v34 = vunpack.c.h.bf16 %v1065_v15 }
  0xa6   : > { %502 = vmax.xlane.f32.xlu0 %v501_v22  ;;  %505 = vmax.xlane.f32.xlu1 %v504_v23  ;;  %v1577_v22 = vunpack.c.l.bf16 %v1057_v14  ;;  %v1578_v23 = vunpack.c.h.bf16 %v1057_v14 }
  0xa8   : > { %v2602_v42 = vadd.f32 %v1578_v23, %v1577_v22  ;;  %v1053_v22 = vld [vmem:[%s4580_s28 + $0x20] sm:$0xff]  ;;  %v1060_v23 = vld [vmem:[%s4580_s28 + $0x58] sm:$0xff] }
  0xaa   : > { %508 = vmax.xlane.f32.xlu0 %v507_v30  ;;  %511 = vmax.xlane.f32.xlu1 %v510_v31  ;;  %v1066_v30 = vld [vmem:[%s4580_s28 + $0x88] sm:$0xff]  ;;  %v1593_v31 = vunpack.c.l.bf16 %v1065_v15 }
  0xab   : > { %v1595_v43 = vunpack.c.l.bf16 %v1066_v30 }
  0xae   : > { %514 = vmax.xlane.f32.xlu0 %v513_v38  ;;  %517 = vmax.xlane.f32.xlu1 %v516_v39  ;;  %v2587_v38 = vadd.f32 %v2586_v19, %v1564_v18  ;;  %v1579_v39 = vunpack.c.l.bf16 %v1058_v27  ;;  %v1582_v18 = vunpack.c.h.bf16 %v1059_v58 }
  0xb0   : > { %v2588_v50 = vadd.f32 %v2587_v38, %v1565_v35  ;;  %v1598_v38 = vunpack.c.h.bf16 %v1067_v59 }
  0xb2   : > { %520 = vmax.xlane.f32.xlu0 %v519_v46  ;;  %523 = vmax.xlane.f32.xlu1 %v522_v47  ;;  %v2619_v46 = vadd.f32 %v1594_v34, %v1593_v31  ;;  %v1566_v47 = vunpack.c.h.bf16 %v1051_v26  ;;  %v1569_v26 = vunpack.c.l.bf16 %v1053_v22  ;;  %v1583_v31 = vunpack.c.l.bf16 %v1060_v23 }
  0xb4   : > { %v2589_v4 = vadd.f32 %v2588_v50, %v1566_v47  ;;  %v4831_v50 = vld [vmem:[%s4580_s28 + $0x98] sm:$0xff] }
  0xb6   : > { %526 = vmax.xlane.f32.xlu0 %v525_v54  ;;  %529 = vmax.xlane.f32.xlu1 %v528_v55  ;;  %v2603_v54 = vadd.f32 %v2602_v42, %v1579_v39  ;;  %v1052_v55 = vld [vmem:[%s4580_s28 + $0x18] sm:$0xff] }
  0xb7   : > { %v1567_v3 = vunpack.c.l.bf16 %v1052_v55  ;;  %v1568_v14 = vunpack.c.h.bf16 %v1052_v55  ;;  %v1584_v55 = vunpack.c.h.bf16 %v1060_v23  ;;  %v1062_v23 = vld [vmem:[%s4580_s28 + $0x68] sm:$0xff] }
  0xb8   : > { %v2604_v7 = vadd.f32 %v2603_v54, %v1580_v51  ;;  %v1054_v51 = vld [vmem:[%s4580_s28 + $0x28] sm:$0xff]  ;;  %v1061_v54 = vld [vmem:[%s4580_s28 + $0x60] sm:$0xff] }
  0xb9   : > { %v2590_v15 = vadd.f32 %v2589_v4, %v1567_v3  ;;  %v1571_v3 = vunpack.c.l.bf16 %v1054_v51 }
  0xba   : > { %532 = vmax.xlane.f32.xlu0 %v531_v62  ;;  %535 = vmax.xlane.f32.xlu1 %v534_v63  ;;  %v1596_v62 = vunpack.c.h.bf16 %v1066_v30  ;;  %v2620_v63 = vadd.f32 %v2619_v46, %v1595_v43  ;;  %v2605_v19 = vadd.f32 %v2604_v7, %v1581_v6  ;;  %v1570_v46 = vunpack.c.h.bf16 %v1053_v22 }
  0xbb   : > { %v2591_v27 = vadd.f32 %v2590_v15, %v1568_v14  ;;  %v1572_v15 = vunpack.c.h.bf16 %v1054_v51  ;;  %v1074_v51 = vld [vmem:[%s4580_s28 + $0xc8] sm:$0xff] }
  0xbc   : > { %v2621_v11 = vadd.f32 %v2620_v63, %v1596_v62  ;;  %v2606_v30 = vadd.f32 %v2605_v19, %v1582_v18  ;;  %v1073_v18 = vld [vmem:[%s4580_s28 + $0xc0] sm:$0xff]  ;;  %v1055_v19 = vld [vmem:[%s4580_s28 + $0x30] sm:$0xff] }
  0xbd   : > { %v2592_v47 = vadd.f32 %v2591_v27, %v1569_v26  ;;  %v1586_v26 = vunpack.c.h.bf16 %v1061_v54 }
  0xbe   : > { %v2622_v39 = vadd.f32 %v2621_v11, %v1597_v10  ;;  %v2607_v58 = vadd.f32 %v2606_v30, %v1583_v31 }
  0xbf   : > { %v2593_v59 = vadd.f32 %v2592_v47, %v1570_v46 }
  0xc0   : > { %v2608_v7 = vadd.f32 %v2607_v58, %v1584_v55  ;;  %v2623_v10 = vadd.f32 %v2622_v39, %v1598_v38  ;;  %v1573_v38 = vunpack.c.l.bf16 %v1055_v19 }
  0xc1   : > { %v2594_v22 = vadd.f32 %v2593_v59, %v1571_v3  ;;  %v4846_v59 = vld [vmem:[%s4580_s28 + $0xa0] sm:$0xff] }
  0xc3   : > { %v2595_v47 = vadd.f32 %v2594_v22, %v1572_v15  ;;  %v1601_v15 = vunpack.c.l.bf16 %v4846_v59  ;;  %v1612_v22 = vunpack.c.h.bf16 %v1074_v51 }
  0xcb   : > { %v347_v34 = vpop.xlane.xlu0 %346  ;;  %v353_v35 = vpop.xlane.xlu1 %352 }
  0xcc   : > { %v537_v42 = vsub.f32 %v4593_v0, %v347_v34  ;;  %v539_v43 = vsub.f32 %v4596_v1, %v353_v35  ;;  %v1585_v0 = vunpack.c.l.bf16 %v1061_v54  ;;  %v1599_v1 = vunpack.c.l.bf16 %v4831_v50 }
  0xcd   : > { %v1587_v34 = vunpack.c.l.bf16 %v1062_v23  ;;  %v1600_v54 = vunpack.c.h.bf16 %v4831_v50 }
  0xce   : > { %v601_v62 = vmul.f32 1.442695, %v537_v42  ;;  %v605_v63 = vmul.f32 1.442695, %v539_v43  ;;  %v2609_v27 = vadd.f32 %v2608_v7, %v1585_v0  ;;  %v1610_v43 = vunpack.c.h.bf16 %v1073_v18 }
  0xcf   : > { %v350_v4 = vpop.xlane.xlu0 %349  ;;  %v356_v6 = vpop.xlane.xlu1 %355  ;;  %v2624_v55 = vadd.f32 %v2623_v10, %v1599_v1  ;;  %v1574_v0 = vunpack.c.h.bf16 %v1055_v19  ;;  %v4854_v1 = vld [vmem:[%s4580_s28 + $0x38] sm:$0xff]  ;;  %v2596_v10 = vadd.f32 %v2595_v47, %v1573_v38 }
  0xd0   : > { %4094 = vpow2.f32 %v601_v62  ;;  %v538_v11 = vsub.f32 %v4599_v2, %v350_v4  ;;  %v540_v14 = vsub.f32 %v4606_v5, %v356_v6  ;;  %v2610_v39 = vadd.f32 %v2609_v27, %v1586_v26 }
  0xd1   : > { %4096 = vpow2.f32 %v605_v63  ;;  %v1609_v2 = vunpack.c.l.bf16 %v1073_v18  ;;  %v1588_v63 = vunpack.c.h.bf16 %v1062_v23  ;;  %v2625_v18 = vadd.f32 %v2624_v55, %v1600_v54 }
  0xd2   : > { %v603_v31 = vmul.f32 1.442695, %v538_v11  ;;  %v607_v30 = vmul.f32 1.442695, %v540_v14  ;;  %v2611_v3 = vadd.f32 %v2610_v39, %v1587_v34  ;;  %v4857_v14 = vld [vmem:[%s4580_s28 + $0xd0] sm:$0xff] }
  0xd3   : > { %v359_v35 = vpop.xlane.xlu0 %358  ;;  %v362_v42 = vpop.xlane.xlu1 %361  ;;  %v2636_v7 = vadd.f32 %v1610_v43, %v1609_v2  ;;  %v2597_v43 = vadd.f32 %v2596_v10, %v1574_v0  ;;  %v4886_v0 = vld [vmem:[%s4580_s28 + $0x78] sm:$0xff] }
  0xd4   : > { %4098 = vpow2.f32 %v603_v31  ;;  %v541_v5 = vsub.f32 %v4613_v8, %v359_v35  ;;  %v542_v46 = vsub.f32 %v4616_v9, %v362_v42  ;;  %v4849_v8 = vld [vmem:[%s4580_s28 + $0x70] sm:$0xff]  ;;  %v1611_v9 = vunpack.c.l.bf16 %v1074_v51 }
  0xd5   : > { %4100 = vpow2.f32 %v607_v30  ;;  %v1589_v27 = vunpack.c.l.bf16 %v4849_v8  ;;  %v1575_v35 = vunpack.c.l.bf16 %v4854_v1  ;;  %v1613_v42 = vunpack.c.l.bf16 %v4857_v14 }
  0xd6   : > { %v609_v58 = vmul.f32 1.442695, %v541_v5  ;;  %v611_v62 = vmul.f32 1.442695, %v542_v46  ;;  %v2637_v38 = vadd.f32 %v2636_v7, %v1611_v9  ;;  %v4872_v5 = vld [vmem:[%s4580_s28 + $0xa8] sm:$0xff]  ;;  %v1590_v47 = vunpack.c.h.bf16 %v4849_v8 }
  0xd7   : > { %v365_v4 = vpop.xlane.xlu0 %364  ;;  %v368_v6 = vpop.xlane.xlu1 %367  ;;  %v1602_v51 = vunpack.c.h.bf16 %v4846_v59  ;;  %v1603_v59 = vunpack.c.l.bf16 %v4872_v5 }
  0xd8   : > { %4102 = vpow2.f32 %v609_v58  ;;  %v543_v11 = vsub.f32 %v4623_v12, %v365_v4  ;;  %v544_v50 = vsub.f32 %v4626_v13, %v368_v6  ;;  %v2612_v12 = vadd.f32 %v2611_v3, %v1588_v63 }
  0xd9   : > { %4104 = vpow2.f32 %v611_v62  ;;  %v2626_v62 = vadd.f32 %v2625_v18, %v1601_v15  ;;  %v1576_v6 = vunpack.c.h.bf16 %v4854_v1  ;;  %v2638_v8 = vadd.f32 %v2637_v38, %v1612_v22 }
  0xda   : > { %v4860_v19 = vpop.eup %4094  ;;  %v613_v23 = vmul.f32 1.442695, %v543_v11  ;;  %v615_v26 = vmul.f32 1.442695, %v544_v50  ;;  %v2598_v11 = vadd.f32 %v2597_v43, %v1575_v35  ;;  %v4892_v50 = vld [vmem:[%s4580_s28 + $0xb0] sm:$0xff]  ;;  %v1604_v1 = vunpack.c.h.bf16 %v4872_v5  ;;  %v4911_v43 = vld [vmem:[%s4580_s28 + $0xb8] sm:$0xff] }
  0xdb   : > { %v4863_v31 = vpop.eup %4096  ;;  %v371_v13 = vpop.xlane.xlu0 %370  ;;  %v729_v30 = vsel %vm215_vm0, %v4860_v19, 0.0  ;;  %v2627_v15 = vadd.f32 %v2626_v62, %v1602_v51  ;;  %v1076_v5 = vld [vmem:[%s4580_s28 + $0xd8] sm:$0xff]  ;;  %v1614_v51 = vunpack.c.h.bf16 %v4857_v14 }
  0xdc   : > { %v374_v34 = vpop.xlane.xlu1 %373  ;;  %4106 = vpow2.f32 %v613_v23  ;;  %v545_v39 = vsub.f32 %v4633_v16, %v371_v13  ;;  %730 = vadd.xlane.f32.xlu0 %v729_v30  ;;  %v735_v46 = vsel %vm215_vm0, %v4863_v31, 0.0  ;;  %v2613_v16 = vadd.f32 %v2612_v12, %v1589_v27 }
  0xdd   : > { %v546_v2 = vsub.f32 %v4636_v17, %v374_v34  ;;  %4108 = vpow2.f32 %v615_v26  ;;  %v1605_v30 = vunpack.c.l.bf16 %v4892_v50  ;;  %v1606_v34 = vunpack.c.h.bf16 %v4892_v50 }
  0xde   : > { %v4878_v54 = vpop.eup %4098  ;;  %v617_v55 = vmul.f32 1.442695, %v545_v39  ;;  %v2614_v26 = vadd.f32 %v2613_v16, %v1590_v47  ;;  %v2628_v35 = vadd.f32 %v2627_v15, %v1603_v59  ;;  %v1592_v47 = vunpack.c.h.bf16 %v4886_v0  ;;  %v1077_v59 = vld [vmem:[%s4580_s28 + $0xe0] sm:$0xff] }
  0xdf   : > { %v619_v58 = vmul.f32 1.442695, %v546_v2  ;;  %v4880_v17 = vpop.eup %4100  ;;  %v377_v63 = vpop.xlane.xlu0 %376  ;;  %v732_v3 = vsel %vm215_vm0, %v4878_v54, 0.0  ;;  %v4908_v2 = vadd.f32 %v2598_v11, %v1576_v6  ;;  %v1607_v6 = vunpack.c.l.bf16 %v4911_v43  ;;  %v4934_v11 = vld [vmem:[%s4580_s28 + $0xe8] sm:$0xff] }
  0xe0   : > { %v380_v4 = vpop.xlane.xlu1 %379  ;;  %4110 = vpow2.f32 %v617_v55  ;;  %v547_v9 = vsub.f32 %v4643_v20, %v377_v63  ;;  %736 = vadd.xlane.f32.xlu0 %v735_v46  ;;  %733 = vadd.xlane.f32.xlu1 %v732_v3  ;;  %v738_v10 = vsel %vm215_vm0, %v4880_v17, 0.0  ;;  %v1591_v20 = vunpack.c.l.bf16 %v4886_v0 }
  0xe1   : > { %v548_v7 = vsub.f32 %v4646_v21, %v380_v4  ;;  %4112 = vpow2.f32 %v619_v58  ;;  %v2629_v0 = vadd.f32 %v2628_v35, %v1604_v1  ;;  %v4945_v35 = vld [vmem:[%s4580_s28 + $0xf0] sm:$0xff] }
  0xe2   : > { %v4897_v18 = vpop.eup %4102  ;;  %v621_v22 = vmul.f32 1.442695, %v547_v9  ;;  %v2615_v16 = vadd.f32 %v2614_v26, %v1591_v20  ;;  %v1615_v9 = vunpack.c.l.bf16 %v1076_v5  ;;  %v1617_v20 = vunpack.c.l.bf16 %v1077_v59 }
  0xe3   : > { %v623_v23 = vmul.f32 1.442695, %v548_v7  ;;  %v4900_v21 = vpop.eup %4104  ;;  %v383_v27 = vpop.xlane.xlu0 %382  ;;  %v741_v12 = vsel %vm215_vm0, %v4897_v18, 0.0 }
  0xe4   : > { %v386_v13 = vpop.xlane.xlu1 %385  ;;  %4114 = vpow2.f32 %v621_v22  ;;  %v549_v38 = vsub.f32 %v4653_v24, %v383_v27  ;;  %739 = vadd.xlane.f32.xlu1 %v738_v10  ;;  %742 = vadd.xlane.f32.xlu0 %v741_v12  ;;  %v744_v46 = vsel %vm215_vm0, %v4900_v21, 0.0  ;;  %v1616_v10 = vunpack.c.h.bf16 %v1076_v5  ;;  %v1081_v5 = vld [vmem:[%s4580_s28 + $0x100] sm:$0xff] }
  0xe5   : > { %v550_v39 = vsub.f32 %v4656_v25, %v386_v13  ;;  %4116 = vpow2.f32 %v623_v23  ;;  %v2639_v25 = vadd.f32 %v2638_v8, %v1613_v42  ;;  %v1608_v42 = vunpack.c.h.bf16 %v4911_v43  ;;  %v5013_v43 = vld [vmem:[%s4580_s28 + $0x130] sm:$0xff] }
  0xe6   : > { %v4918_v55 = vpop.eup %4106  ;;  %v625_v24 = vmul.f32 1.442695, %v549_v38  ;;  %v4938_v23 = vadd.f32 %v2615_v16, %v1592_v47  ;;  %v2630_v13 = vadd.f32 %v2629_v0, %v1605_v30  ;;  %v1618_v38 = vunpack.c.h.bf16 %v1077_v59 }
  0xe7   : > { %v627_v58 = vmul.f32 1.442695, %v550_v39  ;;  %v4922_v62 = vpop.eup %4108  ;;  %v389_v63 = vpop.xlane.xlu0 %388  ;;  %v747_v3 = vsel %vm215_vm0, %v4918_v55, 0.0  ;;  %v2640_v1 = vadd.f32 %v2639_v25, %v1614_v51  ;;  %v1619_v51 = vunpack.c.l.bf16 %v4934_v11 }
  0xe8   : > { %v392_v4 = vpop.xlane.xlu1 %391  ;;  %4118 = vpow2.f32 %v625_v24  ;;  %v551_v7 = vsub.f32 %v4663_v28, %v389_v63  ;;  %745 = vadd.xlane.f32.xlu1 %v744_v46  ;;  %748 = vadd.xlane.f32.xlu0 %v747_v3  ;;  %v750_v8 = vsel %vm215_vm0, %v4922_v62, 0.0  ;;  %v1620_v24 = vunpack.c.h.bf16 %v4934_v11  ;;  %v1082_v3 = vld [vmem:[%s4580_s28 + $0x108] sm:$0xff] }
  0xe9   : > { %v552_v14 = vsub.f32 %v4666_v29, %v392_v4  ;;  %4120 = vpow2.f32 %v627_v58  ;;  %v2641_v39 = vadd.f32 %v2640_v1, %v1615_v9  ;;  %v1625_v4 = vunpack.c.l.bf16 %v1081_v5 }
  0xea   : > { %v4936_v15 = vpop.eup %4110  ;;  %v629_v22 = vmul.f32 1.442695, %v551_v7  ;;  %v2631_v7 = vadd.f32 %v2630_v13, %v1606_v34  ;;  %v1626_v11 = vunpack.c.h.bf16 %v1081_v5  ;;  %v1628_v13 = vunpack.c.h.bf16 %v1082_v3 }
  0xeb   : > { %v631_v28 = vmul.f32 1.442695, %v552_v14  ;;  %v4940_v29 = vpop.eup %4112  ;;  %v395_v26 = vpop.xlane.xlu0 %394  ;;  %v753_v27 = vsel %vm215_vm0, %v4936_v15, 0.0  ;;  %v2642_v58 = vadd.f32 %v2641_v39, %v1616_v10  ;;  %v4965_v14 = vld [vmem:[%s4580_s28 + $0xf8] sm:$0xff] }
  0xec   : > { %8709 = vst [vmem:[#allocation5_spill] sm:$0xff] %v4940_v29  ;;  %v398_v12 = vpop.xlane.xlu1 %397  ;;  %4122 = vpow2.f32 %v629_v22  ;;  %v553_v46 = vsub.f32 %v4673_v32, %v395_v26  ;;  %751 = vadd.xlane.f32.xlu1 %v750_v8  ;;  %754 = vadd.xlane.f32.xlu0 %v753_v27  ;;  %v756_v30 = vsel %vm215_vm0, %v4940_v29, 0.0  ;;  %v1621_v32 = vunpack.c.l.bf16 %v4945_v35 }
  0xed   : > { %v554_v47 = vsub.f32 %v4676_v33, %v398_v12  ;;  %4124 = vpow2.f32 %v631_v28  ;;  %v2643_v8 = vadd.f32 %v2642_v58, %v1617_v20  ;;  %v1622_v22 = vunpack.c.h.bf16 %v4945_v35 }
  0xee   : > { %v4954_v16 = vpop.eup %4114  ;;  %v633_v25 = vmul.f32 1.442695, %v553_v46  ;;  %v1627_v28 = vunpack.c.l.bf16 %v1082_v3  ;;  %v1623_v12 = vunpack.c.l.bf16 %v4965_v14  ;;  %v2653_v58 = vadd.f32 %v1626_v11, %v1625_v4 }
  0xef   : > { %8710 = vst [vmem:[#allocation6_spill] sm:$0xff] %v4954_v16  ;;  %v635_v63 = vmul.f32 1.442695, %v554_v47  ;;  %v4958_v0 = vpop.eup %4116  ;;  %v401_v33 = vpop.xlane.xlu0 %400  ;;  %v759_v59 = vsel %vm215_vm0, %v4954_v16, 0.0  ;;  %v2644_v34 = vadd.f32 %v2643_v8, %v1618_v38  ;;  %v2632_v47 = vadd.f32 %v2631_v7, %v1607_v6  ;;  %v4993_v7 = vld [vmem:[%s4580_s28 + $0x120] sm:$0xff] }
  0xf0   : > { %8711 = vst [vmem:[#allocation7_spill] sm:$0xff] %v4958_v0  ;;  %v404_v9 = vpop.xlane.xlu1 %403  ;;  %4126 = vpow2.f32 %v633_v25  ;;  %v555_v10 = vsub.f32 %v4683_v36, %v401_v33  ;;  %757 = vadd.xlane.f32.xlu1 %v756_v30  ;;  %760 = vadd.xlane.f32.xlu0 %v759_v59  ;;  %v762_v50 = vsel %vm215_vm0, %v4958_v0, 0.0  ;;  %v1083_v36 = vld [vmem:[%s4580_s28 + $0x110] sm:$0xff]  ;;  %v4983_v30 = vld [vmem:[%s4580_s28 + $0x118] sm:$0xff]  ;;  %v1624_v3 = vunpack.c.h.bf16 %v4965_v14 }
  0xf1   : > { %v556_v1 = vsub.f32 %v4686_v37, %v404_v9  ;;  %4128 = vpow2.f32 %v635_v63  ;;  %v2645_v38 = vadd.f32 %v2644_v34, %v1619_v51  ;;  %v1629_v6 = vunpack.c.l.bf16 %v1083_v36 }
  0xf2   : > { %v4972_v26 = vpop.eup %4118  ;;  %v637_v20 = vmul.f32 1.442695, %v555_v10  ;;  %v2654_v51 = vadd.f32 %v2653_v58, %v1627_v28  ;;  %v1631_v8 = vunpack.c.l.bf16 %v4983_v30  ;;  %v5005_v28 = vld [vmem:[%s4580_s28 + $0x128] sm:$0xff] }
  0xf3   : > { %8712 = vst [vmem:[#allocation8_spill] sm:$0xff] %v4972_v26  ;;  %v639_v27 = vmul.f32 1.442695, %v556_v1  ;;  %v4976_v39 = vpop.eup %4120  ;;  %v407_v37 = vpop.xlane.xlu0 %406  ;;  %v765_v5 = vsel %vm215_vm0, %v4972_v26, 0.0  ;;  %v2646_v34 = vadd.f32 %v2645_v38, %v1620_v24 }
  0xf4   : > { %8713 = vst [vmem:[#allocation9_spill] sm:$0xff] %v4976_v39  ;;  %v410_v46 = vpop.xlane.xlu1 %409  ;;  %4130 = vpow2.f32 %v637_v20  ;;  %v557_v25 = vsub.f32 %v4693_v40, %v407_v37  ;;  %763 = vadd.xlane.f32.xlu1 %v762_v50  ;;  %766 = vadd.xlane.f32.xlu0 %v765_v5  ;;  %v768_v33 = vsel %vm215_vm0, %v4976_v39, 0.0  ;;  %v1630_v40 = vunpack.c.h.bf16 %v1083_v36 }
  0xf5   : > { %v558_v63 = vsub.f32 %v4696_v41, %v410_v46  ;;  %4132 = vpow2.f32 %v639_v27  ;;  %v5002_v50 = vadd.f32 %v2632_v47, %v1608_v42  ;;  %v2655_v20 = vadd.f32 %v2654_v51, %v1628_v13  ;;  %v1089_v51 = vld [vmem:[%s4580_s28 + $0x140] sm:$0xff] }
  0xf6   : > { %v4990_v59 = vpop.eup %4122  ;;  %v641_v9 = vmul.f32 1.442695, %v557_v25  ;;  %v1632_v37 = vunpack.c.h.bf16 %v4983_v30  ;;  %v1633_v42 = vunpack.c.l.bf16 %v4993_v7  ;;  %v1634_v47 = vunpack.c.h.bf16 %v4993_v7  ;;  %v5031_v7 = vld [vmem:[%s4580_s28 + $0x138] sm:$0xff] }
  0xf7   : > { %8714 = vst [vmem:[#allocation10_spill] sm:$0xff] %v4990_v59  ;;  %v643_v4 = vmul.f32 1.442695, %v558_v63  ;;  %v4996_v11 = vpop.eup %4124  ;;  %v413_v41 = vpop.xlane.xlu0 %412  ;;  %v771_v10 = vsel %vm215_vm0, %v4990_v59, 0.0  ;;  %v2656_v24 = vadd.f32 %v2655_v20, %v1629_v6  ;;  %v2647_v63 = vadd.f32 %v2646_v34, %v1621_v32 }
  0xf8   : > { %8715 = vst [vmem:[#allocation11_spill] sm:$0xff] %v4996_v11  ;;  %v416_v1 = vpop.xlane.xlu1 %415  ;;  %4134 = vpow2.f32 %v641_v9  ;;  %v559_v27 = vsub.f32 %v4703_v44, %v413_v41  ;;  %769 = vadd.xlane.f32.xlu1 %v768_v33  ;;  %772 = vadd.xlane.f32.xlu0 %v771_v10  ;;  %v774_v5 = vsel %vm215_vm0, %v4996_v11, 0.0  ;;  %v1636_v33 = vunpack.c.h.bf16 %v5005_v28 }
  0xf9   : > { %v560_v36 = vsub.f32 %v4706_v45, %v416_v1  ;;  %4136 = vpow2.f32 %v643_v4  ;;  %v1635_v45 = vunpack.c.l.bf16 %v5005_v28  ;;  %v2657_v6 = vadd.f32 %v2656_v24, %v1630_v40 }
  0xfa   : > { %v5016_v13 = vpop.eup %4126  ;;  %v645_v46 = vmul.f32 1.442695, %v559_v27  ;;  %v1637_v41 = vunpack.c.l.bf16 %v5013_v43  ;;  %v1638_v10 = vunpack.c.h.bf16 %v5013_v43  ;;  %v1641_v27 = vunpack.c.l.bf16 %v1089_v51 }
  0xfb   : > { %8716 = vst [vmem:[#allocation12_spill] sm:$0xff] %v5016_v13  ;;  %v647_v44 = vmul.f32 1.442695, %v560_v36  ;;  %v5020_v38 = vpop.eup %4128  ;;  %v419_v30 = vpop.xlane.xlu0 %418  ;;  %v777_v58 = vsel %vm215_vm0, %v5016_v13, 0.0  ;;  %v2658_v40 = vadd.f32 %v2657_v6, %v1631_v8  ;;  %v1642_v36 = vunpack.c.h.bf16 %v1089_v51  ;;  %v5051_v51 = vld [vmem:[%s4580_s28 + $0x150] sm:$0xff]  ;;  %v1098_v6 = vld [vmem:[%s4580_s28 + $0x188] sm:$0xff] }
  0xfc   : > { %8717 = vst [vmem:[#allocation13_spill] sm:$0xff] %v5020_v38  ;;  %v422_v25 = vpop.xlane.xlu1 %421  ;;  %4138 = vpow2.f32 %v645_v46  ;;  %v561_v9 = vsub.f32 %v4713_v48, %v419_v30  ;;  %775 = vadd.xlane.f32.xlu1 %v774_v5  ;;  %778 = vadd.xlane.f32.xlu0 %v777_v58  ;;  %v780_v32 = vsel %vm215_vm0, %v5020_v38, 0.0  ;;  %v1090_v48 = vld [vmem:[%s4580_s28 + $0x148] sm:$0xff] }
  0xfd   : > { %v562_v4 = vsub.f32 %v4716_v49, %v422_v25  ;;  %4140 = vpow2.f32 %v647_v44  ;;  %v2648_v44 = vadd.f32 %v2647_v63, %v1622_v22  ;;  %v2659_v30 = vadd.f32 %v2658_v40, %v1632_v37 }
  0xfe   : > { %v5037_v1 = vpop.eup %4130  ;;  %v649_v34 = vmul.f32 1.442695, %v561_v9  ;;  %v1643_v63 = vunpack.c.l.bf16 %v1090_v48  ;;  %v2670_v40 = vadd.f32 %v1642_v36, %v1641_v27  ;;  %v1646_v36 = vunpack.c.h.bf16 %v5051_v51 }
  0xff   : > { %8718 = vst [vmem:[#allocation14_spill] sm:$0xff] %v5037_v1  ;;  %v651_v20 = vmul.f32 1.442695, %v562_v4  ;;  %v5040_v49 = vpop.eup %4132  ;;  %v425_v5 = vpop.xlane.xlu0 %424  ;;  %v783_v24 = vsel %vm215_vm0, %v5037_v1, 0.0  ;;  %v2660_v22 = vadd.f32 %v2659_v30, %v1633_v42  ;;  %v1645_v30 = vunpack.c.l.bf16 %v5051_v51  ;;  %v5891_v1 = vld [vmem:[%s4580_s28 + $0x4b8] sm:$0xff] }
 0x100   : > { %8719 = vst [vmem:[#allocation15_spill] sm:$0xff] %v5040_v49  ;;  %v428_v46 = vpop.xlane.xlu1 %427  ;;  %4142 = vpow2.f32 %v649_v34  ;;  %v563_v58 = vsub.f32 %v4723_v52, %v425_v5  ;;  %781 = vadd.xlane.f32.xlu1 %v780_v32  ;;  %784 = vadd.xlane.f32.xlu0 %v783_v24  ;;  %v786_v35 = vsel %vm215_vm0, %v5040_v49, 0.0  ;;  %v5058_v52 = vld [vmem:[%s4580_s28 + $0x158] sm:$0xff]  ;;  %v1644_v32 = vunpack.c.h.bf16 %v1090_v48 }
 0x101   : > { %v564_v25 = vsub.f32 %v4726_v53, %v428_v46  ;;  %4144 = vpow2.f32 %v651_v20  ;;  %v2649_v24 = vadd.f32 %v2648_v44, %v1623_v12  ;;  %v2661_v42 = vadd.f32 %v2660_v22, %v1634_v47  ;;  %v5067_v46 = vld [vmem:[%s4580_s28 + $0x160] sm:$0xff] }
 0x102   : > { %v5055_v9 = vpop.eup %4134  ;;  %v653_v37 = vmul.f32 1.442695, %v563_v58  ;;  %v1647_v47 = vunpack.c.l.bf16 %v5058_v52  ;;  %v2671_v44 = vadd.f32 %v2670_v40, %v1643_v63 }
 0x103   : > { %8720 = vst [vmem:[#allocation16_spill] sm:$0xff] %v5055_v9  ;;  %v655_v4 = vmul.f32 1.442695, %v564_v25  ;;  %v5060_v53 = vpop.eup %4136  ;;  %v431_v34 = vpop.xlane.xlu0 %430  ;;  %v789_v20 = vsel %vm215_vm0, %v5055_v9, 0.0  ;;  %v5089_v63 = vadd.f32 %v2649_v24, %v1624_v3  ;;  %v2662_v40 = vadd.f32 %v2661_v42, %v1635_v45  ;;  %v1097_v24 = vld [vmem:[%s4580_s28 + $0x180] sm:$0xff]  ;;  %v5574_v9 = vld [vmem:[%s4580_s28 + $0x318] sm:$0xff] }
 0x104   : > { %8721 = vst [vmem:[#allocation17_spill] sm:$0xff] %v5060_v53  ;;  %v434_v5 = vpop.xlane.xlu1 %433  ;;  %4146 = vpow2.f32 %v653_v37  ;;  %v565_v48 = vsub.f32 %v4733_v56, %v431_v34  ;;  %787 = vadd.xlane.f32.xlu1 %v786_v35  ;;  %790 = vadd.xlane.f32.xlu0 %v789_v20  ;;  %v792_v12 = vsel %vm215_vm0, %v5060_v53, 0.0  ;;  %v5079_v37 = vld [vmem:[%s4580_s28 + $0x168] sm:$0xff]  ;;  %v1648_v56 = vunpack.c.h.bf16 %v5058_v52  ;;  %v5094_v20 = vld [vmem:[%s4580_s28 + $0x170] sm:$0xff] }
 0x105   : > { %v566_v27 = vsub.f32 %v4736_v57, %v434_v5  ;;  %4148 = vpow2.f32 %v655_v4  ;;  %v1649_v57 = vunpack.c.l.bf16 %v5067_v46  ;;  %v2672_v52 = vadd.f32 %v2671_v44, %v1644_v32  ;;  %v1147_v53 = vld [vmem:[%s4580_s28 + $0x310] sm:$0xff] }
 0x106   : > { %v5076_v58 = vpop.eup %4138  ;;  %v657_v25 = vmul.f32 1.442695, %v565_v48  ;;  %v1657_v3 = vunpack.c.l.bf16 %v1097_v24 }
 0x107   : > { %8722 = vst [vmem:[#allocation18_spill] sm:$0xff] %v5076_v58  ;;  %v659_v22 = vmul.f32 1.442695, %v566_v27  ;;  %v5083_v35 = vpop.eup %4140  ;;  %v437_v51 = vpop.xlane.xlu0 %436  ;;  %v795_v4 = vsel %vm215_vm0, %v5076_v58, 0.0  ;;  %v1650_v27 = vunpack.c.h.bf16 %v5067_v46  ;;  %v2673_v45 = vadd.f32 %v2672_v52, %v1645_v30 }
 0x108   : > { %8723 = vst [vmem:[#allocation19_spill] sm:$0xff] %v5083_v35  ;;  %v440_v34 = vpop.xlane.xlu1 %439  ;;  %4150 = vpow2.f32 %v657_v25  ;;  %v567_v5 = vsub.f32 %v4743_v60, %v437_v51  ;;  %793 = vadd.xlane.f32.xlu1 %v792_v12  ;;  %796 = vadd.xlane.f32.xlu0 %v795_v4  ;;  %v798_v14 = vsel %vm215_vm0, %v5083_v35, 0.0  ;;  %v2663_v30 = vadd.f32 %v2662_v40, %v1636_v33  ;;  %v5114_v4 = vld [vmem:[%s4580_s28 + $0x178] sm:$0xff]  ;;  %v1146_v35 = vld [vmem:[%s4580_s28 + $0x308] sm:$0xff] }
 0x109   : > { %v568_v48 = vsub.f32 %v4746_v61, %v440_v34  ;;  %4152 = vpow2.f32 %v659_v22  ;;  %v2674_v52 = vadd.f32 %v2673_v45, %v1646_v36  ;;  %v4351_v61 = vld [vmem:[%s4590_s3 + $0x108] sm:$0xff]  ;;  %v1658_v40 = vunpack.c.h.bf16 %v1097_v24 }
 0x10a   : > { %v5103_v32 = vpop.eup %4142  ;;  %v661_v42 = vmul.f32 1.442695, %v567_v5  ;;  %v4350_v5 = vld [vmem:[%s4590_s3 + $0x100] sm:$0xff] }
 0x10b   : > { %8724 = vst [vmem:[#allocation20_spill] sm:$0xff] %v5103_v32  ;;  %v663_v60 = vmul.f32 1.442695, %v568_v48  ;;  %v5107_v44 = vpop.eup %4144  ;;  %v443_v25 = vpop.xlane.xlu0 %442  ;;  %v801_v22 = vsel %vm215_vm0, %v5103_v32, 0.0  ;;  %v2675_v33 = vadd.f32 %v2674_v52, %v1647_v47  ;;  %v2664_v47 = vadd.f32 %v2663_v30, %v1637_v41  ;;  %v4352_v52 = vld [vmem:[%s4590_s3 + $0x110] sm:$0xff] }
 0x10c   : > { %8725 = vst [vmem:[#allocation21_spill] sm:$0xff] %v5107_v44  ;;  %v446_v51 = vpop.xlane.xlu1 %445  ;;  %4154 = vpow2.f32 %v661_v42  ;;  %v569_v48 = vsub.f32 %v4350_v5, %v443_v25  ;;  %799 = vadd.xlane.f32.xlu1 %v798_v14  ;;  %802 = vadd.xlane.f32.xlu0 %v801_v22  ;;  %v804_v28 = vsel %vm215_vm0, %v5107_v44, 0.0  ;;  %v1660_v14 = vunpack.c.h.bf16 %v1098_v6  ;;  %v5390_v32 = vld [vmem:[%s4580_s28 + $0x250] sm:$0xff] }
 0x10d   : > { %v570_v12 = vsub.f32 %v4351_v61, %v446_v51  ;;  %4156 = vpow2.f32 %v663_v60  ;;  %v2676_v24 = vadd.f32 %v2675_v33, %v1648_v56  ;;  %v5133_v51 = vld [vmem:[%s4580_s28 + $0x190] sm:$0xff]  ;;  %v5142_v56 = vld [vmem:[%s4580_s28 + $0x198] sm:$0xff]  ;;  %v2687_v30 = vadd.f32 %v1658_v40, %v1657_v3 }
 0x10e   : > { %v5122_v8 = vpop.eup %4146  ;;  %v665_v36 = vmul.f32 1.442695, %v569_v48  ;;  %v4353_v48 = vld [vmem:[%s4590_s3 + $0x118] sm:$0xff]  ;;  %v2665_v3 = vadd.f32 %v2664_v47, %v1638_v10  ;;  %v5165_v10 = vld [vmem:[%s4580_s28 + $0x1a8] sm:$0xff]  ;;  %v1664_v46 = vunpack.c.h.bf16 %v5142_v56 }
 0x10f   : > { %8726 = vst [vmem:[#allocation22_spill] sm:$0xff] %v5122_v8  ;;  %v667_v45 = vmul.f32 1.442695, %v570_v12  ;;  %v5126_v61 = vpop.eup %4148  ;;  %v449_v25 = vpop.xlane.xlu0 %448  ;;  %v807_v60 = vsel %vm215_vm0, %v5122_v8, 0.0  ;;  %v1659_v12 = vunpack.c.l.bf16 %v1098_v6  ;;  %v2677_v41 = vadd.f32 %v2676_v24, %v1649_v57  ;;  %v4371_v8 = vld [vmem:[%s4590_s3 + $0x1a8] sm:$0xff] }
 0x110   : > { %8727 = vst [vmem:[#allocation23_spill] sm:$0xff] %v5126_v61  ;;  %v452_v22 = vpop.xlane.xlu1 %451  ;;  %4158 = vpow2.f32 %v665_v36  ;;  %v571_v5 = vsub.f32 %v4352_v52, %v449_v25  ;;  %805 = vadd.xlane.f32.xlu1 %v804_v28  ;;  %808 = vadd.xlane.f32.xlu0 %v807_v60  ;;  %v810_v34 = vsel %vm215_vm0, %v5126_v61, 0.0  ;;  %v1661_v25 = vunpack.c.l.bf16 %v5133_v51  ;;  %v4354_v52 = vld [vmem:[%s4590_s3 + $0x120] sm:$0xff]  ;;  %v1106_v61 = vld [vmem:[%s4580_s28 + $0x1c8] sm:$0xff] }
 0x111   : > { %v572_v42 = vsub.f32 %v4353_v48, %v452_v22  ;;  %4160 = vpow2.f32 %v667_v45  ;;  %v1662_v6 = vunpack.c.h.bf16 %v5133_v51  ;;  %v2678_v40 = vadd.f32 %v2677_v41, %v1650_v27 }
 0x112   : > { %v5144_v33 = vpop.eup %4150  ;;  %v669_v36 = vmul.f32 1.442695, %v571_v5  ;;  %v2688_v24 = vadd.f32 %v2687_v30, %v1659_v12  ;;  %v4355_v5 = vld [vmem:[%s4590_s3 + $0x128] sm:$0xff]  ;;  %v4357_v30 = vld [vmem:[%s4590_s3 + $0x138] sm:$0xff] }
 0x113   : > { %8728 = vst [vmem:[#allocation24_spill] sm:$0xff] %v5144_v33  ;;  %v671_v28 = vmul.f32 1.442695, %v572_v42  ;;  %v5148_v45 = vpop.eup %4152  ;;  %v455_v60 = vpop.xlane.xlu0 %454  ;;  %v813_v22 = vsel %vm215_vm0, %v5144_v33, 0.0  ;;  %v5157_v42 = vld [vmem:[%s4580_s28 + $0x1a0] sm:$0xff]  ;;  %v1663_v33 = vunpack.c.l.bf16 %v5142_v56  ;;  %v8732_v56 = vunpack.c.l.bf16 %v5031_v7 }
 0x114   : > { %8729 = vst [vmem:[#allocation25_spill] sm:$0xff] %v5148_v45  ;;  %v458_v57 = vpop.xlane.xlu1 %457  ;;  %4162 = vpow2.f32 %v669_v36  ;;  %v573_v51 = vsub.f32 %v4354_v52, %v455_v60  ;;  %811 = vadd.xlane.f32.xlu1 %v810_v34  ;;  %814 = vadd.xlane.f32.xlu0 %v813_v22  ;;  %v816_v43 = vsel %vm215_vm0, %v5148_v45, 0.0  ;;  %v2689_v27 = vadd.f32 %v2688_v24, %v1660_v14  ;;  %v5181_v52 = vld [vmem:[%s4580_s28 + $0x1b0] sm:$0xff] }
 0x115   : > { %v574_v48 = vsub.f32 %v4355_v5, %v458_v57  ;;  %4164 = vpow2.f32 %v671_v28  ;;  %v1665_v41 = vunpack.c.l.bf16 %v5157_v42  ;;  %v2666_v57 = vadd.f32 %v2665_v3, %v8732_v56  ;;  %v4356_v5 = vld [vmem:[%s4590_s3 + $0x130] sm:$0xff] }
 0x116   : > { %v5168_v47 = vpop.eup %4154  ;;  %v673_v12 = vmul.f32 1.442695, %v573_v51  ;;  %v8733_v14 = vunpack.c.l.bf16 %v5079_v37  ;;  %v2690_v51 = vadd.f32 %v2689_v27, %v1661_v25 }
 0x117   : > { %8730 = vst [vmem:[#allocation26_spill] sm:$0xff] %v5168_v47  ;;  %v675_v34 = vmul.f32 1.442695, %v574_v48  ;;  %v5172_v36 = vpop.eup %4156  ;;  %v461_v28 = vpop.xlane.xlu0 %460  ;;  %v819_v60 = vsel %vm215_vm0, %v5168_v47, 0.0  ;;  %v4359_v47 = vld [vmem:[%s4590_s3 + $0x148] sm:$0xff] }
 0x118   : > { %8731 = vst [vmem:[#allocation27_spill] sm:$0xff] %v5172_v36  ;;  %v464_v22 = vpop.xlane.xlu1 %463  ;;  %v2679_v24 = vadd.f32 %v2678_v40, %v8733_v14  ;;  %4166 = vpow2.f32 %v673_v12  ;;  %v575_v48 = vsub.f32 %v4356_v5, %v461_v28  ;;  %817 = vadd.xlane.f32.xlu1 %v816_v43  ;;  %820 = vadd.xlane.f32.xlu0 %v819_v60  ;;  %v822_v3 = vsel %vm215_vm0, %v5172_v36, 0.0  ;;  %v1105_v14 = vld [vmem:[%s4580_s28 + $0x1c0] sm:$0xff] }
 0x119   : > { %v576_v45 = vsub.f32 %v4357_v30, %v464_v22  ;;  %4168 = vpow2.f32 %v675_v34  ;;  %v2691_v40 = vadd.f32 %v2690_v51, %v1662_v6  ;;  %v8736_v6 = vunpack.c.h.bf16 %v5031_v7  ;;  %v4358_v30 = vld [vmem:[%s4590_s3 + $0x140] sm:$0xff] }
 0x11a   : > { %v5190_v25 = vpop.eup %4158  ;;  %v677_v27 = vmul.f32 1.442695, %v575_v48  ;;  %v8737_v5 = vunpack.c.h.bf16 %v5079_v37  ;;  %v5205_v48 = vld [vmem:[%s4580_s28 + $0x1b8] sm:$0xff]  ;;  %v1674_v37 = vunpack.c.h.bf16 %v1105_v14 }
 0x11b   : > { %8734 = vst [vmem:[#allocation28_spill] sm:$0xff] %v5190_v25  ;;  %v679_v12 = vmul.f32 1.442695, %v576_v45  ;;  %v5194_v34 = vpop.eup %4160  ;;  %v467_v28 = vpop.xlane.xlu0 %466  ;;  %v825_v60 = vsel %vm215_vm0, %v5190_v25, 0.0  ;;  %v5200_v51 = vadd.f32 %v2666_v57, %v8736_v6  ;;  %v2692_v43 = vadd.f32 %v2691_v40, %v1663_v33  ;;  %v4361_v6 = vld [vmem:[%s4590_s3 + $0x158] sm:$0xff] }
 0x11c   : > { %8735 = vst [vmem:[#allocation29_spill] sm:$0xff] %v5194_v34  ;;  %v470_v22 = vpop.xlane.xlu1 %469  ;;  %v2680_v45 = vadd.f32 %v2679_v24, %v8737_v5  ;;  %4170 = vpow2.f32 %v677_v27  ;;  %v577_v56 = vsub.f32 %v4358_v30, %v467_v28  ;;  %823 = vadd.xlane.f32.xlu1 %v822_v3  ;;  %826 = vadd.xlane.f32.xlu0 %v825_v60  ;;  %v1673_v25 = vunpack.c.l.bf16 %v1105_v14  ;;  %v5223_v60 = vld [vmem:[%s4580_s28 + $0x1d0] sm:$0xff] }
 0x11d   : > { %v578_v36 = vsub.f32 %v4359_v47, %v470_v22  ;;  %4172 = vpow2.f32 %v679_v12  ;;  %v828_v7 = vsel %vm215_vm0, %v5194_v34, 0.0  ;;  %v2693_v57 = vadd.f32 %v2692_v43, %v1664_v46 }
 0x11e   : > { %v5212_v24 = vpop.eup %4162  ;;  %v681_v33 = vmul.f32 1.442695, %v577_v56  ;;  %v8740_v46 = vunpack.c.l.bf16 %v5094_v20  ;;  %v4360_v56 = vld [vmem:[%s4590_s3 + $0x150] sm:$0xff]  ;;  %v1676_v27 = vunpack.c.h.bf16 %v1106_v61 }
 0x11f   : > { %8738 = vst [vmem:[#allocation30_spill] sm:$0xff] %v5212_v24  ;;  %v683_v40 = vmul.f32 1.442695, %v578_v36  ;;  %v5216_v47 = vpop.eup %4164  ;;  %v473_v30 = vpop.xlane.xlu0 %472  ;;  %v831_v12 = vsel %vm215_vm0, %v5212_v24, 0.0  ;;  %v2694_v43 = vadd.f32 %v2693_v57, %v1665_v41  ;;  %v1675_v36 = vunpack.c.l.bf16 %v1106_v61  ;;  %v5232_v41 = vld [vmem:[%s4580_s28 + $0x1d8] sm:$0xff] }
 0x120   : > { %8739 = vst [vmem:[#allocation31_spill] sm:$0xff] %v5216_v47  ;;  %v476_v28 = vpop.xlane.xlu1 %475  ;;  %v2681_v14 = vadd.f32 %v2680_v45, %v8740_v46  ;;  %4174 = vpow2.f32 %v681_v33  ;;  %v579_v22 = vsub.f32 %v4360_v56, %v473_v30  ;;  %829 = vadd.xlane.f32.xlu1 %v828_v7  ;;  %832 = vadd.xlane.f32.xlu0 %v831_v12  ;;  %v834_v3 = vsel %vm215_vm0, %v5216_v47, 0.0  ;;  %v5247_v56 = vld [vmem:[%s4580_s28 + $0x1e0] sm:$0xff] }
 0x121   : > { %v580_v5 = vsub.f32 %v4361_v6, %v476_v28  ;;  %4176 = vpow2.f32 %v683_v40  ;;  %v8741_v24 = vunpack.c.h.bf16 %v5157_v42  ;;  %v2704_v57 = vadd.f32 %v1674_v37, %v1673_v25  ;;  %v4362_v6 = vld [vmem:[%s4590_s3 + $0x160] sm:$0xff] }
 0x122   : > { %v5234_v33 = vpop.eup %4166  ;;  %v685_v30 = vmul.f32 1.442695, %v579_v22  ;;  %v1677_v12 = vunpack.c.l.bf16 %v5223_v60  ;;  %v1678_v61 = vunpack.c.h.bf16 %v5223_v60  ;;  %v8744_v46 = vunpack.c.h.bf16 %v5094_v20 }
 0x123   : > { %v2695_v45 = vadd.f32 %v2694_v43, %v8741_v24  ;;  %8742 = vst [vmem:[#allocation32_spill] sm:$0xff] %v5234_v33  ;;  %v687_v7 = vmul.f32 1.442695, %v580_v5  ;;  %v5238_v40 = vpop.eup %4168  ;;  %v479_v28 = vpop.xlane.xlu0 %478  ;;  %v837_v42 = vsel %vm215_vm0, %v5234_v33, 0.0  ;;  %v8745_v37 = vunpack.c.l.bf16 %v5165_v10  ;;  %v4363_v5 = vld [vmem:[%s4590_s3 + $0x168] sm:$0xff] }
 0x124   : > { %8743 = vst [vmem:[#allocation33_spill] sm:$0xff] %v5238_v40  ;;  %v482_v24 = vpop.xlane.xlu1 %481  ;;  %v2682_v25 = vadd.f32 %v2681_v14, %v8744_v46  ;;  %v2705_v22 = vadd.f32 %v2704_v57, %v1675_v36  ;;  %4178 = vpow2.f32 %v685_v30  ;;  %v581_v60 = vsub.f32 %v4362_v6, %v479_v28  ;;  %835 = vadd.xlane.f32.xlu1 %v834_v3  ;;  %v5255_v14 = vld [vmem:[%s4580_s28 + $0x1e8] sm:$0xff] }
 0x125   : > { %v2696_v43 = vadd.f32 %v2695_v45, %v8745_v37  ;;  %838 = vadd.xlane.f32.xlu0 %v837_v42  ;;  %v582_v47 = vsub.f32 %v4363_v5, %v482_v24  ;;  %v1679_v33 = vunpack.c.l.bf16 %v5232_v41  ;;  %4180 = vpow2.f32 %v687_v7  ;;  %v4364_v5 = vld [vmem:[%s4590_s3 + $0x170] sm:$0xff] }
 0x126   : > { %v840_v20 = vsel %vm215_vm0, %v5238_v40, 0.0  ;;  %v1680_v45 = vunpack.c.h.bf16 %v5232_v41  ;;  %v2706_v36 = vadd.f32 %v2705_v22, %v1676_v27  ;;  %v5258_v57 = vpop.eup %4170  ;;  %v689_v30 = vmul.f32 1.442695, %v581_v60  ;;  %v4365_v40 = vld [vmem:[%s4590_s3 + $0x178] sm:$0xff] }
 0x127   : > { %8746 = vst [vmem:[#allocation34_spill] sm:$0xff] %v5258_v57  ;;  %v691_v3 = vmul.f32 1.442695, %v582_v47  ;;  %v1681_v28 = vunpack.c.l.bf16 %v5247_v56  ;;  %v5262_v7 = vpop.eup %4172  ;;  %v485_v24 = vpop.xlane.xlu0 %484  ;;  %v843_v46 = vsel %vm215_vm0, %v5258_v57, 0.0  ;;  %v8748_v41 = vunpack.c.l.bf16 %v5114_v4  ;;  %v5271_v47 = vld [vmem:[%s4580_s28 + $0x1f0] sm:$0xff] }
 0x128   : > { %8747 = vst [vmem:[#allocation35_spill] sm:$0xff] %v5262_v7  ;;  %v488_v37 = vpop.xlane.xlu1 %487  ;;  %v8749_v27 = vunpack.c.h.bf16 %v5165_v10  ;;  %v2707_v60 = vadd.f32 %v2706_v36, %v1677_v12  ;;  %4182 = vpow2.f32 %v689_v30  ;;  %v583_v42 = vsub.f32 %v4364_v5, %v485_v24  ;;  %841 = vadd.xlane.f32.xlu1 %v840_v20  ;;  %v4367_v10 = vld [vmem:[%s4590_s3 + $0x188] sm:$0xff] }
 0x129   : > { %v2683_v6 = vadd.f32 %v2682_v25, %v8748_v41  ;;  %844 = vadd.xlane.f32.xlu0 %v843_v46  ;;  %v584_v34 = vsub.f32 %v4365_v40, %v488_v37  ;;  %4184 = vpow2.f32 %v691_v3  ;;  %v846_v25 = vsel %vm215_vm0, %v5262_v7, 0.0  ;;  %v1113_v41 = vld [vmem:[%s4580_s28 + $0x200] sm:$0xff] }
 0x12a   : > { %v2697_v22 = vadd.f32 %v2696_v43, %v8749_v27  ;;  %v2708_v43 = vadd.f32 %v2707_v60, %v1678_v61  ;;  %v5280_v12 = vpop.eup %4174  ;;  %v693_v36 = vmul.f32 1.442695, %v583_v42  ;;  %v8752_v61 = vunpack.c.h.bf16 %v5114_v4  ;;  %v5295_v60 = vld [vmem:[%s4580_s28 + $0x1f8] sm:$0xff]  ;;  %v4366_v40 = vld [vmem:[%s4590_s3 + $0x180] sm:$0xff] }
 0x12b   : > { %8750 = vst [vmem:[#allocation36_spill] sm:$0xff] %v5280_v12  ;;  %v695_v30 = vmul.f32 1.442695, %v584_v34  ;;  %v5284_v3 = vpop.eup %4176  ;;  %v491_v24 = vpop.xlane.xlu0 %490  ;;  %v849_v46 = vsel %vm215_vm0, %v5280_v12, 0.0  ;;  %v8753_v42 = vunpack.c.l.bf16 %v5181_v52  ;;  %v1114_v12 = vld [vmem:[%s4580_s28 + $0x208] sm:$0xff]  ;;  %v1689_v7 = vunpack.c.l.bf16 %v1113_v41 }
 0x12c   : > { %8751 = vst [vmem:[#allocation37_spill] sm:$0xff] %v5284_v3  ;;  %v494_v37 = vpop.xlane.xlu1 %493  ;;  %v5290_v27 = vadd.f32 %v2683_v6, %v8752_v61  ;;  %v2709_v5 = vadd.f32 %v2708_v43, %v1679_v33  ;;  %4186 = vpow2.f32 %v693_v36  ;;  %v585_v20 = vsub.f32 %v4366_v40, %v491_v24  ;;  %847 = vadd.xlane.f32.xlu1 %v846_v25  ;;  %v4369_v25 = vld [vmem:[%s4590_s3 + $0x198] sm:$0xff] }
 0x12d   : > { %v2698_v34 = vadd.f32 %v2697_v22, %v8753_v42  ;;  %850 = vadd.xlane.f32.xlu0 %v849_v46  ;;  %v586_v57 = vsub.f32 %v4367_v10, %v494_v37  ;;  %4188 = vpow2.f32 %v695_v30  ;;  %v852_v4 = vsel %vm215_vm0, %v5284_v3, 0.0  ;;  %v5307_v10 = vld [vmem:[%s4580_s28 + $0x210] sm:$0xff] }
 0x12e   : > { %v2710_v6 = vadd.f32 %v2709_v5, %v1680_v45  ;;  %v1690_v22 = vunpack.c.h.bf16 %v1113_v41  ;;  %v5302_v61 = vpop.eup %4178  ;;  %v697_v33 = vmul.f32 1.442695, %v585_v20  ;;  %v8756_v41 = vunpack.c.h.bf16 %v5181_v52  ;;  %v5316_v20 = vld [vmem:[%s4580_s28 + $0x218] sm:$0xff]  ;;  %v4368_v42 = vld [vmem:[%s4590_s3 + $0x190] sm:$0xff] }
 0x12f   : > { %8754 = vst [vmem:[#allocation38_spill] sm:$0xff] %v5302_v61  ;;  %v699_v43 = vmul.f32 1.442695, %v586_v57  ;;  %v5309_v40 = vpop.eup %4180  ;;  %v497_v30 = vpop.xlane.xlu0 %496  ;;  %v855_v24 = vsel %vm215_vm0, %v5302_v61, 0.0  ;;  %v1691_v57 = vunpack.c.l.bf16 %v1114_v12  ;;  %v1692_v3 = vunpack.c.h.bf16 %v1114_v12 }
 0x130   : > { %8755 = vst [vmem:[#allocation39_spill] sm:$0xff] %v5309_v40  ;;  %v500_v45 = vpop.xlane.xlu1 %499  ;;  %v2699_v46 = vadd.f32 %v2698_v34, %v8756_v41  ;;  %v2711_v37 = vadd.f32 %v2710_v6, %v1681_v28  ;;  %4190 = vpow2.f32 %v697_v33  ;;  %v587_v5 = vsub.f32 %v4368_v42, %v497_v30  ;;  %853 = vadd.xlane.f32.xlu1 %v852_v4  ;;  %v5326_v41 = vld [vmem:[%s4580_s28 + $0x220] sm:$0xff]  ;;  %v5339_v42 = vld [vmem:[%s4580_s28 + $0x228] sm:$0xff] }
 0x131   : > { %856 = vadd.xlane.f32.xlu0 %v855_v24  ;;  %v588_v36 = vsub.f32 %v4369_v25, %v500_v45  ;;  %4192 = vpow2.f32 %v699_v43  ;;  %v858_v61 = vsel %vm215_vm0, %v5309_v40, 0.0  ;;  %v1693_v52 = vunpack.c.l.bf16 %v5307_v10 }
 0x132   : > { %v2721_v28 = vadd.f32 %v1690_v22, %v1689_v7  ;;  %v5323_v34 = vpop.eup %4182  ;;  %v701_v6 = vmul.f32 1.442695, %v587_v5  ;;  %v1694_v4 = vunpack.c.h.bf16 %v5307_v10  ;;  %v1695_v12 = vunpack.c.l.bf16 %v5316_v20  ;;  %v4370_v10 = vld [vmem:[%s4590_s3 + $0x1a0] sm:$0xff] }
 0x133   : > { %8757 = vst [vmem:[#allocation40_spill] sm:$0xff] %v5323_v34  ;;  %v703_v33 = vmul.f32 1.442695, %v588_v36  ;;  %v5330_v43 = vpop.eup %4184  ;;  %v503_v25 = vpop.xlane.xlu0 %502  ;;  %v861_v30 = vsel %vm215_vm0, %v5323_v34, 0.0  ;;  %v8759_v7 = vunpack.c.l.bf16 %v5205_v48  ;;  %v8760_v45 = vunpack.c.h.bf16 %v5247_v56 }
 0x134   : > { %8758 = vst [vmem:[#allocation41_spill] sm:$0xff] %v5330_v43  ;;  %v506_v24 = vpop.xlane.xlu1 %505  ;;  %v2722_v5 = vadd.f32 %v2721_v28, %v1691_v57  ;;  %4194 = vpow2.f32 %v701_v6  ;;  %v589_v40 = vsub.f32 %v4370_v10, %v503_v25  ;;  %859 = vadd.xlane.f32.xlu1 %v858_v61  ;;  %v1696_v34 = vunpack.c.h.bf16 %v5316_v20  ;;  %v5350_v25 = vld [vmem:[%s4580_s28 + $0x230] sm:$0xff] }
 0x135   : > { %v2700_v22 = vadd.f32 %v2699_v46, %v8759_v7  ;;  %v2712_v36 = vadd.f32 %v2711_v37, %v8760_v45  ;;  %862 = vadd.xlane.f32.xlu0 %v861_v30  ;;  %v590_v44 = vsub.f32 %v4371_v8, %v506_v24  ;;  %4196 = vpow2.f32 %v703_v33  ;;  %v4372_v10 = vld [vmem:[%s4590_s3 + $0x1b0] sm:$0xff]  ;;  %v4373_v8 = vld [vmem:[%s4590_s3 + $0x1b8] sm:$0xff] }
 0x136   : > { %v864_v46 = vsel %vm215_vm0, %v5330_v43, 0.0  ;;  %v2723_v37 = vadd.f32 %v2722_v5, %v1692_v3  ;;  %v5347_v57 = vpop.eup %4186  ;;  %v705_v28 = vmul.f32 1.442695, %v589_v40  ;;  %v8763_v24 = vunpack.c.h.bf16 %v5205_v48  ;;  %v1121_v5 = vld [vmem:[%s4580_s28 + $0x240] sm:$0xff] }
 0x137   : > { %8761 = vst [vmem:[#allocation42_spill] sm:$0xff] %v5347_v57  ;;  %v707_v6 = vmul.f32 1.442695, %v590_v44  ;;  %v5354_v20 = vpop.eup %4188  ;;  %v509_v33 = vpop.xlane.xlu0 %508  ;;  %v867_v30 = vsel %vm215_vm0, %v5347_v57, 0.0  ;;  %v8764_v44 = vunpack.c.l.bf16 %v5255_v14 }
 0x138   : > { %8762 = vst [vmem:[#allocation43_spill] sm:$0xff] %v5354_v20  ;;  %v512_v3 = vpop.xlane.xlu1 %511  ;;  %v5360_v7 = vadd.f32 %v2700_v22, %v8763_v24  ;;  %v2724_v45 = vadd.f32 %v2723_v37, %v1693_v52  ;;  %4198 = vpow2.f32 %v705_v28  ;;  %v591_v61 = vsub.f32 %v4372_v10, %v509_v33  ;;  %865 = vadd.xlane.f32.xlu1 %v864_v46  ;;  %v5371_v22 = vld [vmem:[%s4580_s28 + $0x238] sm:$0xff]  ;;  %v4375_v46 = vld [vmem:[%s4590_s3 + $0x1c8] sm:$0xff] }
 0x139   : > { %v2713_v40 = vadd.f32 %v2712_v36, %v8764_v44  ;;  %868 = vadd.xlane.f32.xlu0 %v867_v30  ;;  %v592_v56 = vsub.f32 %v4373_v8, %v512_v3  ;;  %4200 = vpow2.f32 %v707_v6  ;;  %v870_v48 = vsel %vm215_vm0, %v5354_v20, 0.0  ;;  %v1122_v8 = vld [vmem:[%s4580_s28 + $0x248] sm:$0xff] }
 0x13a   : > { %v2725_v52 = vadd.f32 %v2724_v45, %v1694_v4  ;;  %v5374_v37 = vpop.eup %4190  ;;  %v709_v28 = vmul.f32 1.442695, %v591_v61  ;;  %v1705_v30 = vunpack.c.l.bf16 %v1121_v5  ;;  %v8767_v10 = vunpack.c.h.bf16 %v5255_v14 }
 0x13b   : > { %8765 = vst [vmem:[#allocation44_spill] sm:$0xff] %v5374_v37  ;;  %v711_v33 = vmul.f32 1.442695, %v592_v56  ;;  %v5378_v3 = vpop.eup %4192  ;;  %v515_v6 = vpop.xlane.xlu0 %514  ;;  %v873_v24 = vsel %vm215_vm0, %v5374_v37, 0.0  ;;  %v1706_v36 = vunpack.c.h.bf16 %v1121_v5  ;;  %v4374_v56 = vld [vmem:[%s4590_s3 + $0x1c0] sm:$0xff]  ;;  %v1707_v14 = vunpack.c.l.bf16 %v1122_v8 }
 0x13c   : > { %8766 = vst [vmem:[#allocation45_spill] sm:$0xff] %v5378_v3  ;;  %v518_v44 = vpop.xlane.xlu1 %517  ;;  %v2714_v4 = vadd.f32 %v2713_v40, %v8767_v10  ;;  %v2726_v45 = vadd.f32 %v2725_v52, %v1695_v12  ;;  %4202 = vpow2.f32 %v709_v28  ;;  %v593_v61 = vsub.f32 %v4374_v56, %v515_v6  ;;  %871 = vadd.xlane.f32.xlu1 %v870_v48  ;;  %v4376_v56 = vld [vmem:[%s4590_s3 + $0x1d0] sm:$0xff] }
 0x13d   : > { %874 = vadd.xlane.f32.xlu0 %v873_v24  ;;  %v594_v57 = vsub.f32 %v4375_v46, %v518_v44  ;;  %4204 = vpow2.f32 %v711_v33  ;;  %v876_v37 = vsel %vm215_vm0, %v5378_v3, 0.0  ;;  %v1708_v52 = vunpack.c.h.bf16 %v1122_v8  ;;  %v4377_v8 = vld [vmem:[%s4590_s3 + $0x1d8] sm:$0xff] }
 0x13e   : > { %v2727_v43 = vadd.f32 %v2726_v45, %v1696_v34  ;;  %v5392_v12 = vpop.eup %4194  ;;  %v713_v40 = vmul.f32 1.442695, %v593_v61  ;;  %v8770_v34 = vunpack.c.l.bf16 %v5271_v47  ;;  %v8771_v44 = vunpack.c.l.bf16 %v5326_v41  ;;  %v5404_v45 = vld [vmem:[%s4580_s28 + $0x258] sm:$0xff] }
 0x13f   : > { %8768 = vst [vmem:[#allocation46_spill] sm:$0xff] %v5392_v12  ;;  %v715_v5 = vmul.f32 1.442695, %v594_v57  ;;  %v5395_v28 = vpop.eup %4196  ;;  %v521_v33 = vpop.xlane.xlu0 %520  ;;  %v879_v46 = vsel %vm215_vm0, %v5392_v12, 0.0  ;;  %v2738_v57 = vadd.f32 %v1706_v36, %v1705_v30  ;;  %v1709_v20 = vunpack.c.l.bf16 %v5390_v32  ;;  %v5431_v12 = vld [vmem:[%s4580_s28 + $0x268] sm:$0xff]  ;;  %v5535_v3 = vld [vmem:[%s4580_s28 + $0x2d8] sm:$0xff] }
 0x140   : > { %8769 = vst [vmem:[#allocation47_spill] sm:$0xff] %v5395_v28  ;;  %v524_v6 = vpop.xlane.xlu1 %523  ;;  %v2715_v24 = vadd.f32 %v2714_v4, %v8770_v34  ;;  %v2728_v10 = vadd.f32 %v2727_v43, %v8771_v44  ;;  %4206 = vpow2.f32 %v713_v40  ;;  %v595_v61 = vsub.f32 %v4376_v56, %v521_v33  ;;  %877 = vadd.xlane.f32.xlu1 %v876_v37 }
 0x141   : > { %880 = vadd.xlane.f32.xlu0 %v879_v46  ;;  %v596_v48 = vsub.f32 %v4377_v8, %v524_v6  ;;  %4208 = vpow2.f32 %v715_v5  ;;  %v882_v4 = vsel %vm215_vm0, %v5395_v28, 0.0  ;;  %v8772_v34 = vunpack.c.h.bf16 %v5326_v41 }
 0x142   : > { %v2739_v44 = vadd.f32 %v2738_v57, %v1707_v14  ;;  %v5413_v36 = vpop.eup %4198  ;;  %v717_v30 = vmul.f32 1.442695, %v595_v61  ;;  %v1710_v37 = vunpack.c.h.bf16 %v5390_v32  ;;  %v1711_v33 = vunpack.c.l.bf16 %v5404_v45  ;;  %v4378_v32 = vld [vmem:[%s4590_s3 + $0x1e0] sm:$0xff] }
 0x143   : > { %v2729_v43 = vadd.f32 %v2728_v10, %v8772_v34  ;;  %8773 = vst [vmem:[#allocation48_spill] sm:$0xff] %v5413_v36  ;;  %v719_v40 = vmul.f32 1.442695, %v596_v48  ;;  %v5417_v46 = vpop.eup %4200  ;;  %v527_v5 = vpop.xlane.xlu0 %526  ;;  %v885_v6 = vsel %vm215_vm0, %v5413_v36, 0.0  ;;  %v8775_v10 = vunpack.c.h.bf16 %v5271_v47  ;;  %v5426_v48 = vld [vmem:[%s4580_s28 + $0x260] sm:$0xff]  ;;  %v4379_v34 = vld [vmem:[%s4590_s3 + $0x1e8] sm:$0xff] }
 0x144   : > { %8774 = vst [vmem:[#allocation49_spill] sm:$0xff] %v5417_v46  ;;  %v530_v41 = vpop.xlane.xlu1 %529  ;;  %v8776_v57 = vunpack.c.l.bf16 %v5339_v42  ;;  %v2740_v61 = vadd.f32 %v2739_v44, %v1708_v52  ;;  %4210 = vpow2.f32 %v717_v30  ;;  %v597_v8 = vsub.f32 %v4378_v32, %v527_v5  ;;  %883 = vadd.xlane.f32.xlu1 %v882_v4  ;;  %v4381_v32 = vld [vmem:[%s4590_s3 + $0x1f8] sm:$0xff] }
 0x145   : > { %v2716_v14 = vadd.f32 %v2715_v24, %v8775_v10  ;;  %886 = vadd.xlane.f32.xlu0 %v885_v6  ;;  %v598_v28 = vsub.f32 %v4379_v34, %v530_v41  ;;  %v1712_v36 = vunpack.c.h.bf16 %v5404_v45  ;;  %4212 = vpow2.f32 %v719_v40 }
 0x146   : > { %v2730_v56 = vadd.f32 %v2729_v43, %v8776_v57  ;;  %v888_v47 = vsel %vm215_vm0, %v5417_v46, 0.0  ;;  %v8777_v24 = vunpack.c.h.bf16 %v5339_v42  ;;  %v2741_v52 = vadd.f32 %v2740_v61, %v1709_v20  ;;  %v5438_v44 = vpop.eup %4202  ;;  %v4380_v61 = vld [vmem:[%s4590_s3 + $0x1f0] sm:$0xff] }
 0x147   : > { %8778 = vst [vmem:[#allocation50_spill] sm:$0xff] %v5438_v44  ;;  %v721_v4 = vmul.f32 1.442695, %v597_v8  ;;  %v723_v30 = vmul.f32 1.442695, %v598_v28  ;;  %v1713_v5 = vunpack.c.l.bf16 %v5426_v48  ;;  %v1714_v6 = vunpack.c.h.bf16 %v5426_v48  ;;  %v5442_v45 = vpop.eup %4204  ;;  %v533_v40 = vpop.xlane.xlu0 %532 }
 0x148   : > { %v2731_v43 = vadd.f32 %v2730_v56, %v8777_v24  ;;  %8779 = vst [vmem:[#allocation51_spill] sm:$0xff] %v5442_v45  ;;  %v891_v41 = vsel %vm215_vm0, %v5438_v44, 0.0  ;;  %v536_v42 = vpop.xlane.xlu1 %535  ;;  %v8780_v10 = vunpack.c.l.bf16 %v5295_v60  ;;  %v1715_v57 = vunpack.c.l.bf16 %v5431_v12  ;;  %v1129_v56 = vld [vmem:[%s4580_s28 + $0x280] sm:$0xff]  ;;  %889 = vadd.xlane.f32.xlu1 %v888_v47  ;;  %v5455_v44 = vld [vmem:[%s4580_s28 + $0x270] sm:$0xff] }
 0x149   : > { %v2742_v28 = vadd.f32 %v2741_v52, %v1710_v37  ;;  %4214 = vpow2.f32 %v721_v4  ;;  %v599_v48 = vsub.f32 %v4380_v61, %v533_v40  ;;  %892 = vadd.xlane.f32.xlu0 %v891_v41  ;;  %v600_v8 = vsub.f32 %v4381_v32, %v536_v42  ;;  %v1130_v4 = vld [vmem:[%s4580_s28 + $0x288] sm:$0xff]  ;;  %v5464_v41 = vld [vmem:[%s4580_s28 + $0x278] sm:$0xff] }
 0x14a   : > { %v2717_v20 = vadd.f32 %v2716_v14, %v8780_v10  ;;  %v8781_v34 = vunpack.c.l.bf16 %v5350_v25  ;;  %4216 = vpow2.f32 %v723_v30  ;;  %v894_v14 = vsel %vm215_vm0, %v5442_v45, 0.0  ;;  %v5461_v10 = vpop.eup %4206 }
 0x14b   : > { %v1716_v37 = vunpack.c.h.bf16 %v5431_v12  ;;  %v2743_v52 = vadd.f32 %v2742_v28, %v1711_v33  ;;  %8782 = vst [vmem:[#allocation52_spill] sm:$0xff] %v5461_v10  ;;  %v725_v47 = vmul.f32 1.442695, %v599_v48  ;;  %v727_v40 = vmul.f32 1.442695, %v600_v8  ;;  %v5466_v61 = vpop.eup %4208  ;;  %v5476_v48 = vld [vmem:[%s4580_s28 + $0x290] sm:$0xff] }
 0x14c   : > { %v2732_v24 = vadd.f32 %v2731_v43, %v8781_v34  ;;  %v1721_v42 = vunpack.c.l.bf16 %v1129_v56  ;;  %v1722_v43 = vunpack.c.h.bf16 %v1129_v56  ;;  %8783 = vst [vmem:[#allocation53_spill] sm:$0xff] %v5466_v61  ;;  %v897_v30 = vsel %vm215_vm0, %v5461_v10, 0.0  ;;  %895 = vadd.xlane.f32.xlu1 %v894_v14  ;;  %v5482_v10 = vld [vmem:[%s4580_s28 + $0x298] sm:$0xff] }
 0x14d   : > { %v8784_v32 = vunpack.c.h.bf16 %v5295_v60  ;;  %v2744_v28 = vadd.f32 %v2743_v52, %v1712_v36  ;;  %4218 = vpow2.f32 %v725_v47  ;;  %898 = vadd.xlane.f32.xlu0 %v897_v30  ;;  %v8785_v56 = vunpack.c.h.bf16 %v5350_v25  ;;  %v5488_v47 = vld [vmem:[%s4580_s28 + $0x2a0] sm:$0xff] }
 0x14e   : > { %v1723_v60 = vunpack.c.l.bf16 %v1130_v4  ;;  %4220 = vpow2.f32 %v727_v40  ;;  %v5490_v14 = vpop.eup %4210  ;;  %v1725_v30 = vunpack.c.l.bf16 %v5476_v48  ;;  %v1726_v34 = vunpack.c.h.bf16 %v5476_v48 }
 0x14f   : > { %v5472_v12 = vadd.f32 %v2717_v20, %v8784_v32  ;;  %v2733_v8 = vadd.f32 %v2732_v24, %v8785_v56  ;;  %v900_v20 = vsel %vm215_vm0, %v5466_v61, 0.0  ;;  %v2745_v52 = vadd.f32 %v2744_v28, %v1713_v5  ;;  %8786 = vst [vmem:[#allocation54_spill] sm:$0xff] %v5490_v14  ;;  %v1137_v56 = vld [vmem:[%s4580_s28 + $0x2c0] sm:$0xff]  ;;  %v5495_v40 = vpop.eup %4212  ;;  %v5500_v28 = vld [vmem:[%s4580_s28 + $0x2a8] sm:$0xff]  ;;  %v1139_v61 = vld [vmem:[%s4580_s28 + $0x2d0] sm:$0xff] }
 0x150   : > { %v1724_v24 = vunpack.c.h.bf16 %v1130_v4  ;;  %v2755_v32 = vadd.f32 %v1722_v43, %v1721_v42  ;;  %8787 = vst [vmem:[#allocation55_spill] sm:$0xff] %v5495_v40  ;;  %v903_v36 = vsel %vm215_vm0, %v5490_v14, 0.0  ;;  %v1727_v33 = vunpack.c.l.bf16 %v5482_v10  ;;  %901 = vadd.xlane.f32.xlu1 %v900_v20  ;;  %v5507_v42 = vld [vmem:[%s4580_s28 + $0x2b0] sm:$0xff]  ;;  %v5515_v14 = vld [vmem:[%s4580_s28 + $0x2b8] sm:$0xff] }
 0x151   : > { %v2746_v5 = vadd.f32 %v2745_v52, %v1714_v6  ;;  %904 = vadd.xlane.f32.xlu0 %v903_v36  ;;  %v8788_v4 = vunpack.c.l.bf16 %v5371_v22  ;;  %v1728_v43 = vunpack.c.h.bf16 %v5482_v10  ;;  %v1138_v6 = vld [vmem:[%s4580_s28 + $0x2c8] sm:$0xff]  ;;  %v906_v52 = vsel %vm215_vm0, %v5495_v40, 0.0 }
 0x152   : > { %v2756_v45 = vadd.f32 %v2755_v32, %v1723_v60  ;;  %v1737_v20 = vunpack.c.l.bf16 %v1137_v56  ;;  %v1738_v36 = vunpack.c.h.bf16 %v1137_v56  ;;  %v1739_v40 = vunpack.c.l.bf16 %v1138_v6 }
 0x153   : > { %v2734_v25 = vadd.f32 %v2733_v8, %v8788_v4  ;;  %v2747_v48 = vadd.f32 %v2746_v5, %v1715_v57  ;;  %v5517_v46 = vpop.eup %4214  ;;  %v8791_v10 = vunpack.c.h.bf16 %v5371_v22  ;;  %v1145_v22 = vld [vmem:[%s4580_s28 + $0x300] sm:$0xff] }
 0x154   : > { %8789 = vst [vmem:[#allocation56_spill] sm:$0xff] %v5517_v46  ;;  %v2757_v60 = vadd.f32 %v2756_v45, %v1724_v24  ;;  %v5522_v32 = vpop.eup %4216  ;;  %v909_v57 = vsel %vm215_vm0, %v5517_v46, 0.0  ;;  %907 = vadd.xlane.f32.xlu1 %v906_v52  ;;  %v5541_v52 = vld [vmem:[%s4580_s28 + $0x2e0] sm:$0xff]  ;;  %v2772_v56 = vadd.f32 %v1738_v36, %v1737_v20  ;;  %v5549_v24 = vld [vmem:[%s4580_s28 + $0x2e8] sm:$0xff]  ;;  %v1741_v45 = vunpack.c.l.bf16 %v1139_v61 }
 0x155   : > { %8790 = vst [vmem:[#allocation57_spill] sm:$0xff] %v5522_v32  ;;  %v2748_v5 = vadd.f32 %v2747_v48, %v1716_v37  ;;  %910 = vadd.xlane.f32.xlu0 %v909_v57  ;;  %v5530_v8 = vadd.f32 %v2734_v25, %v8791_v10  ;;  %v912_v37 = vsel %vm215_vm0, %v5522_v32, 0.0  ;;  %v1740_v57 = vunpack.c.h.bf16 %v1138_v6 }
 0x156   : > { %v2758_v4 = vadd.f32 %v2757_v60, %v1725_v30  ;;  %v8793_v10 = vunpack.c.l.bf16 %v5455_v44  ;;  %v1742_v32 = vunpack.c.h.bf16 %v1139_v61  ;;  %v1743_v6 = vunpack.c.l.bf16 %v5535_v3 }
 0x157   : > { %v5544_v25 = vpop.eup %4218  ;;  %v1744_v20 = vunpack.c.h.bf16 %v5535_v3  ;;  %v2773_v36 = vadd.f32 %v2772_v56, %v1739_v40  ;;  %v1745_v61 = vunpack.c.l.bf16 %v5541_v52  ;;  %v1754_v58 = vunpack.c.h.bf16 %v1145_v22  ;;  %v5588_v3 = vld [vmem:[%s4580_s28 + $0x328] sm:$0xff] }
 0x158   : > { %8792 = vst [vmem:[#allocation58_spill] sm:$0xff] %v5544_v25  ;;  %v2749_v30 = vadd.f32 %v2748_v5, %v8793_v10  ;;  %v2759_v60 = vadd.f32 %v2758_v4, %v1726_v34  ;;  %v5551_v46 = vpop.eup %4220  ;;  %v915_v48 = vsel %vm215_vm0, %v5544_v25, 0.0  ;;  %913 = vadd.xlane.f32.xlu1 %v912_v37  ;;  %v5559_v4 = vld [vmem:[%s4580_s28 + $0x2f0] sm:$0xff]  ;;  %v5562_v5 = vld [vmem:[%s4580_s28 + $0x2f8] sm:$0xff]  ;;  %v1753_v10 = vunpack.c.l.bf16 %v1145_v22 }
 0x159   : > { %8794 = vst [vmem:[#allocation59_spill] sm:$0xff] %v5551_v46  ;;  %916 = vadd.xlane.f32.xlu0 %v915_v48  ;;  %v918_v25 = vsel %vm215_vm0, %v5551_v46, 0.0  ;;  %v2774_v56 = vadd.f32 %v2773_v36, %v1740_v57  ;;  %v8795_v37 = vunpack.c.h.bf16 %v5455_v44  ;;  %v1755_v22 = vunpack.c.l.bf16 %v1146_v35  ;;  %v5596_v57 = vld [vmem:[%s4580_s28 + $0x330] sm:$0xff] }
 0x15a   : > { %v2760_v34 = vadd.f32 %v2759_v60, %v1727_v33  ;;  %v8796_v44 = vunpack.c.l.bf16 %v5488_v47  ;;  %v1756_v36 = vunpack.c.h.bf16 %v1146_v35  ;;  %v1757_v40 = vunpack.c.l.bf16 %v1147_v53 }
 0x15b   : > { %v2750_v33 = vadd.f32 %v2749_v30, %v8795_v37  ;;  %v2775_v49 = vadd.f32 %v2774_v56, %v1741_v45  ;;  %v5584_v30 = vld [vmem:[%s4580_s28 + $0x320] sm:$0xff]  ;;  %v1758_v45 = vunpack.c.h.bf16 %v1147_v53  ;;  %v1760_v35 = vunpack.c.h.bf16 %v5574_v9 }
 0x15c   : > { %v2761_v48 = vadd.f32 %v2760_v34, %v1728_v43  ;;  %919 = vadd.xlane.f32.xlu1 %v918_v25  ;;  %v2789_v34 = vadd.f32 %v1754_v58, %v1753_v10  ;;  %v1153_v37 = vld [vmem:[%s4580_s28 + $0x340] sm:$0xff]  ;;  %v1759_v25 = vunpack.c.l.bf16 %v5574_v9  ;;  %v1761_v10 = vunpack.c.l.bf16 %v5584_v30 }
 0x15d   : > { %2600 = vadd.xlane.f32.xlu0 %v4908_v2  ;;  %v2776_v46 = vadd.f32 %v2775_v49, %v1742_v32  ;;  %v8797_v2 = vunpack.c.l.bf16 %v5464_v41  ;;  %v1154_v49 = vld [vmem:[%s4580_s28 + $0x348] sm:$0xff]  ;;  %v1769_v60 = vunpack.c.l.bf16 %v1153_v37  ;;  %v1770_v53 = vunpack.c.h.bf16 %v1153_v37 }
 0x15e   : > { %v2762_v43 = vadd.f32 %v2761_v48, %v8796_v44  ;;  %v8798_v48 = vunpack.c.h.bf16 %v5488_v47  ;;  %v2790_v58 = vadd.f32 %v2789_v34, %v1755_v22  ;;  %v8799_v47 = vunpack.c.l.bf16 %v5500_v28 }
 0x15f   : > { %v2751_v56 = vadd.f32 %v2750_v33, %v8797_v2  ;;  %v2777_v32 = vadd.f32 %v2776_v46, %v1743_v6  ;;  %v1771_v2 = vunpack.c.l.bf16 %v1154_v49  ;;  %v1766_v9 = vunpack.c.h.bf16 %v5596_v57 }
 0x160   : > { %v2763_v44 = vadd.f32 %v2762_v43, %v8798_v48  ;;  %2617 = vadd.xlane.f32.xlu1 %v4938_v23  ;;  %v5606_v43 = vld [vmem:[%s4580_s28 + $0x338] sm:$0xff]  ;;  %v2791_v46 = vadd.f32 %v2790_v58, %v1756_v36  ;;  %v1155_v23 = vld [vmem:[%s4580_s28 + $0x350] sm:$0xff]  ;;  %v1772_v37 = vunpack.c.h.bf16 %v1154_v49  ;;  %v2806_v34 = vadd.f32 %v1770_v53, %v1769_v60  ;;  %v5636_v49 = vld [vmem:[%s4580_s28 + $0x368] sm:$0xff] }
 0x161   : > { %2634 = vadd.xlane.f32.xlu0 %v5002_v50  ;;  %v2778_v6 = vadd.f32 %v2777_v32, %v1744_v20  ;;  %v8800_v50 = vunpack.c.h.bf16 %v5464_v41  ;;  %v5621_v36 = vld [vmem:[%s4580_s28 + $0x358] sm:$0xff]  ;;  %v5625_v32 = vld [vmem:[%s4580_s28 + $0x360] sm:$0xff]  ;;  %v8802_v41 = vunpack.c.l.bf16 %v5507_v42  ;;  %v1774_v60 = vunpack.c.h.bf16 %v1155_v23 }
 0x162   : > { %v2764_v33 = vadd.f32 %v2763_v44, %v8799_v47  ;;  %v8801_v44 = vunpack.c.h.bf16 %v5500_v28  ;;  %v2792_v22 = vadd.f32 %v2791_v46, %v1757_v40  ;;  %v8803_v46 = vunpack.c.h.bf16 %v5541_v52  ;;  %v5647_v52 = vld [vmem:[%s4580_s28 + $0x370] sm:$0xff] }
 0x163   : > { %v5615_v48 = vadd.f32 %v2751_v56, %v8800_v50  ;;  %v2779_v20 = vadd.f32 %v2778_v6, %v1745_v61  ;;  %v1773_v61 = vunpack.c.l.bf16 %v1155_v23  ;;  %v2807_v53 = vadd.f32 %v2806_v34, %v1771_v2 }
 0x164   : > { %v2765_v47 = vadd.f32 %v2764_v33, %v8801_v44  ;;  %2651 = vadd.xlane.f32.xlu1 %v5089_v63  ;;  %v2793_v56 = vadd.f32 %v2792_v22, %v1758_v45  ;;  %v1161_v33 = vld [vmem:[%s4580_s28 + $0x380] sm:$0xff]  ;;  %v1775_v63 = vunpack.c.l.bf16 %v5621_v36  ;;  %v1162_v45 = vld [vmem:[%s4580_s28 + $0x388] sm:$0xff]  ;;  %v8805_v22 = vunpack.c.l.bf16 %v5549_v24 }
 0x165   : > { %2668 = vadd.xlane.f32.xlu0 %v5200_v51  ;;  %v2780_v6 = vadd.f32 %v2779_v20, %v8803_v46  ;;  %v8804_v51 = vunpack.c.h.bf16 %v5507_v42  ;;  %v5650_v20 = vld [vmem:[%s4580_s28 + $0x378] sm:$0xff]  ;;  %v2808_v23 = vadd.f32 %v2807_v53, %v1772_v37  ;;  %v1785_v46 = vunpack.c.l.bf16 %v1161_v33 }
 0x166   : > { %v2766_v28 = vadd.f32 %v2765_v47, %v8802_v41  ;;  %v2794_v44 = vadd.f32 %v2793_v56, %v1759_v25  ;;  %v1776_v47 = vunpack.c.h.bf16 %v5621_v36  ;;  %v1777_v41 = vunpack.c.l.bf16 %v5625_v32 }
 0x167   : > { %v2781_v40 = vadd.f32 %v2780_v6, %v8805_v22  ;;  %v1786_v34 = vunpack.c.h.bf16 %v1161_v33  ;;  %v8806_v42 = vunpack.c.l.bf16 %v5515_v14  ;;  %v1778_v36 = vunpack.c.h.bf16 %v5625_v32  ;;  %v5717_v32 = vld [vmem:[%s4580_s28 + $0x3d8] sm:$0xff] }
 0x168   : > { %v2767_v50 = vadd.f32 %v2766_v28, %v8804_v51  ;;  %2685 = vadd.xlane.f32.xlu1 %v5290_v27  ;;  %v2795_v2 = vadd.f32 %v2794_v44, %v1760_v35  ;;  %v8807_v6 = vunpack.c.h.bf16 %v5549_v24  ;;  %v1780_v33 = vunpack.c.h.bf16 %v5636_v49  ;;  %v1163_v27 = vld [vmem:[%s4580_s28 + $0x390] sm:$0xff]  ;;  %v5668_v28 = vld [vmem:[%s4580_s28 + $0x398] sm:$0xff]  ;;  %v5671_v24 = vld [vmem:[%s4580_s28 + $0x3a0] sm:$0xff] }
 0x169   : > { %2702 = vadd.xlane.f32.xlu0 %v5360_v7  ;;  %v731_v56 = vpop.xlane.xlu0 %730  ;;  %v2809_v53 = vadd.f32 %v2808_v23, %v1773_v61  ;;  %v1787_v51 = vunpack.c.l.bf16 %v1162_v45  ;;  %v1781_v22 = vunpack.c.l.bf16 %v5647_v52  ;;  %v8808_v44 = vunpack.c.l.bf16 %v5559_v4 }
 0x16a   : > { %v2768_v25 = vadd.f32 %v2767_v50, %v8806_v42  ;;  %v2782_v37 = vadd.f32 %v2781_v40, %v8807_v6  ;;  %v2796_v7 = vadd.f32 %v2795_v2, %v1761_v10  ;;  %v1782_v50 = vunpack.c.h.bf16 %v5647_v52 }
 0x16b   : > { %v2810_v58 = vadd.f32 %v2809_v53, %v1774_v60  ;;  %v1788_v40 = vunpack.c.h.bf16 %v1162_v45  ;;  %v2823_v61 = vadd.f32 %v1786_v34, %v1785_v46  ;;  %v8809_v10 = vunpack.c.h.bf16 %v5515_v14  ;;  %v5683_v34 = vld [vmem:[%s4580_s28 + $0x3a8] sm:$0xff]  ;;  %v1169_v14 = vld [vmem:[%s4580_s28 + $0x3c0] sm:$0xff] }
 0x16c   : > { %v2783_v42 = vadd.f32 %v2782_v37, %v8808_v44  ;;  %2719 = vadd.xlane.f32.xlu1 %v5472_v12  ;;  %v8810_v2 = vunpack.c.h.bf16 %v5584_v30  ;;  %v1789_v60 = vunpack.c.l.bf16 %v1163_v27  ;;  %v8811_v35 = vunpack.c.h.bf16 %v5559_v4 }
 0x16d   : > { %2736 = vadd.xlane.f32.xlu0 %v5530_v8  ;;  %v2769_v23 = vadd.f32 %v2768_v25, %v8809_v10  ;;  %v734_v53 = vpop.xlane.xlu1 %733  ;;  %v737_v44 = vpop.xlane.xlu0 %736  ;;  %v2811_v46 = vadd.f32 %v2810_v58, %v1775_v63  ;;  %v1790_v12 = vunpack.c.h.bf16 %v1163_v27  ;;  %v2824_v8 = vadd.f32 %v2823_v61, %v1787_v51  ;;  %v5694_v63 = vld [vmem:[%s4580_s28 + $0x3b0] sm:$0xff] }
 0x16e   : > { %v2797_v6 = vadd.f32 %v2796_v7, %v8810_v2  ;;  %v2784_v45 = vadd.f32 %v2783_v42, %v8811_v35  ;;  %v8812_v25 = vunpack.c.l.bf16 %v5588_v3  ;;  %v1791_v7 = vunpack.c.l.bf16 %v5668_v28 }
 0x16f   : > { %v1792_v10 = vunpack.c.h.bf16 %v5668_v28  ;;  %v1793_v2 = vunpack.c.l.bf16 %v5671_v24  ;;  %v8813_v4 = vunpack.c.l.bf16 %v5562_v5  ;;  %v2812_v58 = vadd.f32 %v2811_v46, %v1776_v47  ;;  %v1171_v28 = vld [vmem:[%s4580_s28 + $0x3d0] sm:$0xff] }
 0x170   : > { %v2798_v30 = vadd.f32 %v2797_v6, %v8812_v25  ;;  %v2825_v51 = vadd.f32 %v2824_v8, %v1788_v40  ;;  %2753 = vadd.xlane.f32.xlu1 %v5615_v48  ;;  %v8814_v42 = vunpack.c.h.bf16 %v5588_v3  ;;  %v5701_v6 = vld [vmem:[%s4580_s28 + $0x3b8] sm:$0xff]  ;;  %v1801_v47 = vunpack.c.l.bf16 %v1169_v14 }
 0x171   : > { %v2785_v35 = vadd.f32 %v2784_v45, %v8813_v4  ;;  %2770 = vadd.xlane.f32.xlu0 %v2769_v23  ;;  %v1170_v45 = vld [vmem:[%s4580_s28 + $0x3c8] sm:$0xff]  ;;  %v740_v46 = vpop.xlane.xlu1 %739  ;;  %v8815_v4 = vunpack.c.h.bf16 %v5562_v5  ;;  %v2813_v48 = vadd.f32 %v2812_v58, %v1777_v41  ;;  %v1802_v3 = vunpack.c.h.bf16 %v1169_v14  ;;  %v743_v8 = vpop.xlane.xlu0 %742 }
 0x172   : > { %v2799_v61 = vadd.f32 %v2798_v30, %v8814_v42  ;;  %v2826_v23 = vadd.f32 %v2825_v51, %v1789_v60  ;;  %4222 = vrcp.f32 %v731_v56  ;;  %v8816_v30 = vunpack.c.l.bf16 %v5596_v57 }
 0x173   : > { %v2786_v40 = vadd.f32 %v2785_v35, %v8815_v4  ;;  %v1797_v25 = vunpack.c.l.bf16 %v5694_v63  ;;  %v1798_v37 = vunpack.c.h.bf16 %v5694_v63  ;;  %v2814_v27 = vadd.f32 %v2813_v48, %v1778_v36  ;;  %v5730_v48 = vld [vmem:[%s4580_s28 + $0x3e8] sm:$0xff] }
 0x174   : > { %v2800_v42 = vadd.f32 %v2799_v61, %v8816_v30  ;;  %v1799_v5 = vunpack.c.l.bf16 %v5701_v6  ;;  %v2827_v35 = vadd.f32 %v2826_v23, %v1790_v12  ;;  %v1803_v41 = vunpack.c.l.bf16 %v1170_v45  ;;  %v5725_v61 = vld [vmem:[%s4580_s28 + $0x3e0] sm:$0xff] }
 0x175   : > { %4224 = vrcp.f32 %v734_v53  ;;  %2787 = vadd.xlane.f32.xlu1 %v2786_v40  ;;  %v1800_v60 = vunpack.c.h.bf16 %v5701_v6  ;;  %v1804_v14 = vunpack.c.h.bf16 %v1170_v45  ;;  %v8817_v58 = vunpack.c.l.bf16 %v5636_v49  ;;  %v746_v45 = vpop.xlane.xlu1 %745 }
 0x176   : > { %v2801_v56 = vadd.f32 %v2800_v42, %v1766_v9  ;;  %v2828_v36 = vadd.f32 %v2827_v35, %v1791_v7  ;;  %v1805_v4 = vunpack.c.l.bf16 %v1171_v28  ;;  %v2840_v12 = vadd.f32 %v1802_v3, %v1801_v47  ;;  %v1177_v47 = vld [vmem:[%s4580_s28 + $0x400] sm:$0xff]  ;;  %v749_v42 = vpop.xlane.xlu0 %748  ;;  %v5740_v35 = vld [vmem:[%s4580_s28 + $0x3f0] sm:$0xff] }
 0x177   : > { %v2815_v51 = vadd.f32 %v2814_v27, %v8817_v58  ;;  %4226 = vrcp.f32 %v737_v44  ;;  %v8818_v53 = vunpack.c.l.bf16 %v5606_v43  ;;  %v1806_v57 = vunpack.c.h.bf16 %v1171_v28 }
 0x178   : > { %v1807_v9 = vunpack.c.l.bf16 %v5717_v32  ;;  %v2829_v7 = vadd.f32 %v2828_v36, %v1792_v10  ;;  %v1808_v23 = vunpack.c.h.bf16 %v5717_v32  ;;  %v2841_v30 = vadd.f32 %v2840_v12, %v1803_v41  ;;  %v5747_v10 = vld [vmem:[%s4580_s28 + $0x3f8] sm:$0xff]  ;;  %v1178_v41 = vld [vmem:[%s4580_s28 + $0x408] sm:$0xff] }
 0x179   : > { %v2802_v40 = vadd.f32 %v2801_v56, %v8818_v53  ;;  %v2816_v27 = vadd.f32 %v2815_v51, %v1780_v33  ;;  %4228 = vrcp.f32 %v740_v46  ;;  %v8819_v44 = vunpack.c.h.bf16 %v5606_v43 }
 0x17a   : > { %v1809_v28 = vunpack.c.l.bf16 %v5725_v61  ;;  %v1810_v56 = vunpack.c.h.bf16 %v5725_v61  ;;  %v2830_v33 = vadd.f32 %v2829_v7, %v1793_v2  ;;  %v1811_v32 = vunpack.c.l.bf16 %v5730_v48 }
 0x17b   : > { %v2803_v3 = vadd.f32 %v2802_v40, %v8819_v44  ;;  %v2817_v49 = vadd.f32 %v2816_v27, %v1781_v22  ;;  %v2842_v46 = vadd.f32 %v2841_v30, %v1804_v14  ;;  %4230 = vrcp.f32 %v743_v8  ;;  %v1179_v40 = vld [vmem:[%s4580_s28 + $0x410] sm:$0xff]  ;;  %v1185_v27 = vld [vmem:[%s4580_s28 + $0x440] sm:$0xff] }
 0x17c   : > { %v1812_v43 = vunpack.c.h.bf16 %v5730_v48  ;;  %v1817_v58 = vunpack.c.l.bf16 %v1177_v47  ;;  %v1818_v51 = vunpack.c.h.bf16 %v1177_v47  ;;  %v8820_v12 = vunpack.c.h.bf16 %v5671_v24  ;;  %v5758_v14 = vpop.eup %4222 }
 0x17d   : > { %2804 = vadd.xlane.f32.xlu0 %v2803_v3  ;;  %v2818_v36 = vadd.f32 %v2817_v49, %v1782_v50  ;;  %v1813_v2 = vunpack.c.l.bf16 %v5740_v35  ;;  %v2843_v53 = vadd.f32 %v2842_v46, %v1805_v4  ;;  %v1819_v30 = vunpack.c.l.bf16 %v1178_v41  ;;  %v752_v4 = vpop.xlane.xlu1 %751  ;;  %v5768_v3 = vld [vmem:[%s4580_s28 + $0x418] sm:$0xff]  ;;  %v5773_v46 = vld [vmem:[%s4580_s28 + $0x420] sm:$0xff] }
 0x17e   : > { %v2831_v22 = vadd.f32 %v2830_v33, %v8820_v12  ;;  %4232 = vrcp.f32 %v746_v45  ;;  %v8821_v52 = vunpack.c.l.bf16 %v5650_v20  ;;  %v8822_v24 = vunpack.c.l.bf16 %v5683_v34  ;;  %v755_v33 = vpop.xlane.xlu0 %754 }
 0x17f   : > { %v2844_v44 = vadd.f32 %v2843_v53, %v1806_v57  ;;  %v5770_v49 = vpop.eup %4224  ;;  %4234 = vrcp.f32 %v749_v42  ;;  %v1820_v12 = vunpack.c.h.bf16 %v1178_v41  ;;  %v1821_v45 = vunpack.c.l.bf16 %v1179_v40  ;;  %v5783_v42 = vld [vmem:[%s4580_s28 + $0x428] sm:$0xff] }
 0x180   : > { %v2819_v50 = vadd.f32 %v2818_v36, %v8821_v52  ;;  %v2832_v47 = vadd.f32 %v2831_v22, %v8822_v24  ;;  %v2857_v7 = vadd.f32 %v1818_v51, %v1817_v58  ;;  %v8823_v36 = vunpack.c.h.bf16 %v5650_v20 }
 0x181   : > { %v8824_v22 = vunpack.c.h.bf16 %v5683_v34  ;;  %v2845_v57 = vadd.f32 %v2844_v44, %v1807_v9  ;;  %v1822_v53 = vunpack.c.h.bf16 %v1179_v40  ;;  %v5780_v8 = vpop.eup %4226  ;;  %4236 = vrcp.f32 %v752_v4  ;;  %v5798_v44 = vld [vmem:[%s4580_s28 + $0x438] sm:$0xff] }
 0x182   : > { %v2820_v52 = vadd.f32 %v2819_v50, %v8823_v36  ;;  %v1823_v41 = vunpack.c.l.bf16 %v5768_v3  ;;  %v1824_v58 = vunpack.c.h.bf16 %v5768_v3  ;;  %v2858_v51 = vadd.f32 %v2857_v7, %v1819_v30  ;;  %v5790_v50 = vld [vmem:[%s4580_s28 + $0x430] sm:$0xff] }
 0x183   : > { %v2833_v24 = vadd.f32 %v2832_v47, %v8824_v22  ;;  %v2846_v34 = vadd.f32 %v2845_v57, %v1808_v23  ;;  %v1825_v9 = vunpack.c.l.bf16 %v5773_v46  ;;  %v1826_v40 = vunpack.c.h.bf16 %v5773_v46  ;;  %v1186_v47 = vld [vmem:[%s4580_s28 + $0x448] sm:$0xff]  ;;  %v5795_v4 = vpop.eup %4228  ;;  %v758_v22 = vpop.xlane.xlu1 %757  ;;  %v1193_v57 = vld [vmem:[%s4580_s28 + $0x480] sm:$0xff] }
 0x184   : > { %2821 = vadd.xlane.f32.xlu1 %v2820_v52  ;;  %4238 = vrcp.f32 %v755_v33  ;;  %v2859_v3 = vadd.f32 %v2858_v51, %v1820_v12  ;;  %v1833_v7 = vunpack.c.l.bf16 %v1185_v27  ;;  %v1834_v30 = vunpack.c.h.bf16 %v1185_v27  ;;  %v761_v51 = vpop.xlane.xlu0 %760  ;;  %v1187_v27 = vld [vmem:[%s4580_s28 + $0x450] sm:$0xff]  ;;  %v5816_v52 = vld [vmem:[%s4580_s28 + $0x458] sm:$0xff] }
 0x185   : > { %v2834_v20 = vadd.f32 %v2833_v24, %v1797_v25  ;;  %v2847_v23 = vadd.f32 %v2846_v34, %v1809_v28  ;;  %v5804_v24 = vpop.eup %4230  ;;  %v1835_v63 = vunpack.c.l.bf16 %v1186_v47  ;;  %4240 = vrcp.f32 %v758_v22 }
 0x186   : > { %v2860_v12 = vadd.f32 %v2859_v3, %v1821_v45  ;;  %v1836_v45 = vunpack.c.h.bf16 %v1186_v47  ;;  %v2874_v3 = vadd.f32 %v1834_v30, %v1833_v7  ;;  %4242 = vrcp.f32 %v761_v51  ;;  %v5831_v47 = vld [vmem:[%s4580_s28 + $0x468] sm:$0xff] }
 0x187   : > { %v2835_v25 = vadd.f32 %v2834_v20, %v1798_v37  ;;  %v2848_v28 = vadd.f32 %v2847_v23, %v1810_v56  ;;  %v5826_v56 = vld [vmem:[%s4580_s28 + $0x460] sm:$0xff]  ;;  %v1838_v7 = vunpack.c.h.bf16 %v1187_v27  ;;  %v1839_v30 = vunpack.c.l.bf16 %v5816_v52  ;;  %v764_v13 = vpop.xlane.xlu1 %763 }
 0x188   : > { %v2861_v33 = vadd.f32 %v2860_v12, %v1822_v53  ;;  %v5819_v36 = vpop.eup %4232  ;;  %v2875_v22 = vadd.f32 %v2874_v3, %v1835_v63  ;;  %v1194_v12 = vld [vmem:[%s4580_s28 + $0x488] sm:$0xff]  ;;  %v1849_v51 = vunpack.c.l.bf16 %v1193_v57  ;;  %v8828_v46 = vunpack.c.l.bf16 %v5783_v42 }
 0x189   : > { %v2836_v37 = vadd.f32 %v2835_v25, %v1799_v5  ;;  %v2849_v61 = vadd.f32 %v2848_v28, %v1811_v32  ;;  %v1837_v25 = vunpack.c.l.bf16 %v1187_v27  ;;  %v5828_v53 = vpop.eup %4234  ;;  %v1840_v32 = vunpack.c.h.bf16 %v5816_v52  ;;  %v5864_v52 = vld [vmem:[%s4580_s28 + $0x4a0] sm:$0xff] }
 0x18a   : > { %v2862_v23 = vadd.f32 %v2861_v33, %v1823_v41  ;;  %v5844_v33 = vld [vmem:[%s4580_s28 + $0x478] sm:$0xff]  ;;  %v1841_v27 = vunpack.c.l.bf16 %v5826_v56  ;;  %v2876_v3 = vadd.f32 %v2875_v22, %v1836_v45  ;;  %4244 = vrcp.f32 %v764_v13 }
 0x18b   : > { %v2837_v5 = vadd.f32 %v2836_v37, %v1800_v60  ;;  %v2850_v6 = vadd.f32 %v2849_v61, %v1812_v43  ;;  %v5838_v60 = vld [vmem:[%s4580_s28 + $0x470] sm:$0xff]  ;;  %v1850_v37 = vunpack.c.h.bf16 %v1193_v57  ;;  %v5841_v28 = vpop.eup %4236  ;;  %v5858_v45 = vld [vmem:[%s4580_s28 + $0x498] sm:$0xff]  ;;  %v1852_v43 = vunpack.c.h.bf16 %v1194_v12 }
 0x18c   : > { %v2863_v41 = vadd.f32 %v2862_v23, %v1824_v58  ;;  %v1195_v57 = vld [vmem:[%s4580_s28 + $0x490] sm:$0xff]  ;;  %v2877_v20 = vadd.f32 %v2876_v3, %v1837_v25  ;;  %v1201_v3 = vld [vmem:[%s4580_s28 + $0x4c0] sm:$0xff]  ;;  %v1855_v23 = vunpack.c.l.bf16 %v5858_v45 }
 0x18d   : > { %2838 = vadd.xlane.f32.xlu0 %v2837_v5  ;;  %v2851_v48 = vadd.f32 %v2850_v6, %v1813_v2  ;;  %v1851_v5 = vunpack.c.l.bf16 %v1194_v12  ;;  %v8825_v2 = vunpack.c.h.bf16 %v5740_v35  ;;  %v2891_v63 = vadd.f32 %v1850_v37, %v1849_v51 }
 0x18e   : > { %v5853_v61 = vpop.eup %4238  ;;  %v2864_v58 = vadd.f32 %v2863_v41, %v1825_v9  ;;  %v2878_v34 = vadd.f32 %v2877_v20, %v1838_v7  ;;  %v1853_v25 = vunpack.c.l.bf16 %v1195_v57  ;;  %v8826_v35 = vunpack.c.l.bf16 %v5747_v10  ;;  %v1202_v41 = vld [vmem:[%s4580_s28 + $0x4c8] sm:$0xff] }
 0x18f   : > { %v2852_v22 = vadd.f32 %v2851_v48, %v8825_v2  ;;  %v5873_v2 = vld [vmem:[%s4580_s28 + $0x4a8] sm:$0xff]  ;;  %v1854_v6 = vunpack.c.h.bf16 %v1195_v57  ;;  %v2892_v12 = vadd.f32 %v2891_v63, %v1851_v5  ;;  %v5876_v51 = vpop.eup %4240  ;;  %v1856_v20 = vunpack.c.h.bf16 %v5858_v45 }
 0x190   : > { %v2865_v9 = vadd.f32 %v2864_v58, %v1826_v40  ;;  %8827 = vst [vmem:[#allocation60_spill] sm:$0xff] %v5876_v51  ;;  %v2879_v37 = vadd.f32 %v2878_v34, %v1839_v30  ;;  %v5881_v58 = vld [vmem:[%s4580_s28 + $0x4b0] sm:$0xff]  ;;  %v1857_v7 = vunpack.c.l.bf16 %v5864_v52  ;;  %v8830_v57 = vunpack.c.h.bf16 %v5747_v10 }
 0x191   : > { %v2853_v48 = vadd.f32 %v2852_v22, %v8826_v35  ;;  %v5886_v22 = vpop.eup %4242  ;;  %v2893_v63 = vadd.f32 %v2892_v12, %v1852_v43  ;;  %v1865_v5 = vunpack.c.l.bf16 %v1201_v3  ;;  %v1866_v38 = vunpack.c.h.bf16 %v1201_v3  ;;  %v767_v43 = vpop.xlane.xlu0 %766 }
 0x192   : > { %v2866_v40 = vadd.f32 %v2865_v9, %v8828_v46  ;;  %8829 = vst [vmem:[#allocation61_spill] sm:$0xff] %v5886_v22  ;;  %v8831_v9 = vunpack.c.h.bf16 %v5783_v42  ;;  %v2880_v30 = vadd.f32 %v2879_v37, %v1840_v32  ;;  %v1858_v45 = vunpack.c.h.bf16 %v5864_v52  ;;  %v1203_v37 = vld [vmem:[%s4580_s28 + $0x4d0] sm:$0xff] }
 0x193   : > { %v2854_v35 = vadd.f32 %v2853_v48, %v8830_v57  ;;  %v1859_v46 = vunpack.c.l.bf16 %v5873_v2  ;;  %v2894_v57 = vadd.f32 %v2893_v63, %v1853_v25  ;;  %v1867_v3 = vunpack.c.l.bf16 %v1202_v41 }
 0x194   : > { %v2867_v34 = vadd.f32 %v2866_v40, %v8831_v9  ;;  %v8832_v42 = vunpack.c.l.bf16 %v5790_v50  ;;  %v2881_v32 = vadd.f32 %v2880_v30, %v1841_v27  ;;  %v1868_v48 = vunpack.c.h.bf16 %v1202_v41  ;;  %v1209_v30 = vld [vmem:[%s4580_s28 + $0x500] sm:$0xff]  ;;  %v5936_v27 = vld [vmem:[%s4580_s28 + $0x4f8] sm:$0xff] }
 0x195   : > { %2855 = vadd.xlane.f32.xlu1 %v2854_v35  ;;  %v2895_v9 = vadd.f32 %v2894_v57, %v1854_v6  ;;  %v5905_v35 = vld [vmem:[%s4580_s28 + $0x4d8] sm:$0xff]  ;;  %v2908_v25 = vadd.f32 %v1866_v38, %v1865_v5  ;;  %v8833_v63 = vunpack.c.h.bf16 %v5790_v50  ;;  %4246 = vrcp.f32 %v767_v43  ;;  %v5914_v6 = vld [vmem:[%s4580_s28 + $0x4e0] sm:$0xff] }
 0x196   : > { %v2868_v12 = vadd.f32 %v2867_v34, %v8832_v42  ;;  %v8834_v34 = vunpack.c.h.bf16 %v5826_v56  ;;  %v1869_v13 = vunpack.c.l.bf16 %v1203_v37  ;;  %v1870_v57 = vunpack.c.h.bf16 %v1203_v37  ;;  %v5921_v56 = vld [vmem:[%s4580_s28 + $0x4e8] sm:$0xff] }
 0x197   : > { %v2896_v40 = vadd.f32 %v2895_v9, %v1855_v23  ;;  %v2909_v52 = vadd.f32 %v2908_v25, %v1867_v3  ;;  %v8835_v38 = vunpack.c.l.bf16 %v5798_v44  ;;  %v8836_v50 = vunpack.c.l.bf16 %v5831_v47  ;;  %v1210_v23 = vld [vmem:[%s4580_s28 + $0x508] sm:$0xff]  ;;  %v5927_v9 = vld [vmem:[%s4580_s28 + $0x4f0] sm:$0xff] }
 0x198   : > { %v2869_v10 = vadd.f32 %v2868_v12, %v8833_v63  ;;  %v2882_v42 = vadd.f32 %v2881_v32, %v8834_v34  ;;  %v1871_v12 = vunpack.c.l.bf16 %v5905_v35  ;;  %v1872_v43 = vunpack.c.h.bf16 %v5905_v35 }
 0x199   : > { %v2897_v32 = vadd.f32 %v2896_v40, %v1856_v20  ;;  %v2910_v37 = vadd.f32 %v2909_v52, %v1868_v48  ;;  %v1881_v3 = vunpack.c.l.bf16 %v1209_v30  ;;  %v1882_v25 = vunpack.c.h.bf16 %v1209_v30  ;;  %v1211_v52 = vld [vmem:[%s4580_s28 + $0x510] sm:$0xff]  ;;  %v770_v20 = vpop.xlane.xlu1 %769 }
 0x19a   : > { %v2870_v41 = vadd.f32 %v2869_v10, %v8835_v38  ;;  %v2883_v5 = vadd.f32 %v2882_v42, %v8836_v50  ;;  %v8837_v10 = vunpack.c.h.bf16 %v5798_v44  ;;  %v8838_v34 = vunpack.c.h.bf16 %v5831_v47  ;;  %v1218_v47 = vld [vmem:[%s4580_s28 + $0x548] sm:$0xff] }
 0x19b   : > { %v1873_v38 = vunpack.c.l.bf16 %v5914_v6  ;;  %v1874_v50 = vunpack.c.h.bf16 %v5914_v6  ;;  %v2898_v35 = vadd.f32 %v2897_v32, %v1857_v7  ;;  %v2911_v48 = vadd.f32 %v2910_v37, %v1869_v13  ;;  %v5946_v32 = vld [vmem:[%s4580_s28 + $0x518] sm:$0xff] }
 0x19c   : > { %v2871_v63 = vadd.f32 %v2870_v41, %v8837_v10  ;;  %v2884_v42 = vadd.f32 %v2883_v5, %v8838_v34  ;;  %v1883_v40 = vunpack.c.l.bf16 %v1210_v23  ;;  %v8839_v44 = vunpack.c.l.bf16 %v5838_v60  ;;  %v5949_v10 = vld [vmem:[%s4580_s28 + $0x520] sm:$0xff]  ;;  %v5955_v5 = vpop.eup %4244 }
 0x19d   : > { %v2899_v6 = vadd.f32 %v2898_v35, %v1858_v45  ;;  %v2912_v7 = vadd.f32 %v2911_v48, %v1870_v57  ;;  %v1884_v13 = vunpack.c.h.bf16 %v1210_v23  ;;  %v2925_v37 = vadd.f32 %v1882_v25, %v1881_v3  ;;  %8841 = vst [vmem:[#allocation62_spill] sm:$0xff] %v5955_v5  ;;  %v5960_v35 = vld [vmem:[%s4580_s28 + $0x528] sm:$0xff]  ;;  %v1425_v5 = vld [vmem:[%s4580_s28 + $0xbc0] sm:$0xff] }
 0x19e   : > { %2872 = vadd.xlane.f32.xlu0 %v2871_v63  ;;  %v2885_v30 = vadd.f32 %v2884_v42, %v8839_v44  ;;  %v8840_v63 = vunpack.c.h.bf16 %v5838_v60  ;;  %v1885_v41 = vunpack.c.l.bf16 %v1211_v52  ;;  %v1886_v23 = vunpack.c.h.bf16 %v1211_v52  ;;  %v1217_v60 = vld [vmem:[%s4580_s28 + $0x540] sm:$0xff]  ;;  %v5976_v52 = vld [vmem:[%s4580_s28 + $0x538] sm:$0xff] }
 0x19f   : > { %v2900_v45 = vadd.f32 %v2899_v6, %v1859_v46  ;;  %v2913_v57 = vadd.f32 %v2912_v7, %v1871_v12  ;;  %v2926_v3 = vadd.f32 %v2925_v37, %v1883_v40  ;;  %v5963_v25 = vpop.eup %4246  ;;  %v8843_v48 = vunpack.c.l.bf16 %v5844_v33  ;;  %v5973_v7 = vld [vmem:[%s4580_s28 + $0x530] sm:$0xff] }
 0x1a0   : > { %v2886_v34 = vadd.f32 %v2885_v30, %v8840_v63  ;;  %8842 = vst [vmem:[#allocation63_spill] sm:$0xff] %v5963_v25  ;;  %v1887_v63 = vunpack.c.l.bf16 %v5946_v32  ;;  %v1888_v44 = vunpack.c.h.bf16 %v5946_v32  ;;  %v1889_v42 = vunpack.c.l.bf16 %v5949_v10 }
 0x1a1   : > { %v8844_v46 = vunpack.c.h.bf16 %v5873_v2  ;;  %v2914_v6 = vadd.f32 %v2913_v57, %v1872_v43  ;;  %v1890_v40 = vunpack.c.h.bf16 %v5949_v10  ;;  %v2927_v37 = vadd.f32 %v2926_v3, %v1884_v13  ;;  %v773_v13 = vpop.xlane.xlu0 %772 }
 0x1a2   : > { %v2887_v30 = vadd.f32 %v2886_v34, %v8843_v48  ;;  %v8845_v34 = vunpack.c.h.bf16 %v5844_v33  ;;  %v1891_v32 = vunpack.c.l.bf16 %v5960_v35  ;;  %v1897_v11 = vunpack.c.l.bf16 %v1217_v60 }
 0x1a3   : > { %v2901_v12 = vadd.f32 %v2900_v45, %v8844_v46  ;;  %v1898_v59 = vunpack.c.h.bf16 %v1217_v60  ;;  %v8846_v2 = vunpack.c.l.bf16 %v5881_v58  ;;  %v2915_v45 = vadd.f32 %v2914_v6, %v1873_v38  ;;  %v1219_v46 = vld [vmem:[%s4580_s28 + $0x550] sm:$0xff]  ;;  %v1225_v6 = vld [vmem:[%s4580_s28 + $0x580] sm:$0xff] }
 0x1a4   : > { %v2888_v48 = vadd.f32 %v2887_v30, %v8845_v34  ;;  %v2928_v10 = vadd.f32 %v2927_v37, %v1885_v41  ;;  %v1899_v60 = vunpack.c.l.bf16 %v1218_v47  ;;  %v8847_v34 = vunpack.c.h.bf16 %v5881_v58  ;;  %v5993_v41 = vld [vmem:[%s4580_s28 + $0x558] sm:$0xff] }
 0x1a5   : > { %v2902_v43 = vadd.f32 %v2901_v12, %v8846_v2  ;;  %v2916_v2 = vadd.f32 %v2915_v45, %v1874_v50  ;;  %4248 = vrcp.f32 %v770_v20  ;;  %v2942_v30 = vadd.f32 %v1898_v59, %v1897_v11  ;;  %v6002_v50 = vld [vmem:[%s4580_s28 + $0x560] sm:$0xff] }
 0x1a6   : > { %2889 = vadd.xlane.f32.xlu1 %v2888_v48  ;;  %v2929_v38 = vadd.f32 %v2928_v10, %v1886_v23  ;;  %4250 = vrcp.f32 %v773_v13  ;;  %v1900_v48 = vunpack.c.h.bf16 %v1218_v47  ;;  %v8848_v33 = vunpack.c.l.bf16 %v5891_v1  ;;  %v6005_v23 = vld [vmem:[%s4580_s28 + $0x568] sm:$0xff] }
 0x1a7   : > { %v2903_v12 = vadd.f32 %v2902_v43, %v8847_v34  ;;  %v8849_v58 = vunpack.c.l.bf16 %v5921_v56  ;;  %v1901_v20 = vunpack.c.l.bf16 %v1219_v46  ;;  %v1902_v45 = vunpack.c.h.bf16 %v1219_v46  ;;  %v1226_v47 = vld [vmem:[%s4580_s28 + $0x588] sm:$0xff] }
 0x1a8   : > { %v2930_v43 = vadd.f32 %v2929_v38, %v1887_v63  ;;  %v1903_v10 = vunpack.c.l.bf16 %v5993_v41  ;;  %v2943_v13 = vadd.f32 %v2942_v30, %v1899_v60  ;;  %v1913_v59 = vunpack.c.l.bf16 %v1225_v6 }
 0x1a9   : > { %v2904_v3 = vadd.f32 %v2903_v12, %v8848_v33  ;;  %v2917_v57 = vadd.f32 %v2916_v2, %v8849_v58  ;;  %v8850_v11 = vunpack.c.h.bf16 %v5891_v1  ;;  %v8851_v34 = vunpack.c.h.bf16 %v5921_v56  ;;  %v6014_v2 = vld [vmem:[%s4580_s28 + $0x570] sm:$0xff]  ;;  %v6022_v56 = vld [vmem:[%s4580_s28 + $0x578] sm:$0xff] }
 0x1aa   : > { %v2931_v63 = vadd.f32 %v2930_v43, %v1888_v44  ;;  %v1914_v38 = vunpack.c.h.bf16 %v1225_v6  ;;  %v1904_v58 = vunpack.c.h.bf16 %v5993_v41  ;;  %v1905_v46 = vunpack.c.l.bf16 %v6002_v50  ;;  %v6059_v44 = vld [vmem:[%s4580_s28 + $0x5b0] sm:$0xff] }
 0x1ab   : > { %v2905_v33 = vadd.f32 %v2904_v3, %v8850_v11  ;;  %v2918_v12 = vadd.f32 %v2917_v57, %v8851_v34  ;;  %v2944_v60 = vadd.f32 %v2943_v13, %v1900_v48  ;;  %v8852_v37 = vunpack.c.l.bf16 %v5927_v9  ;;  %v1227_v57 = vld [vmem:[%s4580_s28 + $0x590] sm:$0xff] }
 0x1ac   : > { %v2932_v3 = vadd.f32 %v2931_v63, %v1889_v42  ;;  %v1915_v6 = vunpack.c.l.bf16 %v1226_v47  ;;  %v8853_v13 = vunpack.c.h.bf16 %v5927_v9  ;;  %v6032_v42 = vld [vmem:[%s4580_s28 + $0x598] sm:$0xff]  ;;  %v1916_v34 = vunpack.c.h.bf16 %v1226_v47  ;;  %v1233_v63 = vld [vmem:[%s4580_s28 + $0x5c0] sm:$0xff]  ;;  %v6047_v47 = vld [vmem:[%s4580_s28 + $0x5a8] sm:$0xff] }
 0x1ad   : > { %2906 = vadd.xlane.f32.xlu0 %v2905_v33  ;;  %v2919_v1 = vadd.f32 %v2918_v12, %v8852_v37  ;;  %v2945_v48 = vadd.f32 %v2944_v60, %v1901_v20  ;;  %v2959_v12 = vadd.f32 %v1914_v38, %v1913_v59  ;;  %v1917_v30 = vunpack.c.l.bf16 %v1227_v57  ;;  %v6044_v60 = vld [vmem:[%s4580_s28 + $0x5a0] sm:$0xff] }
 0x1ae   : > { %v2933_v37 = vadd.f32 %v2932_v3, %v1890_v40  ;;  %v8855_v20 = vunpack.c.l.bf16 %v5936_v27  ;;  %v1918_v59 = vunpack.c.h.bf16 %v1227_v57  ;;  %v1929_v41 = vunpack.c.l.bf16 %v1233_v63 }
 0x1af   : > { %v2920_v33 = vadd.f32 %v2919_v1, %v8853_v13  ;;  %v2946_v43 = vadd.f32 %v2945_v48, %v1902_v45  ;;  %v6037_v11 = vpop.eup %4248  ;;  %v2960_v38 = vadd.f32 %v2959_v12, %v1915_v6  ;;  %v1919_v45 = vunpack.c.l.bf16 %v6032_v42  ;;  %v1234_v13 = vld [vmem:[%s4580_s28 + $0x5c8] sm:$0xff]  ;;  %v776_v6 = vpop.xlane.xlu1 %775 }
 0x1b0   : > { %8854 = vst [vmem:[#allocation64_spill] sm:$0xff] %v6037_v11  ;;  %v2934_v40 = vadd.f32 %v2933_v37, %v1891_v32  ;;  %v6049_v1 = vpop.eup %4250  ;;  %v1920_v48 = vunpack.c.h.bf16 %v6032_v42  ;;  %v8858_v32 = vunpack.c.h.bf16 %v5960_v35  ;;  %v1930_v12 = vunpack.c.h.bf16 %v1233_v63  ;;  %v6067_v35 = vld [vmem:[%s4580_s28 + $0x5b8] sm:$0xff]  ;;  %v779_v63 = vpop.xlane.xlu0 %778 }
 0x1b1   : > { %v2921_v9 = vadd.f32 %v2920_v33, %v8855_v20  ;;  %8856 = vst [vmem:[#allocation65_spill] sm:$0xff] %v6049_v1  ;;  %v2947_v3 = vadd.f32 %v2946_v43, %v1903_v10  ;;  %v8857_v33 = vunpack.c.h.bf16 %v5936_v27  ;;  %v2961_v57 = vadd.f32 %v2960_v38, %v1916_v34 }
 0x1b2   : > { %v2935_v37 = vadd.f32 %v2934_v40, %v8858_v32  ;;  %v1921_v43 = vunpack.c.l.bf16 %v6044_v60  ;;  %v1922_v1 = vunpack.c.h.bf16 %v6044_v60  ;;  %v8859_v27 = vunpack.c.l.bf16 %v5973_v7  ;;  %v6091_v60 = vld [vmem:[%s4580_s28 + $0x5e8] sm:$0xff] }
 0x1b3   : > { %v2922_v20 = vadd.f32 %v2921_v9, %v8857_v33  ;;  %v2948_v10 = vadd.f32 %v2947_v3, %v1904_v58  ;;  %v2962_v40 = vadd.f32 %v2961_v57, %v1917_v30  ;;  %v1931_v38 = vunpack.c.l.bf16 %v1234_v13  ;;  %v1235_v33 = vld [vmem:[%s4580_s28 + $0x5d0] sm:$0xff]  ;;  %v1241_v57 = vld [vmem:[%s4580_s28 + $0x600] sm:$0xff] }
 0x1b4   : > { %v2936_v9 = vadd.f32 %v2935_v37, %v8859_v27  ;;  %4252 = vrcp.f32 %v776_v6  ;;  %v6076_v27 = vld [vmem:[%s4580_s28 + $0x5d8] sm:$0xff]  ;;  %v1932_v42 = vunpack.c.h.bf16 %v1234_v13  ;;  %v2976_v30 = vadd.f32 %v1930_v12, %v1929_v41 }
 0x1b5   : > { %2923 = vadd.xlane.f32.xlu1 %v2922_v20  ;;  %v2949_v58 = vadd.f32 %v2948_v10, %v1905_v46  ;;  %v8860_v20 = vunpack.c.h.bf16 %v5973_v7  ;;  %v2963_v37 = vadd.f32 %v2962_v40, %v1918_v59  ;;  %v8861_v46 = vunpack.c.h.bf16 %v6002_v50  ;;  %v6086_v59 = vld [vmem:[%s4580_s28 + $0x5e0] sm:$0xff] }
 0x1b6   : > { %4254 = vrcp.f32 %v779_v63  ;;  %v8862_v7 = vunpack.c.l.bf16 %v5976_v52  ;;  %v1933_v40 = vunpack.c.l.bf16 %v1235_v33  ;;  %v2977_v13 = vadd.f32 %v2976_v30, %v1931_v38 }
 0x1b7   : > { %v2937_v32 = vadd.f32 %v2936_v9, %v8860_v20  ;;  %v2950_v10 = vadd.f32 %v2949_v58, %v8861_v46  ;;  %v2964_v20 = vadd.f32 %v2963_v37, %v1919_v45  ;;  %v8863_v41 = vunpack.c.l.bf16 %v6005_v23  ;;  %v1242_v46 = vld [vmem:[%s4580_s28 + $0x608] sm:$0xff]  ;;  %v6098_v37 = vld [vmem:[%s4580_s28 + $0x5f0] sm:$0xff] }
 0x1b8   : > { %v1934_v50 = vunpack.c.h.bf16 %v1235_v33  ;;  %v1935_v58 = vunpack.c.l.bf16 %v6076_v27  ;;  %v1945_v63 = vunpack.c.l.bf16 %v1241_v57  ;;  %v8864_v6 = vunpack.c.h.bf16 %v5976_v52  ;;  %v6106_v52 = vld [vmem:[%s4580_s28 + $0x5f8] sm:$0xff] }
 0x1b9   : > { %v2938_v9 = vadd.f32 %v2937_v32, %v8862_v7  ;;  %v2951_v12 = vadd.f32 %v2950_v10, %v8863_v41  ;;  %v2965_v45 = vadd.f32 %v2964_v20, %v1920_v48  ;;  %v2978_v7 = vadd.f32 %v2977_v13, %v1932_v42  ;;  %v1243_v42 = vld [vmem:[%s4580_s28 + $0x610] sm:$0xff]  ;;  %v6130_v13 = vld [vmem:[%s4580_s28 + $0x628] sm:$0xff] }
 0x1ba   : > { %v1946_v38 = vunpack.c.h.bf16 %v1241_v57  ;;  %v8865_v30 = vunpack.c.h.bf16 %v6005_v23  ;;  %v1936_v41 = vunpack.c.h.bf16 %v6076_v27  ;;  %v1937_v33 = vunpack.c.l.bf16 %v6086_v59  ;;  %v1250_v48 = vld [vmem:[%s4580_s28 + $0x648] sm:$0xff] }
 0x1bb   : > { %v2939_v32 = vadd.f32 %v2938_v9, %v8864_v6  ;;  %v1938_v3 = vunpack.c.h.bf16 %v6086_v59  ;;  %v2966_v34 = vadd.f32 %v2965_v45, %v1921_v43  ;;  %v2979_v6 = vadd.f32 %v2978_v7, %v1933_v40 }
 0x1bc   : > { %v2952_v10 = vadd.f32 %v2951_v12, %v8865_v30  ;;  %v1947_v57 = vunpack.c.l.bf16 %v1242_v46  ;;  %v8866_v23 = vunpack.c.l.bf16 %v6014_v2  ;;  %v6116_v12 = vld [vmem:[%s4580_s28 + $0x618] sm:$0xff]  ;;  %v1948_v40 = vunpack.c.h.bf16 %v1242_v46 }
 0x1bd   : > { %2940 = vadd.xlane.f32.xlu0 %v2939_v32  ;;  %v2967_v59 = vadd.f32 %v2966_v34, %v1922_v1  ;;  %v2980_v43 = vadd.f32 %v2979_v6, %v1934_v50  ;;  %v6119_v32 = vld [vmem:[%s4580_s28 + $0x620] sm:$0xff]  ;;  %v2993_v45 = vadd.f32 %v1946_v38, %v1945_v63  ;;  %v8868_v30 = vunpack.c.h.bf16 %v6014_v2 }
 0x1be   : > { %v2953_v9 = vadd.f32 %v2952_v10, %v8866_v23  ;;  %v6121_v7 = vpop.eup %4252  ;;  %v1949_v1 = vunpack.c.l.bf16 %v1243_v42  ;;  %v8869_v34 = vunpack.c.l.bf16 %v6047_v47  ;;  %v1950_v46 = vunpack.c.h.bf16 %v1243_v42  ;;  %v1249_v38 = vld [vmem:[%s4580_s28 + $0x640] sm:$0xff]  ;;  %v6146_v42 = vld [vmem:[%s4580_s28 + $0x638] sm:$0xff] }
 0x1bf   : > { %8867 = vst [vmem:[#allocation66_spill] sm:$0xff] %v6121_v7  ;;  %v2981_v6 = vadd.f32 %v2980_v43, %v1935_v58  ;;  %v2994_v63 = vadd.f32 %v2993_v45, %v1947_v57  ;;  %v8871_v2 = vunpack.c.l.bf16 %v6022_v56  ;;  %v1952_v20 = vunpack.c.h.bf16 %v6116_v12 }
 0x1c0   : > { %v2954_v10 = vadd.f32 %v2953_v9, %v8868_v30  ;;  %v2968_v50 = vadd.f32 %v2967_v59, %v8869_v34  ;;  %v6133_v27 = vpop.eup %4254  ;;  %v1951_v30 = vunpack.c.l.bf16 %v6116_v12  ;;  %v1953_v23 = vunpack.c.l.bf16 %v6119_v32  ;;  %v6143_v34 = vld [vmem:[%s4580_s28 + $0x630] sm:$0xff] }
 0x1c1   : > { %8870 = vst [vmem:[#allocation67_spill] sm:$0xff] %v6133_v27  ;;  %v8872_v59 = vunpack.c.h.bf16 %v6047_v47  ;;  %v2982_v43 = vadd.f32 %v2981_v6, %v1936_v41  ;;  %v1954_v57 = vunpack.c.h.bf16 %v6119_v32  ;;  %v2995_v45 = vadd.f32 %v2994_v63, %v1948_v40  ;;  %v782_v27 = vpop.xlane.xlu1 %781  ;;  %v785_v40 = vpop.xlane.xlu0 %784 }
 0x1c2   : > { %v2955_v9 = vadd.f32 %v2954_v10, %v8871_v2  ;;  %v8873_v10 = vunpack.c.h.bf16 %v6022_v56  ;;  %v1955_v12 = vunpack.c.l.bf16 %v6130_v13  ;;  %v1961_v7 = vunpack.c.l.bf16 %v1249_v38 }
 0x1c3   : > { %v2969_v58 = vadd.f32 %v2968_v50, %v8872_v59  ;;  %v1962_v11 = vunpack.c.h.bf16 %v1249_v38  ;;  %v8874_v47 = vunpack.c.l.bf16 %v6059_v44  ;;  %v2983_v50 = vadd.f32 %v2982_v43, %v1937_v33  ;;  %v1251_v59 = vld [vmem:[%s4580_s28 + $0x650] sm:$0xff]  ;;  %v1257_v43 = vld [vmem:[%s4580_s28 + $0x680] sm:$0xff] }
 0x1c4   : > { %v2956_v2 = vadd.f32 %v2955_v9, %v8873_v10  ;;  %v2996_v32 = vadd.f32 %v2995_v45, %v1949_v1  ;;  %v1963_v38 = vunpack.c.l.bf16 %v1250_v48  ;;  %v8875_v10 = vunpack.c.h.bf16 %v6059_v44  ;;  %v6163_v1 = vld [vmem:[%s4580_s28 + $0x658] sm:$0xff] }
 0x1c5   : > { %v2970_v41 = vadd.f32 %v2969_v58, %v8874_v47  ;;  %v2984_v47 = vadd.f32 %v2983_v50, %v1938_v3  ;;  %4256 = vrcp.f32 %v782_v27  ;;  %v3010_v9 = vadd.f32 %v1962_v11, %v1961_v7  ;;  %v6172_v3 = vld [vmem:[%s4580_s28 + $0x660] sm:$0xff] }
 0x1c6   : > { %2957 = vadd.xlane.f32.xlu1 %v2956_v2  ;;  %v2997_v33 = vadd.f32 %v2996_v32, %v1950_v46  ;;  %4258 = vrcp.f32 %v785_v40  ;;  %v1964_v2 = vunpack.c.h.bf16 %v1250_v48  ;;  %v8876_v56 = vunpack.c.l.bf16 %v6067_v35  ;;  %v6175_v46 = vld [vmem:[%s4580_s28 + $0x668] sm:$0xff] }
 0x1c7   : > { %v2971_v58 = vadd.f32 %v2970_v41, %v8875_v10  ;;  %v8877_v44 = vunpack.c.l.bf16 %v6091_v60  ;;  %v1965_v27 = vunpack.c.l.bf16 %v1251_v59  ;;  %v1966_v50 = vunpack.c.h.bf16 %v1251_v59  ;;  %v1258_v48 = vld [vmem:[%s4580_s28 + $0x688] sm:$0xff] }
 0x1c8   : > { %v2998_v41 = vadd.f32 %v2997_v33, %v1951_v30  ;;  %v1967_v32 = vunpack.c.l.bf16 %v6163_v1  ;;  %v3011_v40 = vadd.f32 %v3010_v9, %v1963_v38  ;;  %v1977_v11 = vunpack.c.l.bf16 %v1257_v43 }
 0x1c9   : > { %v2972_v63 = vadd.f32 %v2971_v58, %v8876_v56  ;;  %v2985_v6 = vadd.f32 %v2984_v47, %v8877_v44  ;;  %v8878_v7 = vunpack.c.h.bf16 %v6067_v35  ;;  %v8879_v10 = vunpack.c.h.bf16 %v6091_v60  ;;  %v6184_v47 = vld [vmem:[%s4580_s28 + $0x670] sm:$0xff]  ;;  %v6192_v60 = vld [vmem:[%s4580_s28 + $0x678] sm:$0xff] }
 0x1ca   : > { %v2999_v30 = vadd.f32 %v2998_v41, %v1952_v20  ;;  %v1978_v33 = vunpack.c.h.bf16 %v1257_v43  ;;  %v1968_v44 = vunpack.c.h.bf16 %v6163_v1  ;;  %v1969_v59 = vunpack.c.l.bf16 %v6172_v3  ;;  %v6229_v20 = vld [vmem:[%s4580_s28 + $0x6b0] sm:$0xff] }
 0x1cb   : > { %v2973_v56 = vadd.f32 %v2972_v63, %v8878_v7  ;;  %v2986_v58 = vadd.f32 %v2985_v6, %v8879_v10  ;;  %v3012_v38 = vadd.f32 %v3011_v40, %v1964_v2  ;;  %v8880_v45 = vunpack.c.l.bf16 %v6098_v37  ;;  %v1259_v6 = vld [vmem:[%s4580_s28 + $0x690] sm:$0xff] }
 0x1cc   : > { %v3000_v63 = vadd.f32 %v2999_v30, %v1953_v23  ;;  %v1979_v43 = vunpack.c.l.bf16 %v1258_v48  ;;  %v8881_v40 = vunpack.c.h.bf16 %v6098_v37  ;;  %v6202_v23 = vld [vmem:[%s4580_s28 + $0x698] sm:$0xff]  ;;  %v1980_v10 = vunpack.c.h.bf16 %v1258_v48  ;;  %v1265_v30 = vld [vmem:[%s4580_s28 + $0x6c0] sm:$0xff]  ;;  %v6217_v48 = vld [vmem:[%s4580_s28 + $0x6a8] sm:$0xff] }
 0x1cd   : > { %2974 = vadd.xlane.f32.xlu0 %v2973_v56  ;;  %v2987_v35 = vadd.f32 %v2986_v58, %v8880_v45  ;;  %v3013_v2 = vadd.f32 %v3012_v38, %v1965_v27  ;;  %v3027_v58 = vadd.f32 %v1978_v33, %v1977_v11  ;;  %v1981_v9 = vunpack.c.l.bf16 %v1259_v6  ;;  %v6214_v38 = vld [vmem:[%s4580_s28 + $0x6a0] sm:$0xff] }
 0x1ce   : > { %v3001_v45 = vadd.f32 %v3000_v63, %v1954_v57  ;;  %v8883_v27 = vunpack.c.l.bf16 %v6106_v52  ;;  %v1982_v11 = vunpack.c.h.bf16 %v1259_v6  ;;  %v1993_v1 = vunpack.c.l.bf16 %v1265_v30 }
 0x1cf   : > { %v2988_v56 = vadd.f32 %v2987_v35, %v8881_v40  ;;  %v3014_v41 = vadd.f32 %v3013_v2, %v1966_v50  ;;  %v6207_v7 = vpop.eup %4256  ;;  %v3028_v33 = vadd.f32 %v3027_v58, %v1979_v43  ;;  %v1983_v50 = vunpack.c.l.bf16 %v6202_v23  ;;  %v1266_v40 = vld [vmem:[%s4580_s28 + $0x6c8] sm:$0xff]  ;;  %v788_v43 = vpop.xlane.xlu1 %787 }
 0x1d0   : > { %8882 = vst [vmem:[#allocation68_spill] sm:$0xff] %v6207_v7  ;;  %v3002_v57 = vadd.f32 %v3001_v45, %v1955_v12  ;;  %v6219_v35 = vpop.eup %4258  ;;  %v1984_v2 = vunpack.c.h.bf16 %v6202_v23  ;;  %v8886_v12 = vunpack.c.h.bf16 %v6130_v13  ;;  %v1994_v58 = vunpack.c.h.bf16 %v1265_v30  ;;  %v6237_v13 = vld [vmem:[%s4580_s28 + $0x6b8] sm:$0xff]  ;;  %v791_v30 = vpop.xlane.xlu0 %790 }
 0x1d1   : > { %v2989_v37 = vadd.f32 %v2988_v56, %v8883_v27  ;;  %8884 = vst [vmem:[#allocation69_spill] sm:$0xff] %v6219_v35  ;;  %v3015_v63 = vadd.f32 %v3014_v41, %v1967_v32  ;;  %v8885_v56 = vunpack.c.h.bf16 %v6106_v52  ;;  %v3029_v6 = vadd.f32 %v3028_v33, %v1980_v10 }
 0x1d2   : > { %v3003_v45 = vadd.f32 %v3002_v57, %v8886_v12  ;;  %v1985_v41 = vunpack.c.l.bf16 %v6214_v38  ;;  %v1986_v35 = vunpack.c.h.bf16 %v6214_v38  ;;  %v8887_v52 = vunpack.c.l.bf16 %v6143_v34  ;;  %v6261_v38 = vld [vmem:[%s4580_s28 + $0x6e8] sm:$0xff] }
 0x1d3   : > { %v2990_v27 = vadd.f32 %v2989_v37, %v8885_v56  ;;  %v3016_v32 = vadd.f32 %v3015_v63, %v1968_v44  ;;  %v3030_v57 = vadd.f32 %v3029_v6, %v1981_v9  ;;  %v1995_v33 = vunpack.c.l.bf16 %v1266_v40  ;;  %v1267_v56 = vld [vmem:[%s4580_s28 + $0x6d0] sm:$0xff]  ;;  %v1273_v6 = vld [vmem:[%s4580_s28 + $0x700] sm:$0xff] }
 0x1d4   : > { %v3004_v37 = vadd.f32 %v3003_v45, %v8887_v52  ;;  %4260 = vrcp.f32 %v788_v43  ;;  %v6246_v52 = vld [vmem:[%s4580_s28 + $0x6d8] sm:$0xff]  ;;  %v1996_v23 = vunpack.c.h.bf16 %v1266_v40  ;;  %v3044_v9 = vadd.f32 %v1994_v58, %v1993_v1 }
 0x1d5   : > { %2991 = vadd.xlane.f32.xlu1 %v2990_v27  ;;  %v3017_v44 = vadd.f32 %v3016_v32, %v1969_v59  ;;  %v8888_v27 = vunpack.c.h.bf16 %v6143_v34  ;;  %v3031_v45 = vadd.f32 %v3030_v57, %v1982_v11  ;;  %v8889_v59 = vunpack.c.h.bf16 %v6172_v3  ;;  %v6256_v11 = vld [vmem:[%s4580_s28 + $0x6e0] sm:$0xff] }
 0x1d6   : > { %4262 = vrcp.f32 %v791_v30  ;;  %v8890_v34 = vunpack.c.l.bf16 %v6146_v42  ;;  %v1997_v57 = vunpack.c.l.bf16 %v1267_v56  ;;  %v3045_v40 = vadd.f32 %v3044_v9, %v1995_v33 }
 0x1d7   : > { %v3005_v12 = vadd.f32 %v3004_v37, %v8888_v27  ;;  %v3018_v32 = vadd.f32 %v3017_v44, %v8889_v59  ;;  %v3032_v27 = vadd.f32 %v3031_v45, %v1983_v50  ;;  %v8891_v1 = vunpack.c.l.bf16 %v6175_v46  ;;  %v1274_v59 = vld [vmem:[%s4580_s28 + $0x708] sm:$0xff]  ;;  %v6268_v45 = vld [vmem:[%s4580_s28 + $0x6f0] sm:$0xff] }
 0x1d8   : > { %v1998_v3 = vunpack.c.h.bf16 %v1267_v56  ;;  %v1999_v44 = vunpack.c.l.bf16 %v6246_v52  ;;  %v2009_v30 = vunpack.c.l.bf16 %v1273_v6  ;;  %v8892_v43 = vunpack.c.h.bf16 %v6146_v42  ;;  %v6276_v42 = vld [vmem:[%s4580_s28 + $0x6f8] sm:$0xff] }
 0x1d9   : > { %v3006_v37 = vadd.f32 %v3005_v12, %v8890_v34  ;;  %v3019_v58 = vadd.f32 %v3018_v32, %v8891_v1  ;;  %v3033_v50 = vadd.f32 %v3032_v27, %v1984_v2  ;;  %v3046_v34 = vadd.f32 %v3045_v40, %v1996_v23  ;;  %v1275_v23 = vld [vmem:[%s4580_s28 + $0x710] sm:$0xff]  ;;  %v6300_v40 = vld [vmem:[%s4580_s28 + $0x728] sm:$0xff] }
 0x1da   : > { %v2010_v33 = vunpack.c.h.bf16 %v1273_v6  ;;  %v8893_v9 = vunpack.c.h.bf16 %v6175_v46  ;;  %v2000_v1 = vunpack.c.h.bf16 %v6246_v52  ;;  %v2001_v56 = vunpack.c.l.bf16 %v6256_v11  ;;  %v1282_v2 = vld [vmem:[%s4580_s28 + $0x748] sm:$0xff] }
 0x1db   : > { %v3007_v12 = vadd.f32 %v3006_v37, %v8892_v43  ;;  %v2002_v63 = vunpack.c.h.bf16 %v6256_v11  ;;  %v3034_v10 = vadd.f32 %v3033_v50, %v1985_v41  ;;  %v3047_v43 = vadd.f32 %v3046_v34, %v1997_v57 }
 0x1dc   : > { %v3020_v32 = vadd.f32 %v3019_v58, %v8893_v9  ;;  %v2011_v6 = vunpack.c.l.bf16 %v1274_v59  ;;  %v8894_v46 = vunpack.c.l.bf16 %v6184_v47  ;;  %v6286_v58 = vld [vmem:[%s4580_s28 + $0x718] sm:$0xff]  ;;  %v2012_v57 = vunpack.c.h.bf16 %v1274_v59 }
 0x1dd   : > { %3008 = vadd.xlane.f32.xlu0 %v3007_v12  ;;  %v3035_v11 = vadd.f32 %v3034_v10, %v1986_v35  ;;  %v3048_v41 = vadd.f32 %v3047_v43, %v1998_v3  ;;  %v6289_v12 = vld [vmem:[%s4580_s28 + $0x720] sm:$0xff]  ;;  %v3061_v50 = vadd.f32 %v2010_v33, %v2009_v30  ;;  %v8896_v9 = vunpack.c.h.bf16 %v6184_v47 }
 0x1de   : > { %v3021_v37 = vadd.f32 %v3020_v32, %v8894_v46  ;;  %v6291_v34 = vpop.eup %4260  ;;  %v2013_v35 = vunpack.c.l.bf16 %v1275_v23  ;;  %v8897_v10 = vunpack.c.l.bf16 %v6217_v48  ;;  %v2014_v59 = vunpack.c.h.bf16 %v1275_v23  ;;  %v1281_v33 = vld [vmem:[%s4580_s28 + $0x740] sm:$0xff]  ;;  %v6316_v23 = vld [vmem:[%s4580_s28 + $0x738] sm:$0xff] }
 0x1df   : > { %8895 = vst [vmem:[#allocation70_spill] sm:$0xff] %v6291_v34  ;;  %v3049_v43 = vadd.f32 %v3048_v41, %v1999_v44  ;;  %v3062_v30 = vadd.f32 %v3061_v50, %v2011_v6  ;;  %v8899_v47 = vunpack.c.l.bf16 %v6192_v60  ;;  %v2016_v27 = vunpack.c.h.bf16 %v6286_v58 }
 0x1e0   : > { %v3022_v32 = vadd.f32 %v3021_v37, %v8896_v9  ;;  %v3036_v3 = vadd.f32 %v3035_v11, %v8897_v10  ;;  %v6303_v52 = vpop.eup %4262  ;;  %v2015_v9 = vunpack.c.l.bf16 %v6286_v58  ;;  %v2017_v46 = vunpack.c.l.bf16 %v6289_v12  ;;  %v6313_v10 = vld [vmem:[%s4580_s28 + $0x730] sm:$0xff] }
 0x1e1   : > { %8898 = vst [vmem:[#allocation71_spill] sm:$0xff] %v6303_v52  ;;  %v8900_v11 = vunpack.c.h.bf16 %v6217_v48  ;;  %v3050_v41 = vadd.f32 %v3049_v43, %v2000_v1  ;;  %v2018_v6 = vunpack.c.h.bf16 %v6289_v12  ;;  %v3063_v50 = vadd.f32 %v3062_v30, %v2012_v57  ;;  %v794_v52 = vpop.xlane.xlu1 %793  ;;  %v797_v57 = vpop.xlane.xlu0 %796 }
 0x1e2   : > { %v3023_v37 = vadd.f32 %v3022_v32, %v8899_v47  ;;  %v8901_v32 = vunpack.c.h.bf16 %v6192_v60  ;;  %v2019_v58 = vunpack.c.l.bf16 %v6300_v40  ;;  %v2025_v34 = vunpack.c.l.bf16 %v1281_v33 }
 0x1e3   : > { %v3037_v44 = vadd.f32 %v3036_v3, %v8900_v11  ;;  %v2026_v7 = vunpack.c.h.bf16 %v1281_v33  ;;  %v8902_v48 = vunpack.c.l.bf16 %v6229_v20  ;;  %v3051_v3 = vadd.f32 %v3050_v41, %v2001_v56  ;;  %v1283_v11 = vld [vmem:[%s4580_s28 + $0x750] sm:$0xff]  ;;  %v1289_v41 = vld [vmem:[%s4580_s28 + $0x780] sm:$0xff] }
 0x1e4   : > { %v3024_v47 = vadd.f32 %v3023_v37, %v8901_v32  ;;  %v3064_v12 = vadd.f32 %v3063_v50, %v2013_v35  ;;  %v2027_v33 = vunpack.c.l.bf16 %v1282_v2  ;;  %v8903_v32 = vunpack.c.h.bf16 %v6229_v20  ;;  %v6333_v35 = vld [vmem:[%s4580_s28 + $0x758] sm:$0xff] }
 0x1e5   : > { %v3038_v1 = vadd.f32 %v3037_v44, %v8902_v48  ;;  %v3052_v48 = vadd.f32 %v3051_v3, %v2002_v63  ;;  %4264 = vrcp.f32 %v794_v52  ;;  %v3078_v37 = vadd.f32 %v2026_v7, %v2025_v34  ;;  %v6342_v63 = vld [vmem:[%s4580_s28 + $0x760] sm:$0xff] }
 0x1e6   : > { %3025 = vadd.xlane.f32.xlu1 %v3024_v47  ;;  %v3065_v56 = vadd.f32 %v3064_v12, %v2014_v59  ;;  %4266 = vrcp.f32 %v797_v57  ;;  %v2028_v47 = vunpack.c.h.bf16 %v1282_v2  ;;  %v8904_v60 = vunpack.c.l.bf16 %v6237_v13  ;;  %v6345_v59 = vld [vmem:[%s4580_s28 + $0x768] sm:$0xff] }
 0x1e7   : > { %v3039_v44 = vadd.f32 %v3038_v1, %v8903_v32  ;;  %v8905_v20 = vunpack.c.l.bf16 %v6261_v38  ;;  %v2029_v52 = vunpack.c.l.bf16 %v1283_v11  ;;  %v2030_v3 = vunpack.c.h.bf16 %v1283_v11  ;;  %v1290_v2 = vld [vmem:[%s4580_s28 + $0x788] sm:$0xff] }
 0x1e8   : > { %v3066_v1 = vadd.f32 %v3065_v56, %v2015_v9  ;;  %v2031_v12 = vunpack.c.l.bf16 %v6333_v35  ;;  %v3079_v57 = vadd.f32 %v3078_v37, %v2027_v33  ;;  %v2041_v7 = vunpack.c.l.bf16 %v1289_v41 }
 0x1e9   : > { %v3040_v30 = vadd.f32 %v3039_v44, %v8904_v60  ;;  %v3053_v43 = vadd.f32 %v3052_v48, %v8905_v20  ;;  %v8906_v34 = vunpack.c.h.bf16 %v6237_v13  ;;  %v8907_v32 = vunpack.c.h.bf16 %v6261_v38  ;;  %v6354_v48 = vld [vmem:[%s4580_s28 + $0x770] sm:$0xff]  ;;  %v6362_v38 = vld [vmem:[%s4580_s28 + $0x778] sm:$0xff] }
 0x1ea   : > { %v3067_v9 = vadd.f32 %v3066_v1, %v2016_v27  ;;  %v2042_v56 = vunpack.c.h.bf16 %v1289_v41  ;;  %v2032_v20 = vunpack.c.h.bf16 %v6333_v35  ;;  %v2033_v11 = vunpack.c.l.bf16 %v6342_v63  ;;  %v6399_v27 = vld [vmem:[%s4580_s28 + $0x7b0] sm:$0xff] }
 0x1eb   : > { %v3041_v60 = vadd.f32 %v3040_v30, %v8906_v34  ;;  %v3054_v44 = vadd.f32 %v3053_v43, %v8907_v32  ;;  %v3080_v33 = vadd.f32 %v3079_v57, %v2028_v47  ;;  %v8908_v50 = vunpack.c.l.bf16 %v6268_v45  ;;  %v1291_v43 = vld [vmem:[%s4580_s28 + $0x790] sm:$0xff] }
 0x1ec   : > { %v3068_v30 = vadd.f32 %v3067_v9, %v2017_v46  ;;  %v2043_v41 = vunpack.c.l.bf16 %v1290_v2  ;;  %v8909_v57 = vunpack.c.h.bf16 %v6268_v45  ;;  %v6372_v46 = vld [vmem:[%s4580_s28 + $0x798] sm:$0xff]  ;;  %v2044_v32 = vunpack.c.h.bf16 %v1290_v2  ;;  %v1297_v9 = vld [vmem:[%s4580_s28 + $0x7c0] sm:$0xff]  ;;  %v6387_v2 = vld [vmem:[%s4580_s28 + $0x7a8] sm:$0xff] }
 0x1ed   : > { %3042 = vadd.xlane.f32.xlu0 %v3041_v60  ;;  %v3055_v13 = vadd.f32 %v3054_v44, %v8908_v50  ;;  %v3081_v47 = vadd.f32 %v3080_v33, %v2029_v52  ;;  %v3095_v44 = vadd.f32 %v2042_v56, %v2041_v7  ;;  %v2045_v37 = vunpack.c.l.bf16 %v1291_v43  ;;  %v6384_v33 = vld [vmem:[%s4580_s28 + $0x7a0] sm:$0xff] }
 0x1ee   : > { %v3069_v50 = vadd.f32 %v3068_v30, %v2018_v6  ;;  %v8911_v52 = vunpack.c.l.bf16 %v6276_v42  ;;  %v2046_v7 = vunpack.c.h.bf16 %v1291_v43  ;;  %v2057_v35 = vunpack.c.l.bf16 %v1297_v9 }
 0x1ef   : > { %v3056_v60 = vadd.f32 %v3055_v13, %v8909_v57  ;;  %v3082_v1 = vadd.f32 %v3081_v47, %v2030_v3  ;;  %v6377_v34 = vpop.eup %4264  ;;  %v3096_v56 = vadd.f32 %v3095_v44, %v2043_v41  ;;  %v2047_v3 = vunpack.c.l.bf16 %v6372_v46  ;;  %v1298_v57 = vld [vmem:[%s4580_s28 + $0x7c8] sm:$0xff]  ;;  %v800_v41 = vpop.xlane.xlu1 %799 }
 0x1f0   : > { %8910 = vst [vmem:[#allocation72_spill] sm:$0xff] %v6377_v34  ;;  %v3070_v6 = vadd.f32 %v3069_v50, %v2019_v58  ;;  %v6389_v13 = vpop.eup %4266  ;;  %v2048_v47 = vunpack.c.h.bf16 %v6372_v46  ;;  %v8914_v58 = vunpack.c.h.bf16 %v6300_v40  ;;  %v2058_v44 = vunpack.c.h.bf16 %v1297_v9  ;;  %v6407_v40 = vld [vmem:[%s4580_s28 + $0x7b8] sm:$0xff]  ;;  %v803_v9 = vpop.xlane.xlu0 %802 }
 0x1f1   : > { %v3057_v45 = vadd.f32 %v3056_v60, %v8911_v52  ;;  %8912 = vst [vmem:[#allocation73_spill] sm:$0xff] %v6389_v13  ;;  %v3083_v30 = vadd.f32 %v3082_v1, %v2031_v12  ;;  %v8913_v60 = vunpack.c.h.bf16 %v6276_v42  ;;  %v3097_v43 = vadd.f32 %v3096_v56, %v2044_v32 }
 0x1f2   : > { %v3071_v50 = vadd.f32 %v3070_v6, %v8914_v58  ;;  %v2049_v1 = vunpack.c.l.bf16 %v6384_v33  ;;  %v2050_v13 = vunpack.c.h.bf16 %v6384_v33  ;;  %v8915_v42 = vunpack.c.l.bf16 %v6313_v10  ;;  %v6431_v33 = vld [vmem:[%s4580_s28 + $0x7e8] sm:$0xff] }
 0x1f3   : > { %v3058_v52 = vadd.f32 %v3057_v45, %v8913_v60  ;;  %v3084_v12 = vadd.f32 %v3083_v30, %v2032_v20  ;;  %v3098_v6 = vadd.f32 %v3097_v43, %v2045_v37  ;;  %v2059_v56 = vunpack.c.l.bf16 %v1298_v57  ;;  %v1299_v60 = vld [vmem:[%s4580_s28 + $0x7d0] sm:$0xff]  ;;  %v1305_v43 = vld [vmem:[%s4580_s28 + $0x800] sm:$0xff] }
 0x1f4   : > { %v3072_v45 = vadd.f32 %v3071_v50, %v8915_v42  ;;  %4268 = vrcp.f32 %v800_v41  ;;  %v6416_v42 = vld [vmem:[%s4580_s28 + $0x7d8] sm:$0xff]  ;;  %v2060_v46 = vunpack.c.h.bf16 %v1298_v57  ;;  %v3112_v37 = vadd.f32 %v2058_v44, %v2057_v35 }
 0x1f5   : > { %3059 = vadd.xlane.f32.xlu1 %v3058_v52  ;;  %v3085_v20 = vadd.f32 %v3084_v12, %v2033_v11  ;;  %v8916_v52 = vunpack.c.h.bf16 %v6313_v10  ;;  %v3099_v50 = vadd.f32 %v3098_v6, %v2046_v7  ;;  %v8917_v11 = vunpack.c.h.bf16 %v6342_v63  ;;  %v6426_v7 = vld [vmem:[%s4580_s28 + $0x7e0] sm:$0xff] }
 0x1f6   : > { %4270 = vrcp.f32 %v803_v9  ;;  %v8918_v10 = vunpack.c.l.bf16 %v6316_v23  ;;  %v2061_v6 = vunpack.c.l.bf16 %v1299_v60  ;;  %v3113_v57 = vadd.f32 %v3112_v37, %v2059_v56 }
 0x1f7   : > { %v3073_v58 = vadd.f32 %v3072_v45, %v8916_v52  ;;  %v3086_v12 = vadd.f32 %v3085_v20, %v8917_v11  ;;  %v3100_v52 = vadd.f32 %v3099_v50, %v2047_v3  ;;  %v8919_v35 = vunpack.c.l.bf16 %v6345_v59  ;;  %v1306_v11 = vld [vmem:[%s4580_s28 + $0x808] sm:$0xff]  ;;  %v6438_v50 = vld [vmem:[%s4580_s28 + $0x7f0] sm:$0xff] }
 0x1f8   : > { %v2062_v63 = vunpack.c.h.bf16 %v1299_v60  ;;  %v2063_v20 = vunpack.c.l.bf16 %v6416_v42  ;;  %v2073_v9 = vunpack.c.l.bf16 %v1305_v43  ;;  %v8920_v41 = vunpack.c.h.bf16 %v6316_v23  ;;  %v6446_v23 = vld [vmem:[%s4580_s28 + $0x7f8] sm:$0xff] }
 0x1f9   : > { %v3074_v45 = vadd.f32 %v3073_v58, %v8918_v10  ;;  %v3087_v44 = vadd.f32 %v3086_v12, %v8919_v35  ;;  %v3101_v3 = vadd.f32 %v3100_v52, %v2048_v47  ;;  %v3114_v10 = vadd.f32 %v3113_v57, %v2060_v46  ;;  %v1307_v46 = vld [vmem:[%s4580_s28 + $0x810] sm:$0xff]  ;;  %v6470_v57 = vld [vmem:[%s4580_s28 + $0x828] sm:$0xff] }
 0x1fa   : > { %v2074_v56 = vunpack.c.h.bf16 %v1305_v43  ;;  %v8921_v37 = vunpack.c.h.bf16 %v6345_v59  ;;  %v2064_v35 = vunpack.c.h.bf16 %v6416_v42  ;;  %v2065_v60 = vunpack.c.l.bf16 %v6426_v7  ;;  %v1314_v47 = vld [vmem:[%s4580_s28 + $0x848] sm:$0xff] }
 0x1fb   : > { %v3075_v58 = vadd.f32 %v3074_v45, %v8920_v41  ;;  %v2066_v30 = vunpack.c.h.bf16 %v6426_v7  ;;  %v3102_v32 = vadd.f32 %v3101_v3, %v2049_v1  ;;  %v3115_v41 = vadd.f32 %v3114_v10, %v2061_v6 }
 0x1fc   : > { %v3088_v12 = vadd.f32 %v3087_v44, %v8921_v37  ;;  %v2075_v43 = vunpack.c.l.bf16 %v1306_v11  ;;  %v8922_v59 = vunpack.c.l.bf16 %v6354_v48  ;;  %v6456_v44 = vld [vmem:[%s4580_s28 + $0x818] sm:$0xff]  ;;  %v2076_v6 = vunpack.c.h.bf16 %v1306_v11 }
 0x1fd   : > { %3076 = vadd.xlane.f32.xlu0 %v3075_v58  ;;  %v3103_v7 = vadd.f32 %v3102_v32, %v2050_v13  ;;  %v3116_v1 = vadd.f32 %v3115_v41, %v2062_v63  ;;  %v6459_v58 = vld [vmem:[%s4580_s28 + $0x820] sm:$0xff]  ;;  %v3129_v3 = vadd.f32 %v2074_v56, %v2073_v9  ;;  %v8924_v37 = vunpack.c.h.bf16 %v6354_v48 }
 0x1fe   : > { %v3089_v45 = vadd.f32 %v3088_v12, %v8922_v59  ;;  %v6461_v10 = vpop.eup %4268  ;;  %v2077_v13 = vunpack.c.l.bf16 %v1307_v46  ;;  %v8925_v32 = vunpack.c.l.bf16 %v6387_v2  ;;  %v2078_v11 = vunpack.c.h.bf16 %v1307_v46  ;;  %v1313_v56 = vld [vmem:[%s4580_s28 + $0x840] sm:$0xff]  ;;  %v6486_v46 = vld [vmem:[%s4580_s28 + $0x838] sm:$0xff] }
 0x1ff   : > { %8923 = vst [vmem:[#allocation74_spill] sm:$0xff] %v6461_v10  ;;  %v3117_v41 = vadd.f32 %v3116_v1, %v2063_v20  ;;  %v3130_v9 = vadd.f32 %v3129_v3, %v2075_v43  ;;  %v8927_v48 = vunpack.c.l.bf16 %v6362_v38  ;;  %v2080_v52 = vunpack.c.h.bf16 %v6456_v44 }
 0x200   : > { %v3090_v12 = vadd.f32 %v3089_v45, %v8924_v37  ;;  %v3104_v63 = vadd.f32 %v3103_v7, %v8925_v32  ;;  %v6473_v42 = vpop.eup %4270  ;;  %v2079_v37 = vunpack.c.l.bf16 %v6456_v44  ;;  %v2081_v59 = vunpack.c.l.bf16 %v6459_v58  ;;  %v6483_v32 = vld [vmem:[%s4580_s28 + $0x830] sm:$0xff] }
 0x201   : > { %8926 = vst [vmem:[#allocation75_spill] sm:$0xff] %v6473_v42  ;;  %v8928_v7 = vunpack.c.h.bf16 %v6387_v2  ;;  %v3118_v1 = vadd.f32 %v3117_v41, %v2064_v35  ;;  %v2082_v43 = vunpack.c.h.bf16 %v6459_v58  ;;  %v3131_v3 = vadd.f32 %v3130_v9, %v2076_v6  ;;  %v806_v42 = vpop.xlane.xlu1 %805  ;;  %v809_v6 = vpop.xlane.xlu0 %808 }
 0x202   : > { %v3091_v45 = vadd.f32 %v3090_v12, %v8927_v48  ;;  %v8929_v12 = vunpack.c.h.bf16 %v6362_v38  ;;  %v2083_v44 = vunpack.c.l.bf16 %v6470_v57  ;;  %v2089_v10 = vunpack.c.l.bf16 %v1313_v56 }
 0x203   : > { %v3105_v20 = vadd.f32 %v3104_v63, %v8928_v7  ;;  %v2090_v34 = vunpack.c.h.bf16 %v1313_v56  ;;  %v8930_v2 = vunpack.c.l.bf16 %v6399_v27  ;;  %v3119_v63 = vadd.f32 %v3118_v1, %v2065_v60  ;;  %v1315_v7 = vld [vmem:[%s4580_s28 + $0x850] sm:$0xff]  ;;  %v1321_v1 = vld [vmem:[%s4580_s28 + $0x880] sm:$0xff] }
 0x204   : > { %v3092_v48 = vadd.f32 %v3091_v45, %v8929_v12  ;;  %v3132_v58 = vadd.f32 %v3131_v3, %v2077_v13  ;;  %v2091_v56 = vunpack.c.l.bf16 %v1314_v47  ;;  %v8931_v12 = vunpack.c.h.bf16 %v6399_v27  ;;  %v6503_v13 = vld [vmem:[%s4580_s28 + $0x858] sm:$0xff] }
 0x205   : > { %v3106_v35 = vadd.f32 %v3105_v20, %v8930_v2  ;;  %v3120_v2 = vadd.f32 %v3119_v63, %v2066_v30  ;;  %4272 = vrcp.f32 %v806_v42  ;;  %v3146_v45 = vadd.f32 %v2090_v34, %v2089_v10  ;;  %v6512_v30 = vld [vmem:[%s4580_s28 + $0x860] sm:$0xff] }
 0x206   : > { %3093 = vadd.xlane.f32.xlu1 %v3092_v48  ;;  %v3133_v60 = vadd.f32 %v3132_v58, %v2078_v11  ;;  %4274 = vrcp.f32 %v809_v6  ;;  %v2092_v48 = vunpack.c.h.bf16 %v1314_v47  ;;  %v8932_v38 = vunpack.c.l.bf16 %v6407_v40  ;;  %v6515_v11 = vld [vmem:[%s4580_s28 + $0x868] sm:$0xff] }
 0x207   : > { %v3107_v20 = vadd.f32 %v3106_v35, %v8931_v12  ;;  %v8933_v27 = vunpack.c.l.bf16 %v6431_v33  ;;  %v2093_v42 = vunpack.c.l.bf16 %v1315_v7  ;;  %v2094_v63 = vunpack.c.h.bf16 %v1315_v7  ;;  %v1322_v47 = vld [vmem:[%s4580_s28 + $0x888] sm:$0xff] }
 0x208   : > { %v3134_v35 = vadd.f32 %v3133_v60, %v2079_v37  ;;  %v2095_v58 = vunpack.c.l.bf16 %v6503_v13  ;;  %v3147_v6 = vadd.f32 %v3146_v45, %v2091_v56  ;;  %v2105_v34 = vunpack.c.l.bf16 %v1321_v1 }
 0x209   : > { %v3108_v9 = vadd.f32 %v3107_v20, %v8932_v38  ;;  %v3121_v41 = vadd.f32 %v3120_v2, %v8933_v27  ;;  %v8934_v10 = vunpack.c.h.bf16 %v6407_v40  ;;  %v8935_v12 = vunpack.c.h.bf16 %v6431_v33  ;;  %v6524_v2 = vld [vmem:[%s4580_s28 + $0x870] sm:$0xff]  ;;  %v6532_v33 = vld [vmem:[%s4580_s28 + $0x878] sm:$0xff] }
 0x20a   : > { %v3135_v37 = vadd.f32 %v3134_v35, %v2080_v52  ;;  %v2106_v60 = vunpack.c.h.bf16 %v1321_v1  ;;  %v2096_v27 = vunpack.c.h.bf16 %v6503_v13  ;;  %v2097_v7 = vunpack.c.l.bf16 %v6512_v30  ;;  %v6569_v52 = vld [vmem:[%s4580_s28 + $0x8b0] sm:$0xff] }
 0x20b   : > { %v3109_v38 = vadd.f32 %v3108_v9, %v8934_v10  ;;  %v3122_v20 = vadd.f32 %v3121_v41, %v8935_v12  ;;  %v3148_v56 = vadd.f32 %v3147_v6, %v2092_v48  ;;  %v8936_v3 = vunpack.c.l.bf16 %v6438_v50  ;;  %v1323_v41 = vld [vmem:[%s4580_s28 + $0x890] sm:$0xff] }
 0x20c   : > { %v3136_v9 = vadd.f32 %v3135_v37, %v2081_v59  ;;  %v2107_v1 = vunpack.c.l.bf16 %v1322_v47  ;;  %v8937_v6 = vunpack.c.h.bf16 %v6438_v50  ;;  %v6542_v59 = vld [vmem:[%s4580_s28 + $0x898] sm:$0xff]  ;;  %v2108_v12 = vunpack.c.h.bf16 %v1322_v47  ;;  %v1329_v37 = vld [vmem:[%s4580_s28 + $0x8c0] sm:$0xff]  ;;  %v6557_v47 = vld [vmem:[%s4580_s28 + $0x8a8] sm:$0xff] }
 0x20d   : > { %3110 = vadd.xlane.f32.xlu0 %v3109_v38  ;;  %v3123_v40 = vadd.f32 %v3122_v20, %v8936_v3  ;;  %v3149_v48 = vadd.f32 %v3148_v56, %v2093_v42  ;;  %v3163_v20 = vadd.f32 %v2106_v60, %v2105_v34  ;;  %v2109_v45 = vunpack.c.l.bf16 %v1323_v41  ;;  %v6554_v56 = vld [vmem:[%s4580_s28 + $0x8a0] sm:$0xff] }
 0x20e   : > { %v3137_v3 = vadd.f32 %v3136_v9, %v2082_v43  ;;  %v8939_v42 = vunpack.c.l.bf16 %v6446_v23  ;;  %v2110_v34 = vunpack.c.h.bf16 %v1323_v41  ;;  %v2121_v13 = vunpack.c.l.bf16 %v1329_v37 }
 0x20f   : > { %v3124_v38 = vadd.f32 %v3123_v40, %v8937_v6  ;;  %v3150_v35 = vadd.f32 %v3149_v48, %v2094_v63  ;;  %v6547_v10 = vpop.eup %4272  ;;  %v3164_v60 = vadd.f32 %v3163_v20, %v2107_v1  ;;  %v2111_v63 = vunpack.c.l.bf16 %v6542_v59  ;;  %v1330_v6 = vld [vmem:[%s4580_s28 + $0x8c8] sm:$0xff]  ;;  %v812_v1 = vpop.xlane.xlu1 %811 }
 0x210   : > { %8938 = vst [vmem:[#allocation76_spill] sm:$0xff] %v6547_v10  ;;  %v3138_v43 = vadd.f32 %v3137_v3, %v2083_v44  ;;  %v6559_v40 = vpop.eup %4274  ;;  %v2112_v48 = vunpack.c.h.bf16 %v6542_v59  ;;  %v8942_v44 = vunpack.c.h.bf16 %v6470_v57  ;;  %v2122_v20 = vunpack.c.h.bf16 %v1329_v37  ;;  %v6577_v57 = vld [vmem:[%s4580_s28 + $0x8b8] sm:$0xff]  ;;  %v815_v37 = vpop.xlane.xlu0 %814 }
 0x211   : > { %v3125_v50 = vadd.f32 %v3124_v38, %v8939_v42  ;;  %8940 = vst [vmem:[#allocation77_spill] sm:$0xff] %v6559_v40  ;;  %v3151_v9 = vadd.f32 %v3150_v35, %v2095_v58  ;;  %v8941_v38 = vunpack.c.h.bf16 %v6446_v23  ;;  %v3165_v41 = vadd.f32 %v3164_v60, %v2108_v12 }
 0x212   : > { %v3139_v3 = vadd.f32 %v3138_v43, %v8942_v44  ;;  %v2113_v35 = vunpack.c.l.bf16 %v6554_v56  ;;  %v2114_v40 = vunpack.c.h.bf16 %v6554_v56  ;;  %v8943_v23 = vunpack.c.l.bf16 %v6483_v32  ;;  %v6601_v56 = vld [vmem:[%s4580_s28 + $0x8e8] sm:$0xff] }
 0x213   : > { %v3126_v42 = vadd.f32 %v3125_v50, %v8941_v38  ;;  %v3152_v58 = vadd.f32 %v3151_v9, %v2096_v27  ;;  %v3166_v43 = vadd.f32 %v3165_v41, %v2109_v45  ;;  %v2123_v60 = vunpack.c.l.bf16 %v1330_v6  ;;  %v1331_v38 = vld [vmem:[%s4580_s28 + $0x8d0] sm:$0xff]  ;;  %v1337_v41 = vld [vmem:[%s4580_s28 + $0x900] sm:$0xff] }
 0x214   : > { %v3140_v50 = vadd.f32 %v3139_v3, %v8943_v23  ;;  %4276 = vrcp.f32 %v812_v1  ;;  %v6586_v23 = vld [vmem:[%s4580_s28 + $0x8d8] sm:$0xff]  ;;  %v2124_v59 = vunpack.c.h.bf16 %v1330_v6  ;;  %v3180_v45 = vadd.f32 %v2122_v20, %v2121_v13 }
 0x215   : > { %3127 = vadd.xlane.f32.xlu1 %v3126_v42  ;;  %v3153_v27 = vadd.f32 %v3152_v58, %v2097_v7  ;;  %v8944_v42 = vunpack.c.h.bf16 %v6483_v32  ;;  %v3167_v3 = vadd.f32 %v3166_v43, %v2110_v34  ;;  %v8945_v7 = vunpack.c.h.bf16 %v6512_v30  ;;  %v6596_v34 = vld [vmem:[%s4580_s28 + $0x8e0] sm:$0xff] }
 0x216   : > { %4278 = vrcp.f32 %v815_v37  ;;  %v8946_v32 = vunpack.c.l.bf16 %v6486_v46  ;;  %v2125_v43 = vunpack.c.l.bf16 %v1331_v38  ;;  %v3181_v6 = vadd.f32 %v3180_v45, %v2123_v60 }
 0x217   : > { %v3141_v44 = vadd.f32 %v3140_v50, %v8944_v42  ;;  %v3154_v58 = vadd.f32 %v3153_v27, %v8945_v7  ;;  %v3168_v42 = vadd.f32 %v3167_v3, %v2111_v63  ;;  %v8947_v13 = vunpack.c.l.bf16 %v6515_v11  ;;  %v1338_v7 = vld [vmem:[%s4580_s28 + $0x908] sm:$0xff]  ;;  %v6608_v3 = vld [vmem:[%s4580_s28 + $0x8f0] sm:$0xff] }
 0x218   : > { %v2126_v30 = vunpack.c.h.bf16 %v1331_v38  ;;  %v2127_v27 = vunpack.c.l.bf16 %v6586_v23  ;;  %v2137_v37 = vunpack.c.l.bf16 %v1337_v41  ;;  %v8948_v1 = vunpack.c.h.bf16 %v6486_v46  ;;  %v6616_v46 = vld [vmem:[%s4580_s28 + $0x8f8] sm:$0xff] }
 0x219   : > { %v3142_v50 = vadd.f32 %v3141_v44, %v8946_v32  ;;  %v3155_v20 = vadd.f32 %v3154_v58, %v8947_v13  ;;  %v3169_v63 = vadd.f32 %v3168_v42, %v2112_v48  ;;  %v3182_v32 = vadd.f32 %v3181_v6, %v2124_v59  ;;  %v1339_v59 = vld [vmem:[%s4580_s28 + $0x910] sm:$0xff]  ;;  %v6640_v6 = vld [vmem:[%s4580_s28 + $0x928] sm:$0xff] }
 0x21a   : > { %v2138_v60 = vunpack.c.h.bf16 %v1337_v41  ;;  %v8949_v45 = vunpack.c.h.bf16 %v6515_v11  ;;  %v2128_v13 = vunpack.c.h.bf16 %v6586_v23  ;;  %v2129_v38 = vunpack.c.l.bf16 %v6596_v34  ;;  %v1346_v48 = vld [vmem:[%s4580_s28 + $0x948] sm:$0xff] }
 0x21b   : > { %v3143_v44 = vadd.f32 %v3142_v50, %v8948_v1  ;;  %v2130_v9 = vunpack.c.h.bf16 %v6596_v34  ;;  %v3170_v12 = vadd.f32 %v3169_v63, %v2113_v35  ;;  %v3183_v1 = vadd.f32 %v3182_v32, %v2125_v43 }
 0x21c   : > { %v3156_v58 = vadd.f32 %v3155_v20, %v8949_v45  ;;  %v2139_v41 = vunpack.c.l.bf16 %v1338_v7  ;;  %v8950_v11 = vunpack.c.l.bf16 %v6524_v2  ;;  %v6626_v20 = vld [vmem:[%s4580_s28 + $0x918] sm:$0xff]  ;;  %v2140_v43 = vunpack.c.h.bf16 %v1338_v7 }
 0x21d   : > { %3144 = vadd.xlane.f32.xlu0 %v3143_v44  ;;  %v3171_v34 = vadd.f32 %v3170_v12, %v2114_v40  ;;  %v3184_v35 = vadd.f32 %v3183_v1, %v2126_v30  ;;  %v6629_v44 = vld [vmem:[%s4580_s28 + $0x920] sm:$0xff]  ;;  %v3197_v63 = vadd.f32 %v2138_v60, %v2137_v37  ;;  %v8952_v45 = vunpack.c.h.bf16 %v6524_v2 }
 0x21e   : > { %v3157_v50 = vadd.f32 %v3156_v58, %v8950_v11  ;;  %v6631_v32 = vpop.eup %4276  ;;  %v2141_v40 = vunpack.c.l.bf16 %v1339_v59  ;;  %v8953_v12 = vunpack.c.l.bf16 %v6557_v47  ;;  %v2142_v7 = vunpack.c.h.bf16 %v1339_v59  ;;  %v1345_v60 = vld [vmem:[%s4580_s28 + $0x940] sm:$0xff]  ;;  %v6656_v59 = vld [vmem:[%s4580_s28 + $0x938] sm:$0xff] }
 0x21f   : > { %8951 = vst [vmem:[#allocation78_spill] sm:$0xff] %v6631_v32  ;;  %v3185_v1 = vadd.f32 %v3184_v35, %v2127_v27  ;;  %v3198_v37 = vadd.f32 %v3197_v63, %v2139_v41  ;;  %v8955_v2 = vunpack.c.l.bf16 %v6532_v33  ;;  %v2144_v42 = vunpack.c.h.bf16 %v6626_v20 }
 0x220   : > { %v3158_v58 = vadd.f32 %v3157_v50, %v8952_v45  ;;  %v3172_v30 = vadd.f32 %v3171_v34, %v8953_v12  ;;  %v6643_v23 = vpop.eup %4278  ;;  %v2143_v45 = vunpack.c.l.bf16 %v6626_v20  ;;  %v2145_v11 = vunpack.c.l.bf16 %v6629_v44  ;;  %v6653_v12 = vld [vmem:[%s4580_s28 + $0x930] sm:$0xff] }
 0x221   : > { %8954 = vst [vmem:[#allocation79_spill] sm:$0xff] %v6643_v23  ;;  %v8956_v34 = vunpack.c.h.bf16 %v6557_v47  ;;  %v3186_v35 = vadd.f32 %v3185_v1, %v2128_v13  ;;  %v2146_v41 = vunpack.c.h.bf16 %v6629_v44  ;;  %v3199_v63 = vadd.f32 %v3198_v37, %v2140_v43  ;;  %v818_v23 = vpop.xlane.xlu1 %817  ;;  %v821_v43 = vpop.xlane.xlu0 %820 }
 0x222   : > { %v3159_v50 = vadd.f32 %v3158_v58, %v8955_v2  ;;  %v8957_v58 = vunpack.c.h.bf16 %v6532_v33  ;;  %v2147_v20 = vunpack.c.l.bf16 %v6640_v6  ;;  %v2153_v32 = vunpack.c.l.bf16 %v1345_v60 }
 0x223   : > { %v3173_v27 = vadd.f32 %v3172_v30, %v8956_v34  ;;  %v2154_v10 = vunpack.c.h.bf16 %v1345_v60  ;;  %v8958_v47 = vunpack.c.l.bf16 %v6569_v52  ;;  %v3187_v30 = vadd.f32 %v3186_v35, %v2129_v38  ;;  %v1347_v34 = vld [vmem:[%s4580_s28 + $0x950] sm:$0xff]  ;;  %v1353_v35 = vld [vmem:[%s4580_s28 + $0x980] sm:$0xff] }
 0x224   : > { %v3160_v2 = vadd.f32 %v3159_v50, %v8957_v58  ;;  %v3200_v44 = vadd.f32 %v3199_v63, %v2141_v40  ;;  %v2155_v60 = vunpack.c.l.bf16 %v1346_v48  ;;  %v8959_v58 = vunpack.c.h.bf16 %v6569_v52  ;;  %v6673_v40 = vld [vmem:[%s4580_s28 + $0x958] sm:$0xff] }
 0x225   : > { %v3174_v13 = vadd.f32 %v3173_v27, %v8958_v47  ;;  %v3188_v47 = vadd.f32 %v3187_v30, %v2130_v9  ;;  %4280 = vrcp.f32 %v818_v23  ;;  %v3214_v50 = vadd.f32 %v2154_v10, %v2153_v32  ;;  %v6682_v9 = vld [vmem:[%s4580_s28 + $0x960] sm:$0xff] }
 0x226   : > { %3161 = vadd.xlane.f32.xlu1 %v3160_v2  ;;  %v3201_v38 = vadd.f32 %v3200_v44, %v2142_v7  ;;  %4282 = vrcp.f32 %v821_v43  ;;  %v2156_v2 = vunpack.c.h.bf16 %v1346_v48  ;;  %v8960_v33 = vunpack.c.l.bf16 %v6577_v57  ;;  %v6685_v7 = vld [vmem:[%s4580_s28 + $0x968] sm:$0xff] }
 0x227   : > { %v3175_v27 = vadd.f32 %v3174_v13, %v8959_v58  ;;  %v8961_v52 = vunpack.c.l.bf16 %v6601_v56  ;;  %v2157_v23 = vunpack.c.l.bf16 %v1347_v34  ;;  %v2158_v30 = vunpack.c.h.bf16 %v1347_v34  ;;  %v1354_v48 = vld [vmem:[%s4580_s28 + $0x988] sm:$0xff] }
 0x228   : > { %v3202_v13 = vadd.f32 %v3201_v38, %v2143_v45  ;;  %v2159_v44 = vunpack.c.l.bf16 %v6673_v40  ;;  %v3215_v43 = vadd.f32 %v3214_v50, %v2155_v60  ;;  %v2169_v10 = vunpack.c.l.bf16 %v1353_v35 }
 0x229   : > { %v3176_v37 = vadd.f32 %v3175_v27, %v8960_v33  ;;  %v3189_v1 = vadd.f32 %v3188_v47, %v8961_v52  ;;  %v8962_v32 = vunpack.c.h.bf16 %v6577_v57  ;;  %v8963_v58 = vunpack.c.h.bf16 %v6601_v56  ;;  %v6694_v47 = vld [vmem:[%s4580_s28 + $0x970] sm:$0xff]  ;;  %v6702_v56 = vld [vmem:[%s4580_s28 + $0x978] sm:$0xff] }
 0x22a   : > { %v3203_v45 = vadd.f32 %v3202_v13, %v2144_v42  ;;  %v2170_v38 = vunpack.c.h.bf16 %v1353_v35  ;;  %v2160_v52 = vunpack.c.h.bf16 %v6673_v40  ;;  %v2161_v34 = vunpack.c.l.bf16 %v6682_v9  ;;  %v6739_v42 = vld [vmem:[%s4580_s28 + $0x9b0] sm:$0xff] }
 0x22b   : > { %v3177_v33 = vadd.f32 %v3176_v37, %v8962_v32  ;;  %v3190_v27 = vadd.f32 %v3189_v1, %v8963_v58  ;;  %v3216_v60 = vadd.f32 %v3215_v43, %v2156_v2  ;;  %v8964_v63 = vunpack.c.l.bf16 %v6608_v3  ;;  %v1355_v1 = vld [vmem:[%s4580_s28 + $0x990] sm:$0xff] }
 0x22c   : > { %v3204_v37 = vadd.f32 %v3203_v45, %v2145_v11  ;;  %v2171_v35 = vunpack.c.l.bf16 %v1354_v48  ;;  %v8965_v43 = vunpack.c.h.bf16 %v6608_v3  ;;  %v6712_v11 = vld [vmem:[%s4580_s28 + $0x998] sm:$0xff]  ;;  %v2172_v58 = vunpack.c.h.bf16 %v1354_v48  ;;  %v1361_v45 = vld [vmem:[%s4580_s28 + $0x9c0] sm:$0xff]  ;;  %v6727_v48 = vld [vmem:[%s4580_s28 + $0x9a8] sm:$0xff] }
 0x22d   : > { %3178 = vadd.xlane.f32.xlu0 %v3177_v33  ;;  %v3191_v57 = vadd.f32 %v3190_v27, %v8964_v63  ;;  %v3217_v2 = vadd.f32 %v3216_v60, %v2157_v23  ;;  %v3231_v27 = vadd.f32 %v2170_v38, %v2169_v10  ;;  %v2173_v50 = vunpack.c.l.bf16 %v1355_v1  ;;  %v6724_v60 = vld [vmem:[%s4580_s28 + $0x9a0] sm:$0xff] }
 0x22e   : > { %v3205_v63 = vadd.f32 %v3204_v37, %v2146_v41  ;;  %v8967_v23 = vunpack.c.l.bf16 %v6616_v46  ;;  %v2174_v10 = vunpack.c.h.bf16 %v1355_v1  ;;  %v2185_v40 = vunpack.c.l.bf16 %v1361_v45 }
 0x22f   : > { %v3192_v33 = vadd.f32 %v3191_v57, %v8965_v43  ;;  %v3218_v13 = vadd.f32 %v3217_v2, %v2158_v30  ;;  %v6717_v32 = vpop.eup %4280  ;;  %v3232_v38 = vadd.f32 %v3231_v27, %v2171_v35  ;;  %v2175_v30 = vunpack.c.l.bf16 %v6712_v11  ;;  %v1362_v43 = vld [vmem:[%s4580_s28 + $0x9c8] sm:$0xff]  ;;  %v824_v35 = vpop.xlane.xlu1 %823 }
 0x230   : > { %8966 = vst [vmem:[#allocation80_spill] sm:$0xff] %v6717_v32  ;;  %v3206_v41 = vadd.f32 %v3205_v63, %v2147_v20  ;;  %v6729_v57 = vpop.eup %4282  ;;  %v2176_v2 = vunpack.c.h.bf16 %v6712_v11  ;;  %v8970_v20 = vunpack.c.h.bf16 %v6640_v6  ;;  %v2186_v27 = vunpack.c.h.bf16 %v1361_v45  ;;  %v6747_v6 = vld [vmem:[%s4580_s28 + $0x9b8] sm:$0xff]  ;;  %v827_v45 = vpop.xlane.xlu0 %826 }
 0x231   : > { %v3193_v3 = vadd.f32 %v3192_v33, %v8967_v23  ;;  %8968 = vst [vmem:[#allocation81_spill] sm:$0xff] %v6729_v57  ;;  %v3219_v37 = vadd.f32 %v3218_v13, %v2159_v44  ;;  %v8969_v33 = vunpack.c.h.bf16 %v6616_v46  ;;  %v3233_v1 = vadd.f32 %v3232_v38, %v2172_v58 }
 0x232   : > { %v3207_v63 = vadd.f32 %v3206_v41, %v8970_v20  ;;  %v2177_v13 = vunpack.c.l.bf16 %v6724_v60  ;;  %v2178_v57 = vunpack.c.h.bf16 %v6724_v60  ;;  %v8971_v46 = vunpack.c.l.bf16 %v6653_v12  ;;  %v6771_v60 = vld [vmem:[%s4580_s28 + $0x9e8] sm:$0xff] }
 0x233   : > { %v3194_v23 = vadd.f32 %v3193_v3, %v8969_v33  ;;  %v3220_v44 = vadd.f32 %v3219_v37, %v2160_v52  ;;  %v3234_v41 = vadd.f32 %v3233_v1, %v2173_v50  ;;  %v2187_v38 = vunpack.c.l.bf16 %v1362_v43  ;;  %v1363_v33 = vld [vmem:[%s4580_s28 + $0x9d0] sm:$0xff]  ;;  %v1369_v1 = vld [vmem:[%s4580_s28 + $0xa00] sm:$0xff] }
 0x234   : > { %v3208_v3 = vadd.f32 %v3207_v63, %v8971_v46  ;;  %4284 = vrcp.f32 %v824_v35  ;;  %v6756_v46 = vld [vmem:[%s4580_s28 + $0x9d8] sm:$0xff]  ;;  %v2188_v11 = vunpack.c.h.bf16 %v1362_v43  ;;  %v3248_v50 = vadd.f32 %v2186_v27, %v2185_v40 }
 0x235   : > { %3195 = vadd.xlane.f32.xlu1 %v3194_v23  ;;  %v3221_v52 = vadd.f32 %v3220_v44, %v2161_v34  ;;  %v8972_v23 = vunpack.c.h.bf16 %v6653_v12  ;;  %v3235_v63 = vadd.f32 %v3234_v41, %v2174_v10  ;;  %v8973_v34 = vunpack.c.h.bf16 %v6682_v9  ;;  %v6766_v10 = vld [vmem:[%s4580_s28 + $0x9e0] sm:$0xff] }
 0x236   : > { %4286 = vrcp.f32 %v827_v45  ;;  %v8974_v12 = vunpack.c.l.bf16 %v6656_v59  ;;  %v2189_v41 = vunpack.c.l.bf16 %v1363_v33  ;;  %v3249_v43 = vadd.f32 %v3248_v50, %v2187_v38 }
 0x237   : > { %v3209_v20 = vadd.f32 %v3208_v3, %v8972_v23  ;;  %v3222_v44 = vadd.f32 %v3221_v52, %v8973_v34  ;;  %v3236_v23 = vadd.f32 %v3235_v63, %v2175_v30  ;;  %v8975_v40 = vunpack.c.l.bf16 %v6685_v7  ;;  %v1370_v34 = vld [vmem:[%s4580_s28 + $0xa08] sm:$0xff]  ;;  %v6778_v63 = vld [vmem:[%s4580_s28 + $0x9f0] sm:$0xff] }
 0x238   : > { %v2190_v9 = vunpack.c.h.bf16 %v1363_v33  ;;  %v2191_v52 = vunpack.c.l.bf16 %v6756_v46  ;;  %v2201_v45 = vunpack.c.l.bf16 %v1369_v1  ;;  %v8976_v35 = vunpack.c.h.bf16 %v6656_v59  ;;  %v6786_v59 = vld [vmem:[%s4580_s28 + $0x9f8] sm:$0xff] }
 0x239   : > { %v3210_v3 = vadd.f32 %v3209_v20, %v8974_v12  ;;  %v3223_v27 = vadd.f32 %v3222_v44, %v8975_v40  ;;  %v3237_v30 = vadd.f32 %v3236_v23, %v2176_v2  ;;  %v3250_v12 = vadd.f32 %v3249_v43, %v2188_v11  ;;  %v1371_v11 = vld [vmem:[%s4580_s28 + $0xa10] sm:$0xff]  ;;  %v6810_v43 = vld [vmem:[%s4580_s28 + $0xa28] sm:$0xff] }
 0x23a   : > { %v2202_v38 = vunpack.c.h.bf16 %v1369_v1  ;;  %v8977_v50 = vunpack.c.h.bf16 %v6685_v7  ;;  %v2192_v40 = vunpack.c.h.bf16 %v6756_v46  ;;  %v2193_v33 = vunpack.c.l.bf16 %v6766_v10  ;;  %v1378_v2 = vld [vmem:[%s4580_s28 + $0xa48] sm:$0xff] }
 0x23b   : > { %v3211_v20 = vadd.f32 %v3210_v3, %v8976_v35  ;;  %v2194_v37 = vunpack.c.h.bf16 %v6766_v10  ;;  %v3238_v58 = vadd.f32 %v3237_v30, %v2177_v13  ;;  %v3251_v35 = vadd.f32 %v3250_v12, %v2189_v41 }
 0x23c   : > { %v3224_v44 = vadd.f32 %v3223_v27, %v8977_v50  ;;  %v2203_v1 = vunpack.c.l.bf16 %v1370_v34  ;;  %v8978_v7 = vunpack.c.l.bf16 %v6694_v47  ;;  %v6796_v27 = vld [vmem:[%s4580_s28 + $0xa18] sm:$0xff]  ;;  %v2204_v41 = vunpack.c.h.bf16 %v1370_v34 }
 0x23d   : > { %3212 = vadd.xlane.f32.xlu0 %v3211_v20  ;;  %v3239_v10 = vadd.f32 %v3238_v58, %v2178_v57  ;;  %v3252_v13 = vadd.f32 %v3251_v35, %v2190_v9  ;;  %v6799_v20 = vld [vmem:[%s4580_s28 + $0xa20] sm:$0xff]  ;;  %v3265_v30 = vadd.f32 %v2202_v38, %v2201_v45  ;;  %v8980_v50 = vunpack.c.h.bf16 %v6694_v47 }
 0x23e   : > { %v3225_v3 = vadd.f32 %v3224_v44, %v8978_v7  ;;  %v6801_v12 = vpop.eup %4284  ;;  %v2205_v57 = vunpack.c.l.bf16 %v1371_v11  ;;  %v8981_v58 = vunpack.c.l.bf16 %v6727_v48  ;;  %v2206_v34 = vunpack.c.h.bf16 %v1371_v11  ;;  %v1377_v38 = vld [vmem:[%s4580_s28 + $0xa40] sm:$0xff]  ;;  %v6826_v11 = vld [vmem:[%s4580_s28 + $0xa38] sm:$0xff] }
 0x23f   : > { %8979 = vst [vmem:[#allocation82_spill] sm:$0xff] %v6801_v12  ;;  %v3253_v35 = vadd.f32 %v3252_v13, %v2191_v52  ;;  %v3266_v45 = vadd.f32 %v3265_v30, %v2203_v1  ;;  %v8983_v47 = vunpack.c.l.bf16 %v6702_v56  ;;  %v2208_v23 = vunpack.c.h.bf16 %v6796_v27 }
 0x240   : > { %v3226_v44 = vadd.f32 %v3225_v3, %v8980_v50  ;;  %v3240_v9 = vadd.f32 %v3239_v10, %v8981_v58  ;;  %v6813_v46 = vpop.eup %4286  ;;  %v2207_v50 = vunpack.c.l.bf16 %v6796_v27  ;;  %v2209_v7 = vunpack.c.l.bf16 %v6799_v20  ;;  %v6823_v58 = vld [vmem:[%s4580_s28 + $0xa30] sm:$0xff] }
 0x241   : > { %8982 = vst [vmem:[#allocation83_spill] sm:$0xff] %v6813_v46  ;;  %v8984_v10 = vunpack.c.h.bf16 %v6727_v48  ;;  %v3254_v13 = vadd.f32 %v3253_v35, %v2192_v40  ;;  %v2210_v1 = vunpack.c.h.bf16 %v6799_v20  ;;  %v3267_v30 = vadd.f32 %v3266_v45, %v2204_v41  ;;  %v830_v46 = vpop.xlane.xlu1 %829  ;;  %v833_v41 = vpop.xlane.xlu0 %832 }
 0x242   : > { %v3227_v3 = vadd.f32 %v3226_v44, %v8983_v47  ;;  %v8985_v44 = vunpack.c.h.bf16 %v6702_v56  ;;  %v2211_v27 = vunpack.c.l.bf16 %v6810_v43  ;;  %v2217_v12 = vunpack.c.l.bf16 %v1377_v38 }
 0x243   : > { %v3241_v52 = vadd.f32 %v3240_v9, %v8984_v10  ;;  %v2218_v32 = vunpack.c.h.bf16 %v1377_v38  ;;  %v8986_v48 = vunpack.c.l.bf16 %v6739_v42  ;;  %v3255_v9 = vadd.f32 %v3254_v13, %v2193_v33  ;;  %v1379_v10 = vld [vmem:[%s4580_s28 + $0xa50] sm:$0xff]  ;;  %v1385_v13 = vld [vmem:[%s4580_s28 + $0xa80] sm:$0xff] }
 0x244   : > { %v3228_v47 = vadd.f32 %v3227_v3, %v8985_v44  ;;  %v3268_v20 = vadd.f32 %v3267_v30, %v2205_v57  ;;  %v2219_v38 = vunpack.c.l.bf16 %v1378_v2  ;;  %v8987_v44 = vunpack.c.h.bf16 %v6739_v42  ;;  %v6843_v57 = vld [vmem:[%s4580_s28 + $0xa58] sm:$0xff] }
 0x245   : > { %v3242_v40 = vadd.f32 %v3241_v52, %v8986_v48  ;;  %v3256_v48 = vadd.f32 %v3255_v9, %v2194_v37  ;;  %4288 = vrcp.f32 %v830_v46  ;;  %v3282_v3 = vadd.f32 %v2218_v32, %v2217_v12  ;;  %v6852_v37 = vld [vmem:[%s4580_s28 + $0xa60] sm:$0xff] }
 0x246   : > { %3229 = vadd.xlane.f32.xlu1 %v3228_v47  ;;  %v3269_v33 = vadd.f32 %v3268_v20, %v2206_v34  ;;  %4290 = vrcp.f32 %v833_v41  ;;  %v2220_v47 = vunpack.c.h.bf16 %v1378_v2  ;;  %v8988_v56 = vunpack.c.l.bf16 %v6747_v6  ;;  %v6855_v34 = vld [vmem:[%s4580_s28 + $0xa68] sm:$0xff] }
 0x247   : > { %v3243_v52 = vadd.f32 %v3242_v40, %v8987_v44  ;;  %v8989_v42 = vunpack.c.l.bf16 %v6771_v60  ;;  %v2221_v46 = vunpack.c.l.bf16 %v1379_v10  ;;  %v2222_v9 = vunpack.c.h.bf16 %v1379_v10  ;;  %v1386_v2 = vld [vmem:[%s4580_s28 + $0xa88] sm:$0xff] }
 0x248   : > { %v3270_v40 = vadd.f32 %v3269_v33, %v2207_v50  ;;  %v2223_v20 = vunpack.c.l.bf16 %v6843_v57  ;;  %v3283_v41 = vadd.f32 %v3282_v3, %v2219_v38  ;;  %v2233_v32 = vunpack.c.l.bf16 %v1385_v13 }
 0x249   : > { %v3244_v45 = vadd.f32 %v3243_v52, %v8988_v56  ;;  %v3257_v35 = vadd.f32 %v3256_v48, %v8989_v42  ;;  %v8990_v12 = vunpack.c.h.bf16 %v6747_v6  ;;  %v8991_v44 = vunpack.c.h.bf16 %v6771_v60  ;;  %v6864_v48 = vld [vmem:[%s4580_s28 + $0xa70] sm:$0xff]  ;;  %v6872_v60 = vld [vmem:[%s4580_s28 + $0xa78] sm:$0xff] }
 0x24a   : > { %v3271_v50 = vadd.f32 %v3270_v40, %v2208_v23  ;;  %v2234_v33 = vunpack.c.h.bf16 %v1385_v13  ;;  %v2224_v42 = vunpack.c.h.bf16 %v6843_v57  ;;  %v2225_v10 = vunpack.c.l.bf16 %v6852_v37  ;;  %v6909_v23 = vld [vmem:[%s4580_s28 + $0xab0] sm:$0xff] }
 0x24b   : > { %v3245_v56 = vadd.f32 %v3244_v45, %v8990_v12  ;;  %v3258_v52 = vadd.f32 %v3257_v35, %v8991_v44  ;;  %v3284_v38 = vadd.f32 %v3283_v41, %v2220_v47  ;;  %v8992_v30 = vunpack.c.l.bf16 %v6778_v63  ;;  %v1387_v35 = vld [vmem:[%s4580_s28 + $0xa90] sm:$0xff] }
 0x24c   : > { %v3272_v45 = vadd.f32 %v3271_v50, %v2209_v7  ;;  %v2235_v13 = vunpack.c.l.bf16 %v1386_v2  ;;  %v8993_v41 = vunpack.c.h.bf16 %v6778_v63  ;;  %v6882_v7 = vld [vmem:[%s4580_s28 + $0xa98] sm:$0xff]  ;;  %v2236_v44 = vunpack.c.h.bf16 %v1386_v2  ;;  %v1393_v50 = vld [vmem:[%s4580_s28 + $0xac0] sm:$0xff]  ;;  %v6897_v2 = vld [vmem:[%s4580_s28 + $0xaa8] sm:$0xff] }
 0x24d   : > { %3246 = vadd.xlane.f32.xlu0 %v3245_v56  ;;  %v3259_v6 = vadd.f32 %v3258_v52, %v8992_v30  ;;  %v3285_v47 = vadd.f32 %v3284_v38, %v2221_v46  ;;  %v3299_v52 = vadd.f32 %v2234_v33, %v2233_v32  ;;  %v2237_v3 = vunpack.c.l.bf16 %v1387_v35  ;;  %v6894_v38 = vld [vmem:[%s4580_s28 + $0xaa0] sm:$0xff] }
 0x24e   : > { %v3273_v30 = vadd.f32 %v3272_v45, %v2210_v1  ;;  %v8995_v46 = vunpack.c.l.bf16 %v6786_v59  ;;  %v2238_v32 = vunpack.c.h.bf16 %v1387_v35  ;;  %v2249_v57 = vunpack.c.l.bf16 %v1393_v50 }
 0x24f   : > { %v3260_v56 = vadd.f32 %v3259_v6, %v8993_v41  ;;  %v3286_v40 = vadd.f32 %v3285_v47, %v2222_v9  ;;  %v6887_v12 = vpop.eup %4288  ;;  %v3300_v33 = vadd.f32 %v3299_v52, %v2235_v13  ;;  %v2239_v9 = vunpack.c.l.bf16 %v6882_v7  ;;  %v1394_v41 = vld [vmem:[%s4580_s28 + $0xac8] sm:$0xff]  ;;  %v836_v13 = vpop.xlane.xlu1 %835 }
 0x250   : > { %8994 = vst [vmem:[#allocation84_spill] sm:$0xff] %v6887_v12  ;;  %v3274_v1 = vadd.f32 %v3273_v30, %v2211_v27  ;;  %v6899_v6 = vpop.eup %4290  ;;  %v2240_v47 = vunpack.c.h.bf16 %v6882_v7  ;;  %v8998_v27 = vunpack.c.h.bf16 %v6810_v43  ;;  %v839_v52 = vpop.xlane.xlu0 %838  ;;  %v2242_v7 = vunpack.c.h.bf16 %v6894_v38  ;;  %v6926_v12 = vld [vmem:[%s4580_s28 + $0xad8] sm:$0xff] }
 0x251   : > { %v3261_v63 = vadd.f32 %v3260_v56, %v8995_v46  ;;  %8996 = vst [vmem:[#allocation85_spill] sm:$0xff] %v6899_v6  ;;  %v3287_v45 = vadd.f32 %v3286_v40, %v2223_v20  ;;  %v8997_v56 = vunpack.c.h.bf16 %v6786_v59  ;;  %v3301_v35 = vadd.f32 %v3300_v33, %v2236_v44  ;;  %v1401_v44 = vld [vmem:[%s4580_s28 + $0xb00] sm:$0xff] }
 0x252   : > { %v3275_v30 = vadd.f32 %v3274_v1, %v8998_v27  ;;  %v2250_v20 = vunpack.c.h.bf16 %v1393_v50  ;;  %v2241_v6 = vunpack.c.l.bf16 %v6894_v38  ;;  %v8999_v59 = vunpack.c.l.bf16 %v6823_v58  ;;  %v1395_v38 = vld [vmem:[%s4580_s28 + $0xad0] sm:$0xff] }
 0x253   : > { %v3262_v46 = vadd.f32 %v3261_v63, %v8997_v56  ;;  %v3288_v40 = vadd.f32 %v3287_v45, %v2224_v42  ;;  %v6917_v63 = vld [vmem:[%s4580_s28 + $0xab8] sm:$0xff]  ;;  %v3302_v1 = vadd.f32 %v3301_v35, %v2237_v3  ;;  %v2251_v33 = vunpack.c.l.bf16 %v1394_v41 }
 0x254   : > { %v3276_v43 = vadd.f32 %v3275_v30, %v8999_v59  ;;  %4292 = vrcp.f32 %v836_v13  ;;  %v9000_v56 = vunpack.c.h.bf16 %v6823_v58  ;;  %v2252_v30 = vunpack.c.h.bf16 %v1394_v41 }
 0x255   : > { %3263 = vadd.xlane.f32.xlu1 %v3262_v46  ;;  %v3289_v50 = vadd.f32 %v3288_v40, %v2225_v10  ;;  %v3303_v27 = vadd.f32 %v3302_v1, %v2238_v32  ;;  %v3316_v59 = vadd.f32 %v2250_v20, %v2249_v57  ;;  %v9001_v3 = vunpack.c.h.bf16 %v6852_v37  ;;  %v6938_v57 = vpop.xlane.xlu1 %841  ;;  %v6940_v20 = vpop.xlane.xlu0 %844  ;;  %v1402_v40 = vld [vmem:[%s4580_s28 + $0xb08] sm:$0xff] }
 0x256   : > { %v3277_v46 = vadd.f32 %v3276_v43, %v9000_v56  ;;  %4294 = vrcp.f32 %v839_v52  ;;  %v9002_v13 = vunpack.c.l.bf16 %v6826_v11  ;;  %v6936_v43 = vld [vmem:[%s4580_s28 + $0xae0] sm:$0xff]  ;;  %v2253_v1 = vunpack.c.l.bf16 %v1395_v38  ;;  %v6945_v56 = vld [vmem:[%s4580_s28 + $0xae8] sm:$0xff] }
 0x257   : > { %v3290_v10 = vadd.f32 %v3289_v50, %v9001_v3  ;;  %v3304_v32 = vadd.f32 %v3303_v27, %v2239_v9  ;;  %v3317_v41 = vadd.f32 %v3316_v59, %v2251_v33  ;;  %v9003_v37 = vunpack.c.l.bf16 %v6855_v34  ;;  %v6952_v59 = vld [vmem:[%s4580_s28 + $0xaf0] sm:$0xff] }
 0x258   : > { %v3278_v58 = vadd.f32 %v3277_v46, %v9002_v13  ;;  %v2254_v52 = vunpack.c.h.bf16 %v1395_v38  ;;  %v2255_v3 = vunpack.c.l.bf16 %v6926_v12  ;;  %v2265_v9 = vunpack.c.l.bf16 %v1401_v44 }
 0x259   : > { %v3291_v50 = vadd.f32 %v3290_v10, %v9003_v37  ;;  %v9004_v46 = vunpack.c.h.bf16 %v6826_v11  ;;  %v3305_v33 = vadd.f32 %v3304_v32, %v2240_v47  ;;  %v3318_v13 = vadd.f32 %v3317_v41, %v2252_v30  ;;  %v6960_v11 = vld [vmem:[%s4580_s28 + $0xaf8] sm:$0xff]  ;;  %v1403_v30 = vld [vmem:[%s4580_s28 + $0xb10] sm:$0xff]  ;;  %v1409_v47 = vld [vmem:[%s4580_s28 + $0xb40] sm:$0xff] }
 0x25a   : > { %v2266_v35 = vunpack.c.h.bf16 %v1401_v44  ;;  %v9005_v45 = vunpack.c.h.bf16 %v6855_v34  ;;  %v2256_v37 = vunpack.c.h.bf16 %v6926_v12  ;;  %v2257_v38 = vunpack.c.l.bf16 %v6936_v43 }
 0x25b   : > { %v3279_v27 = vadd.f32 %v3278_v58, %v9004_v46  ;;  %v2258_v42 = vunpack.c.h.bf16 %v6936_v43  ;;  %v3306_v39 = vadd.f32 %v3305_v33, %v2241_v6  ;;  %v3319_v58 = vadd.f32 %v3318_v13, %v2253_v1  ;;  %v6970_v6 = vld [vmem:[%s4580_s28 + $0xb18] sm:$0xff]  ;;  %v6973_v46 = vld [vmem:[%s4580_s28 + $0xb20] sm:$0xff]  ;;  %v6975_v33 = vpop.xlane.xlu1 %847  ;;  %v6977_v13 = vpop.xlane.xlu0 %850 }
 0x25c   : > { %v3292_v10 = vadd.f32 %v3291_v50, %v9005_v45  ;;  %v2267_v44 = vunpack.c.l.bf16 %v1402_v40  ;;  %v9006_v34 = vunpack.c.l.bf16 %v6864_v48  ;;  %v2268_v1 = vunpack.c.h.bf16 %v1402_v40 }
 0x25d   : > { %3280 = vadd.xlane.f32.xlu0 %v3279_v27  ;;  %v3307_v43 = vadd.f32 %v3306_v39, %v2242_v7  ;;  %v3320_v50 = vadd.f32 %v3319_v58, %v2254_v52  ;;  %v3333_v27 = vadd.f32 %v2266_v35, %v2265_v9  ;;  %v2269_v7 = vunpack.c.l.bf16 %v1403_v30  ;;  %v6988_v9 = vld [vmem:[%s4580_s28 + $0xb28] sm:$0xff] }
 0x25e   : > { %v3293_v45 = vadd.f32 %v3292_v10, %v9006_v34  ;;  %v6979_v10 = vpop.eup %4292  ;;  %v9008_v34 = vunpack.c.h.bf16 %v6864_v48  ;;  %v9009_v52 = vunpack.c.l.bf16 %v6897_v2  ;;  %v2270_v58 = vunpack.c.h.bf16 %v1403_v30  ;;  %v7004_v30 = vld [vmem:[%s4580_s28 + $0xb38] sm:$0xff] }
 0x25f   : > { %9007 = vst [vmem:[#allocation86_spill] sm:$0xff] %v6979_v10  ;;  %v3321_v35 = vadd.f32 %v3320_v50, %v2255_v3  ;;  %v3334_v12 = vadd.f32 %v3333_v27, %v2267_v44  ;;  %v9011_v48 = vunpack.c.l.bf16 %v6872_v60  ;;  %v2272_v39 = vunpack.c.h.bf16 %v6970_v6  ;;  %v7014_v44 = vpop.xlane.xlu1 %853 }
 0x260   : > { %v3294_v32 = vadd.f32 %v3293_v45, %v9008_v34  ;;  %v3308_v40 = vadd.f32 %v3307_v43, %v9009_v52  ;;  %v6991_v10 = vpop.eup %4294  ;;  %v2271_v34 = vunpack.c.l.bf16 %v6970_v6  ;;  %v2273_v41 = vunpack.c.l.bf16 %v6973_v46  ;;  %v7001_v52 = vld [vmem:[%s4580_s28 + $0xb30] sm:$0xff] }
 0x261   : > { %9010 = vst [vmem:[#allocation87_spill] sm:$0xff] %v6991_v10  ;;  %v9012_v43 = vunpack.c.h.bf16 %v6897_v2  ;;  %v3322_v50 = vadd.f32 %v3321_v35, %v2256_v37  ;;  %v3335_v27 = vadd.f32 %v3334_v12, %v2268_v1  ;;  %v1410_v10 = vld [vmem:[%s4580_s28 + $0xb48] sm:$0xff]  ;;  %v2281_v25 = vunpack.c.l.bf16 %v1409_v47  ;;  %v7016_v12 = vpop.xlane.xlu0 %856 }
 0x262   : > { %v3295_v45 = vadd.f32 %v3294_v32, %v9011_v48  ;;  %v9013_v32 = vunpack.c.h.bf16 %v6872_v60  ;;  %v2282_v26 = vunpack.c.h.bf16 %v1409_v47  ;;  %v9014_v2 = vunpack.c.l.bf16 %v6909_v23 }
 0x263   : > { %v3309_v3 = vadd.f32 %v3308_v40, %v9012_v43  ;;  %v3323_v37 = vadd.f32 %v3322_v50, %v2257_v38  ;;  %v3336_v43 = vadd.f32 %v3335_v27, %v2269_v7  ;;  %v9015_v38 = vunpack.c.h.bf16 %v6909_v23  ;;  %v7026_v27 = vld [vmem:[%s4580_s28 + $0xb58] sm:$0xff] }
 0x264   : > { %v3296_v48 = vadd.f32 %v3295_v45, %v9013_v32  ;;  %v1411_v45 = vld [vmem:[%s4580_s28 + $0xb50] sm:$0xff]  ;;  %4296 = vrcp.f32 %v6938_v57  ;;  %v2284_v47 = vunpack.c.h.bf16 %v1410_v10  ;;  %v3350_v1 = vadd.f32 %v2282_v26, %v2281_v25 }
 0x265   : > { %v3310_v40 = vadd.f32 %v3309_v3, %v9014_v2  ;;  %v2283_v3 = vunpack.c.l.bf16 %v1410_v10  ;;  %v3324_v32 = vadd.f32 %v3323_v37, %v2258_v42  ;;  %v3337_v7 = vadd.f32 %v3336_v43, %v2270_v58  ;;  %v7036_v37 = vld [vmem:[%s4580_s28 + $0xb60] sm:$0xff]  ;;  %v7039_v43 = vld [vmem:[%s4580_s28 + $0xb68] sm:$0xff] }
 0x266   : > { %3297 = vadd.xlane.f32.xlu1 %v3296_v48  ;;  %v1417_v48 = vld [vmem:[%s4580_s28 + $0xb80] sm:$0xff]  ;;  %4298 = vrcp.f32 %v6940_v20  ;;  %v9016_v60 = vunpack.c.l.bf16 %v6917_v63  ;;  %v2285_v57 = vunpack.c.l.bf16 %v1411_v45  ;;  %v2287_v2 = vunpack.c.l.bf16 %v7026_v27  ;;  %v1418_v20 = vld [vmem:[%s4580_s28 + $0xb88] sm:$0xff] }
 0x267   : > { %v3311_v50 = vadd.f32 %v3310_v40, %v9015_v38  ;;  %v9017_v40 = vunpack.c.l.bf16 %v6945_v56  ;;  %v3338_v58 = vadd.f32 %v3337_v7, %v2271_v34  ;;  %v2286_v38 = vunpack.c.h.bf16 %v1411_v45  ;;  %v7052_v45 = vpop.xlane.xlu0 %862 }
 0x268   : > { %v3351_v35 = vadd.f32 %v3350_v1, %v2283_v3  ;;  %v2297_v10 = vunpack.c.l.bf16 %v1417_v48  ;;  %v9018_v26 = vunpack.c.h.bf16 %v6917_v63  ;;  %v2298_v7 = vunpack.c.h.bf16 %v1417_v48 }
 0x269   : > { %v3312_v23 = vadd.f32 %v3311_v50, %v9016_v60  ;;  %v3325_v42 = vadd.f32 %v3324_v32, %v9017_v40  ;;  %v9019_v60 = vunpack.c.h.bf16 %v6945_v56  ;;  %v3339_v34 = vadd.f32 %v3338_v58, %v2272_v39  ;;  %v7048_v32 = vld [vmem:[%s4580_s28 + $0xb70] sm:$0xff]  ;;  %v7050_v40 = vpop.xlane.xlu1 %859  ;;  %v7060_v58 = vld [vmem:[%s4580_s28 + $0xb78] sm:$0xff] }
 0x26a   : > { %v2288_v1 = vunpack.c.h.bf16 %v7026_v27  ;;  %v2289_v3 = vunpack.c.l.bf16 %v7036_v37  ;;  %v9020_v56 = vunpack.c.l.bf16 %v6952_v59  ;;  %v3367_v48 = vadd.f32 %v2298_v7, %v2297_v10 }
 0x26b   : > { %v3313_v25 = vadd.f32 %v3312_v23, %v9018_v26  ;;  %v3326_v50 = vadd.f32 %v3325_v42, %v9019_v60  ;;  %v3352_v23 = vadd.f32 %v3351_v35, %v2284_v47  ;;  %v3340_v42 = vadd.f32 %v3339_v34, %v2273_v41  ;;  %v1419_v26 = vld [vmem:[%s4580_s28 + $0xb90] sm:$0xff]  ;;  %v7072_v34 = vld [vmem:[%s4580_s28 + $0xb98] sm:$0xff] }
 0x26c   : > { %v2299_v60 = vunpack.c.l.bf16 %v1418_v20  ;;  %v9021_v47 = vunpack.c.h.bf16 %v6952_v59  ;;  %v9022_v41 = vunpack.c.h.bf16 %v6973_v46  ;;  %v2301_v63 = vunpack.c.l.bf16 %v1419_v26 }
 0x26d   : > { %3314 = vadd.xlane.f32.xlu0 %v3313_v25  ;;  %v3327_v39 = vadd.f32 %v3326_v50, %v9020_v56  ;;  %v3353_v35 = vadd.f32 %v3352_v23, %v2285_v57  ;;  %v2300_v56 = vunpack.c.h.bf16 %v1418_v20  ;;  %v9024_v59 = vunpack.c.l.bf16 %v6960_v11  ;;  %v7087_v20 = vld [vmem:[%s4580_s28 + $0xba8] sm:$0xff] }
 0x26e   : > { %v3341_v50 = vadd.f32 %v3340_v42, %v9022_v41  ;;  %v7077_v22 = vpop.eup %4296  ;;  %v9025_v46 = vunpack.c.l.bf16 %v6988_v9  ;;  %v2302_v10 = vunpack.c.h.bf16 %v1419_v26  ;;  %v3368_v7 = vadd.f32 %v3367_v48, %v2299_v60  ;;  %v7089_v42 = vpop.xlane.xlu1 %865  ;;  %v7103_v60 = vld [vmem:[%s4580_s28 + $0xbb0] sm:$0xff] }
 0x26f   : > { %v3328_v25 = vadd.f32 %v3327_v39, %v9021_v47  ;;  %v3354_v0 = vadd.f32 %v3353_v35, %v2286_v38  ;;  %9023 = vst [vmem:[#allocation88_spill] sm:$0xff] %v7077_v22  ;;  %v7084_v39 = vld [vmem:[%s4580_s28 + $0xba0] sm:$0xff]  ;;  %v7091_v47 = vpop.xlane.xlu0 %868  ;;  %v2304_v41 = vunpack.c.h.bf16 %v7072_v34  ;;  %v9028_v26 = vunpack.c.h.bf16 %v6988_v9  ;;  %v7111_v9 = vld [vmem:[%s4580_s28 + $0xbb8] sm:$0xff] }
 0x270   : > { %v3342_v23 = vadd.f32 %v3341_v50, %v9025_v46  ;;  %v7093_v38 = vpop.eup %4298  ;;  %v2313_v50 = vunpack.c.l.bf16 %v1425_v5  ;;  %v9027_v46 = vunpack.c.h.bf16 %v6960_v11  ;;  %v3369_v27 = vadd.f32 %v3368_v7, %v2300_v56 }
 0x271   : > { %v3329_v57 = vadd.f32 %v3328_v25, %v9024_v59  ;;  %9026 = vst [vmem:[#allocation89_spill] sm:$0xff] %v7093_v38  ;;  %v3355_v35 = vadd.f32 %v3354_v0, %v2287_v2  ;;  %v2303_v25 = vunpack.c.l.bf16 %v7072_v34  ;;  %v1426_v59 = vld [vmem:[%s4580_s28 + $0xbc8] sm:$0xff]  ;;  %v2314_v22 = vunpack.c.h.bf16 %v1425_v5 }
 0x272   : > { %v3343_v48 = vadd.f32 %v3342_v23, %v9028_v26  ;;  %v2305_v0 = vunpack.c.l.bf16 %v7084_v39  ;;  %v2306_v2 = vunpack.c.h.bf16 %v7084_v39  ;;  %v9029_v11 = vunpack.c.l.bf16 %v7001_v52  ;;  %v1427_v39 = vld [vmem:[%s4580_s28 + $0xbd0] sm:$0xff] }
 0x273   : > { %v3330_v6 = vadd.f32 %v3329_v57, %v9027_v46  ;;  %v3356_v38 = vadd.f32 %v3355_v35, %v2288_v1  ;;  %v3370_v56 = vadd.f32 %v3369_v27, %v2301_v63  ;;  %v2315_v7 = vunpack.c.l.bf16 %v1426_v59  ;;  %v1433_v63 = vld [vmem:[%s4580_s28 + $0xc00] sm:$0xff]  ;;  %v7126_v27 = vpop.xlane.xlu0 %874 }
 0x274   : > { %v3344_v57 = vadd.f32 %v3343_v48, %v9029_v11  ;;  %4300 = vrcp.f32 %v6975_v33  ;;  %v7121_v48 = vld [vmem:[%s4580_s28 + $0xbd8] sm:$0xff]  ;;  %v2316_v11 = vunpack.c.h.bf16 %v1426_v59  ;;  %v3384_v23 = vadd.f32 %v2314_v22, %v2313_v50  ;;  %v7136_v50 = vld [vmem:[%s4580_s28 + $0xbe0] sm:$0xff] }
 0x275   : > { %3331 = vadd.xlane.f32.xlu1 %v3330_v6  ;;  %v3357_v5 = vadd.f32 %v3356_v38, %v2289_v3  ;;  %v9030_v6 = vunpack.c.h.bf16 %v7001_v52  ;;  %v3371_v26 = vadd.f32 %v3370_v56, %v2302_v10  ;;  %v7124_v3 = vpop.xlane.xlu1 %871  ;;  %v9031_v38 = vunpack.c.h.bf16 %v7036_v37  ;;  %v7141_v37 = vld [vmem:[%s4580_s28 + $0xbe8] sm:$0xff] }
 0x276   : > { %4302 = vrcp.f32 %v6977_v13  ;;  %v9032_v10 = vunpack.c.l.bf16 %v7004_v30  ;;  %v3385_v56 = vadd.f32 %v3384_v23, %v2315_v7  ;;  %v1434_v52 = vld [vmem:[%s4580_s28 + $0xc08] sm:$0xff]  ;;  %v2329_v13 = vunpack.c.l.bf16 %v1433_v63 }
 0x277   : > { %v3345_v46 = vadd.f32 %v3344_v57, %v9030_v6  ;;  %v3358_v33 = vadd.f32 %v3357_v5, %v9031_v38  ;;  %v3372_v22 = vadd.f32 %v3371_v26, %v2303_v25  ;;  %v2317_v57 = vunpack.c.l.bf16 %v1427_v39  ;;  %v7148_v26 = vld [vmem:[%s4580_s28 + $0xbf0] sm:$0xff] }
 0x278   : > { %v9033_v6 = vunpack.c.l.bf16 %v7039_v43  ;;  %v2318_v5 = vunpack.c.h.bf16 %v1427_v39  ;;  %v2319_v38 = vunpack.c.l.bf16 %v7121_v48  ;;  %v9034_v35 = vunpack.c.h.bf16 %v7004_v30  ;;  %v7156_v30 = vld [vmem:[%s4580_s28 + $0xbf8] sm:$0xff] }
 0x279   : > { %v3346_v59 = vadd.f32 %v3345_v46, %v9032_v10  ;;  %v3373_v25 = vadd.f32 %v3372_v22, %v2304_v41  ;;  %v3386_v10 = vadd.f32 %v3385_v56, %v2316_v11  ;;  %v2330_v23 = vunpack.c.h.bf16 %v1433_v63  ;;  %v1435_v11 = vld [vmem:[%s4580_s28 + $0xc10] sm:$0xff] }
 0x27a   : > { %v3359_v1 = vadd.f32 %v3358_v33, %v9033_v6  ;;  %v9035_v7 = vunpack.c.h.bf16 %v7039_v43  ;;  %v2320_v6 = vunpack.c.h.bf16 %v7121_v48  ;;  %v2321_v39 = vunpack.c.l.bf16 %v7136_v50  ;;  %v7162_v43 = vpop.xlane.xlu0 %880 }
 0x27b   : > { %v3347_v46 = vadd.f32 %v3346_v59, %v9034_v35  ;;  %v2322_v34 = vunpack.c.h.bf16 %v7136_v50  ;;  %v3374_v16 = vadd.f32 %v3373_v25, %v2305_v0  ;;  %v3387_v35 = vadd.f32 %v3386_v10, %v2317_v57  ;;  %v7160_v59 = vpop.xlane.xlu1 %877  ;;  %9037 = vst [vmem:[#allocation91_spill] sm:$0xff] %v7162_v43  ;;  %v7170_v57 = vld [vmem:[%s4580_s28 + $0xc18] sm:$0xff]  ;;  %v7173_v25 = vld [vmem:[%s4580_s28 + $0xc20] sm:$0xff]  ;;  %v7184_v0 = vld [vmem:[%s4580_s28 + $0xc28] sm:$0xff] }
 0x27c   : > { %v3360_v33 = vadd.f32 %v3359_v1, %v9035_v7  ;;  %v2331_v63 = vunpack.c.l.bf16 %v1434_v52  ;;  %9036 = vst [vmem:[#allocation90_spill] sm:$0xff] %v7160_v59  ;;  %v9038_v1 = vunpack.c.l.bf16 %v7048_v32  ;;  %v2332_v10 = vunpack.c.h.bf16 %v1434_v52  ;;  %v1442_v59 = vld [vmem:[%s4580_s28 + $0xc48] sm:$0xff] }
 0x27d   : > { %3348 = vadd.xlane.f32.xlu0 %v3347_v46  ;;  %v3375_v56 = vadd.f32 %v3374_v16, %v2306_v2  ;;  %v3388_v46 = vadd.f32 %v3387_v35, %v2318_v5  ;;  %v3401_v7 = vadd.f32 %v2330_v23, %v2329_v13  ;;  %v2333_v16 = vunpack.c.l.bf16 %v1435_v11  ;;  %v1441_v23 = vld [vmem:[%s4580_s28 + $0xc40] sm:$0xff] }
 0x27e   : > { %v3361_v48 = vadd.f32 %v3360_v33, %v9038_v1  ;;  %v7175_v41 = vpop.eup %4300  ;;  %v9040_v33 = vunpack.c.h.bf16 %v7048_v32  ;;  %v9041_v2 = vunpack.c.l.bf16 %v7087_v20  ;;  %v2334_v52 = vunpack.c.h.bf16 %v1435_v11  ;;  %v7200_v11 = vld [vmem:[%s4580_s28 + $0xc38] sm:$0xff] }
 0x27f   : > { %9039 = vst [vmem:[#allocation92_spill] sm:$0xff] %v7175_v41  ;;  %v3389_v35 = vadd.f32 %v3388_v46, %v2319_v38  ;;  %v3402_v13 = vadd.f32 %v3401_v7, %v2331_v63  ;;  %v9043_v32 = vunpack.c.l.bf16 %v7060_v58  ;;  %v2336_v50 = vunpack.c.h.bf16 %v7170_v57 }
 0x280   : > { %v3362_v1 = vadd.f32 %v3361_v48, %v9040_v33  ;;  %v3376_v5 = vadd.f32 %v3375_v56, %v9041_v2  ;;  %v7187_v43 = vpop.eup %4302  ;;  %v2335_v33 = vunpack.c.l.bf16 %v7170_v57  ;;  %v2337_v22 = vunpack.c.l.bf16 %v7173_v25  ;;  %v7197_v2 = vld [vmem:[%s4580_s28 + $0xc30] sm:$0xff] }
 0x281   : > { %9042 = vst [vmem:[#allocation93_spill] sm:$0xff] %v7187_v43  ;;  %v9044_v56 = vunpack.c.h.bf16 %v7087_v20  ;;  %v3390_v46 = vadd.f32 %v3389_v35, %v2320_v6  ;;  %v3403_v7 = vadd.f32 %v3402_v13, %v2332_v10  ;;  %v9047_v57 = vunpack.c.h.bf16 %v7060_v58 }
 0x282   : > { %v3363_v48 = vadd.f32 %v3362_v1, %v9043_v32  ;;  %v7204_v1 = vpop.xlane.xlu1 %883  ;;  %v7206_v32 = vpop.xlane.xlu0 %886  ;;  %v2346_v6 = vunpack.c.h.bf16 %v1441_v23  ;;  %v9048_v35 = vunpack.c.l.bf16 %v7103_v60  ;;  %4304 = vrcp.f32 %v7014_v44 }
 0x283   : > { %v3377_v38 = vadd.f32 %v3376_v5, %v9044_v56  ;;  %9045 = vst [vmem:[#allocation94_spill] sm:$0xff] %v7204_v1  ;;  %9046 = vst [vmem:[#allocation95_spill] sm:$0xff] %v7206_v32  ;;  %v2345_v5 = vunpack.c.l.bf16 %v1441_v23  ;;  %v3391_v63 = vadd.f32 %v3390_v46, %v2321_v39  ;;  %v3404_v13 = vadd.f32 %v3403_v7, %v2333_v16  ;;  %v7222_v39 = vld [vmem:[%s4580_s28 + $0xc58] sm:$0xff]  ;;  %v7248_v16 = vld [vmem:[%s4580_s28 + $0xc70] sm:$0xff] }
 0x284   : > { %v3364_v43 = vadd.f32 %v3363_v48, %v9047_v57  ;;  %v1443_v48 = vld [vmem:[%s4580_s28 + $0xc50] sm:$0xff]  ;;  %v2347_v57 = vunpack.c.l.bf16 %v1442_v59  ;;  %v9049_v23 = vunpack.c.h.bf16 %v7103_v60  ;;  %4306 = vrcp.f32 %v7016_v12 }
 0x285   : > { %v3378_v56 = vadd.f32 %v3377_v38, %v9048_v35  ;;  %v3392_v41 = vadd.f32 %v3391_v63, %v2322_v34  ;;  %v3405_v38 = vadd.f32 %v3404_v13, %v2334_v52  ;;  %v2348_v46 = vunpack.c.h.bf16 %v1442_v59  ;;  %v7232_v63 = vld [vmem:[%s4580_s28 + $0xc60] sm:$0xff] }
 0x286   : > { %3365 = vadd.xlane.f32.xlu1 %v3364_v43  ;;  %v1449_v43 = vld [vmem:[%s4580_s28 + $0xc80] sm:$0xff]  ;;  %v3418_v7 = vadd.f32 %v2346_v6, %v2345_v5  ;;  %v9050_v35 = vunpack.c.l.bf16 %v7111_v9  ;;  %v9051_v60 = vunpack.c.l.bf16 %v7141_v37  ;;  %v2349_v44 = vunpack.c.l.bf16 %v1443_v48  ;;  %v7236_v13 = vpop.xlane.xlu0 %892 }
 0x287   : > { %v3379_v20 = vadd.f32 %v3378_v56, %v9049_v23  ;;  %v3406_v52 = vadd.f32 %v3405_v38, %v2335_v33  ;;  %v7234_v56 = vpop.xlane.xlu1 %889  ;;  %9053 = vst [vmem:[#allocation97_spill] sm:$0xff] %v7236_v13  ;;  %v7239_v23 = vld [vmem:[%s4580_s28 + $0xc68] sm:$0xff]  ;;  %v2350_v12 = vunpack.c.h.bf16 %v1443_v48  ;;  %v2351_v59 = vunpack.c.l.bf16 %v7222_v39  ;;  %v7299_v13 = vld [vmem:[%s4580_s28 + $0xcb0] sm:$0xff] }
 0x288   : > { %v3393_v34 = vadd.f32 %v3392_v41, %v9051_v60  ;;  %9052 = vst [vmem:[#allocation96_spill] sm:$0xff] %v7234_v56  ;;  %v3419_v5 = vadd.f32 %v3418_v7, %v2347_v57  ;;  %v2361_v6 = vunpack.c.l.bf16 %v1449_v43  ;;  %v9054_v41 = vunpack.c.h.bf16 %v7111_v9 }
 0x289   : > { %v3380_v58 = vadd.f32 %v3379_v20, %v9050_v35  ;;  %v1450_v20 = vld [vmem:[%s4580_s28 + $0xc88] sm:$0xff]  ;;  %v9055_v38 = vunpack.c.h.bf16 %v7141_v37  ;;  %v3407_v60 = vadd.f32 %v3406_v52, %v2336_v50  ;;  %v2362_v32 = vunpack.c.h.bf16 %v1449_v43  ;;  %v7256_v37 = vld [vmem:[%s4580_s28 + $0xc78] sm:$0xff]  ;;  %v1457_v50 = vld [vmem:[%s4580_s28 + $0xcc0] sm:$0xff] }
 0x28a   : > { %v2352_v1 = vunpack.c.h.bf16 %v7222_v39  ;;  %v2353_v48 = vunpack.c.l.bf16 %v7232_v63  ;;  %v3420_v7 = vadd.f32 %v3419_v5, %v2348_v46  ;;  %v9056_v10 = vunpack.c.l.bf16 %v7148_v26  ;;  %v7273_v39 = vpop.xlane.xlu0 %898 }
 0x28b   : > { %v3381_v33 = vadd.f32 %v3380_v58, %v9054_v41  ;;  %v3394_v35 = vadd.f32 %v3393_v34, %v9055_v38  ;;  %v3408_v58 = vadd.f32 %v3407_v60, %v2337_v22  ;;  %v1451_v34 = vld [vmem:[%s4580_s28 + $0xc90] sm:$0xff]  ;;  %v2363_v43 = vunpack.c.l.bf16 %v1450_v20  ;;  %v7271_v57 = vpop.xlane.xlu1 %895  ;;  %9060 = vst [vmem:[#allocation99_spill] sm:$0xff] %v7273_v39  ;;  %v1458_v39 = vld [vmem:[%s4580_s28 + $0xcc8] sm:$0xff] }
 0x28c   : > { %v3421_v38 = vadd.f32 %v3420_v7, %v2349_v44  ;;  %v9057_v46 = vunpack.c.h.bf16 %v7148_v26  ;;  %v3435_v60 = vadd.f32 %v2362_v32, %v2361_v6  ;;  %9059 = vst [vmem:[#allocation98_spill] sm:$0xff] %v7271_v57  ;;  %v9063_v32 = vunpack.c.l.bf16 %v7184_v0  ;;  %v7284_v6 = vld [vmem:[%s4580_s28 + $0xca0] sm:$0xff] }
 0x28d   : > { %3382 = vadd.xlane.f32.xlu0 %v3381_v33  ;;  %v3395_v9 = vadd.f32 %v3394_v35, %v9056_v10  ;;  %v9058_v10 = vunpack.c.h.bf16 %v7173_v25  ;;  %v7268_v33 = vld [vmem:[%s4580_s28 + $0xc98] sm:$0xff]  ;;  %v2364_v35 = vunpack.c.h.bf16 %v1450_v20  ;;  %v7277_v25 = vpop.eup %4304  ;;  %v2366_v41 = vunpack.c.h.bf16 %v1451_v34 }
 0x28e   : > { %v3422_v7 = vadd.f32 %v3421_v38, %v2350_v12  ;;  %9061 = vst [vmem:[#allocation100_spill] sm:$0xff] %v7277_v25  ;;  %v3436_v52 = vadd.f32 %v3435_v60, %v2363_v43  ;;  %v7289_v44 = vpop.eup %4306  ;;  %v2367_v12 = vunpack.c.l.bf16 %v7268_v33  ;;  %v2368_v38 = vunpack.c.h.bf16 %v7268_v33  ;;  %v1465_v33 = vld [vmem:[%s4580_s28 + $0xd00] sm:$0xff] }
 0x28f   : > { %v3396_v5 = vadd.f32 %v3395_v9, %v9057_v46  ;;  %v3409_v22 = vadd.f32 %v3408_v58, %v9058_v10  ;;  %v2365_v9 = vunpack.c.l.bf16 %v1451_v34  ;;  %v9062_v58 = vunpack.c.l.bf16 %v7156_v30  ;;  %v7287_v10 = vld [vmem:[%s4580_s28 + $0xca8] sm:$0xff]  ;;  %9064 = vst [vmem:[#allocation101_spill] sm:$0xff] %v7289_v44  ;;  %v1489_v25 = vld [vmem:[%s4580_s28 + $0xdc0] sm:$0xff] }
 0x290   : > { %v3423_v26 = vadd.f32 %v3422_v7, %v2351_v59  ;;  %v2377_v57 = vunpack.c.l.bf16 %v1457_v50  ;;  %v3437_v34 = vadd.f32 %v3436_v52, %v2364_v35  ;;  %v2378_v43 = vunpack.c.h.bf16 %v1457_v50  ;;  %v7312_v35 = vpop.xlane.xlu0 %904 }
 0x291   : > { %v3397_v46 = vadd.f32 %v3396_v5, %v9062_v58  ;;  %v3410_v20 = vadd.f32 %v3409_v22, %v9063_v32  ;;  %v9065_v5 = vunpack.c.h.bf16 %v7156_v30  ;;  %v9066_v22 = vunpack.c.h.bf16 %v7184_v0  ;;  %9069 = vst [vmem:[#allocation103_spill] sm:$0xff] %v7312_v35  ;;  %v7321_v0 = vld [vmem:[%s4580_s28 + $0xcd8] sm:$0xff] }
 0x292   : > { %v3424_v60 = vadd.f32 %v3423_v26, %v2352_v1  ;;  %v2369_v59 = vunpack.c.l.bf16 %v7284_v6  ;;  %v2370_v7 = vunpack.c.h.bf16 %v7284_v6  ;;  %v9067_v30 = vunpack.c.l.bf16 %v7197_v2  ;;  %v7310_v1 = vpop.xlane.xlu1 %901  ;;  %v1466_v6 = vld [vmem:[%s4580_s28 + $0xd08] sm:$0xff] }
 0x293   : > { %v3398_v58 = vadd.f32 %v3397_v46, %v9065_v5  ;;  %v3411_v32 = vadd.f32 %v3410_v20, %v9066_v22  ;;  %v7307_v5 = vld [vmem:[%s4580_s28 + $0xcb8] sm:$0xff]  ;;  %v3438_v52 = vadd.f32 %v3437_v34, %v2365_v9  ;;  %v2379_v50 = vunpack.c.l.bf16 %v1458_v39  ;;  %9068 = vst [vmem:[#allocation102_spill] sm:$0xff] %v7310_v1  ;;  %v1474_v1 = vld [vmem:[%s4580_s28 + $0xd48] sm:$0xff] }
 0x294   : > { %v3425_v26 = vadd.f32 %v3424_v60, %v2353_v48  ;;  %4308 = vrcp.f32 %v7050_v40  ;;  %v9070_v22 = vunpack.c.h.bf16 %v7197_v2  ;;  %v2380_v9 = vunpack.c.h.bf16 %v1458_v39 }
 0x295   : > { %3399 = vadd.xlane.f32.xlu1 %v3398_v58  ;;  %v3412_v46 = vadd.f32 %v3411_v32, %v9067_v30  ;;  %v1459_v58 = vld [vmem:[%s4580_s28 + $0xcd0] sm:$0xff]  ;;  %v3439_v30 = vadd.f32 %v3438_v52, %v2366_v41  ;;  %v3452_v34 = vadd.f32 %v2378_v43, %v2377_v57  ;;  %v9071_v48 = vunpack.c.h.bf16 %v7232_v63  ;;  %v7336_v63 = vpop.xlane.xlu0 %910 }
 0x296   : > { %4310 = vrcp.f32 %v7052_v45  ;;  %v9072_v40 = vunpack.c.l.bf16 %v7200_v11  ;;  %v2381_v39 = vunpack.c.l.bf16 %v1459_v58  ;;  %v7334_v43 = vpop.xlane.xlu1 %907  ;;  %9074 = vst [vmem:[#allocation105_spill] sm:$0xff] %v7336_v63  ;;  %v9075_v52 = vunpack.c.l.bf16 %v7239_v23 }
 0x297   : > { %v3413_v32 = vadd.f32 %v3412_v46, %v9070_v22  ;;  %v3426_v60 = vadd.f32 %v3425_v26, %v9071_v48  ;;  %v3440_v41 = vadd.f32 %v3439_v30, %v2367_v12  ;;  %v7332_v46 = vld [vmem:[%s4580_s28 + $0xce0] sm:$0xff]  ;;  %v3453_v57 = vadd.f32 %v3452_v34, %v2379_v50  ;;  %9073 = vst [vmem:[#allocation104_spill] sm:$0xff] %v7334_v43  ;;  %v7341_v22 = vld [vmem:[%s4580_s28 + $0xce8] sm:$0xff]  ;;  %v7348_v34 = vld [vmem:[%s4580_s28 + $0xcf0] sm:$0xff] }
 0x298   : > { %v2382_v45 = vunpack.c.h.bf16 %v1459_v58  ;;  %v2383_v48 = vunpack.c.l.bf16 %v7321_v0  ;;  %v2393_v12 = vunpack.c.l.bf16 %v1465_v33  ;;  %v2394_v20 = vunpack.c.h.bf16 %v1465_v33 }
 0x299   : > { %v3414_v2 = vadd.f32 %v3413_v32, %v9072_v40  ;;  %v3427_v26 = vadd.f32 %v3426_v60, %v9075_v52  ;;  %v9076_v32 = vunpack.c.h.bf16 %v7200_v11  ;;  %v3441_v50 = vadd.f32 %v3440_v41, %v2368_v38  ;;  %v7356_v11 = vld [vmem:[%s4580_s28 + $0xcf8] sm:$0xff] }
 0x29a   : > { %v3454_v40 = vadd.f32 %v3453_v57, %v2380_v9  ;;  %v9077_v63 = vunpack.c.h.bf16 %v7239_v23  ;;  %v2384_v52 = vunpack.c.h.bf16 %v7321_v0  ;;  %v2385_v58 = vunpack.c.l.bf16 %v7332_v46  ;;  %v1467_v9 = vld [vmem:[%s4580_s28 + $0xd10] sm:$0xff]  ;;  %v7360_v41 = vpop.xlane.xlu1 %913  ;;  %v7362_v23 = vpop.xlane.xlu0 %916 }
 0x29b   : > { %v3415_v30 = vadd.f32 %v3414_v2, %v9076_v32  ;;  %v2386_v43 = vunpack.c.h.bf16 %v7332_v46  ;;  %v3442_v35 = vadd.f32 %v3441_v50, %v2369_v59  ;;  %v2395_v33 = vunpack.c.l.bf16 %v1466_v6  ;;  %9078 = vst [vmem:[#allocation106_spill] sm:$0xff] %v7360_v41  ;;  %9079 = vst [vmem:[#allocation107_spill] sm:$0xff] %v7362_v23 }
 0x29c   : > { %v3428_v60 = vadd.f32 %v3427_v26, %v9077_v63  ;;  %v3455_v2 = vadd.f32 %v3454_v40, %v2381_v39  ;;  %v9080_v0 = vunpack.c.l.bf16 %v7248_v16  ;;  %v7370_v39 = vld [vmem:[%s4580_s28 + $0xd18] sm:$0xff]  ;;  %v2396_v50 = vunpack.c.h.bf16 %v1466_v6 }
 0x29d   : > { %3416 = vadd.xlane.f32.xlu0 %v3415_v30  ;;  %v3443_v26 = vadd.f32 %v3442_v35, %v2370_v7  ;;  %v7373_v30 = vld [vmem:[%s4580_s28 + $0xd20] sm:$0xff]  ;;  %v3469_v40 = vadd.f32 %v2394_v20, %v2393_v12  ;;  %v2397_v23 = vunpack.c.l.bf16 %v1467_v9  ;;  %v9083_v7 = vunpack.c.l.bf16 %v7287_v10 }
 0x29e   : > { %v3429_v57 = vadd.f32 %v3428_v60, %v9080_v0  ;;  %v3456_v32 = vadd.f32 %v3455_v2, %v2382_v45  ;;  %v7375_v38 = vpop.eup %4308  ;;  %v9082_v60 = vunpack.c.h.bf16 %v7248_v16  ;;  %v7384_v2 = vld [vmem:[%s4580_s28 + $0xd28] sm:$0xff]  ;;  %v2398_v6 = vunpack.c.h.bf16 %v1467_v9  ;;  %v1473_v12 = vld [vmem:[%s4580_s28 + $0xd40] sm:$0xff]  ;;  %v7387_v59 = vpop.xlane.xlu1 %919 }
 0x29f   : > { %9081 = vst [vmem:[#allocation108_spill] sm:$0xff] %v7375_v38  ;;  %v3444_v35 = vadd.f32 %v3443_v26, %v9083_v7  ;;  %v3470_v20 = vadd.f32 %v3469_v40, %v2395_v33  ;;  %9084 = vst [vmem:[#allocation109_spill] sm:$0xff] %v7387_v59  ;;  %v7389_v16 = vpop.xlane.xlu0 %2600  ;;  %v2399_v46 = vunpack.c.l.bf16 %v7370_v39  ;;  %v2400_v26 = vunpack.c.h.bf16 %v7370_v39  ;;  %v7401_v40 = vld [vmem:[%s4580_s28 + $0xd30] sm:$0xff]  ;;  %v7404_v7 = vld [vmem:[%s4580_s28 + $0xd38] sm:$0xff] }
 0x2a0   : > { %v3430_v0 = vadd.f32 %v3429_v57, %v9082_v60  ;;  %v3457_v45 = vadd.f32 %v3456_v32, %v2383_v48  ;;  %v7391_v57 = vpop.eup %4310  ;;  %v9086_v60 = vunpack.c.l.bf16 %v7256_v37  ;;  %v2401_v48 = vunpack.c.l.bf16 %v7373_v30 }
 0x2a1   : > { %9085 = vst [vmem:[#allocation110_spill] sm:$0xff] %v7391_v57  ;;  %v9087_v9 = vunpack.c.h.bf16 %v7287_v10  ;;  %v3471_v41 = vadd.f32 %v3470_v20, %v2396_v50  ;;  %v2409_v56 = vunpack.c.l.bf16 %v1473_v12  ;;  %v2410_v57 = vunpack.c.h.bf16 %v1473_v12  ;;  %v1475_v12 = vld [vmem:[%s4580_s28 + $0xd50] sm:$0xff] }
 0x2a2   : > { %v3431_v63 = vadd.f32 %v3430_v0, %v9086_v60  ;;  %v3458_v33 = vadd.f32 %v3457_v45, %v2384_v52  ;;  %v9088_v0 = vunpack.c.h.bf16 %v7256_v37  ;;  %v9089_v10 = vunpack.c.l.bf16 %v7299_v13  ;;  %v7414_v59 = vpop.xlane.xlu1 %2617 }
 0x2a3   : > { %v3445_v32 = vadd.f32 %v3444_v35, %v9087_v9  ;;  %v3472_v9 = vadd.f32 %v3471_v41, %v2397_v23  ;;  %v7416_v50 = vpop.xlane.xlu0 %2634  ;;  %4312 = vrcp.f32 %v7089_v42  ;;  %v7426_v23 = vld [vmem:[%s4580_s28 + $0xd58] sm:$0xff]  ;;  %v2412_v20 = vunpack.c.h.bf16 %v1474_v1 }
 0x2a4   : > { %v3432_v60 = vadd.f32 %v3431_v63, %v9088_v0  ;;  %v3459_v52 = vadd.f32 %v3458_v33, %v2385_v58  ;;  %v9090_v58 = vunpack.c.h.bf16 %v7299_v13  ;;  %4314 = vrcp.f32 %v7091_v47 }
 0x2a5   : > { %v3446_v35 = vadd.f32 %v3445_v32, %v9089_v10  ;;  %v2411_v32 = vunpack.c.l.bf16 %v1474_v1  ;;  %v3473_v41 = vadd.f32 %v3472_v9, %v2398_v6  ;;  %v3486_v63 = vadd.f32 %v2410_v57, %v2409_v56  ;;  %v1482_v57 = vld [vmem:[%s4580_s28 + $0xd88] sm:$0xff]  ;;  %v7452_v10 = vld [vmem:[%s4580_s28 + $0xd70] sm:$0xff] }
 0x2a6   : > { %3433 = vadd.xlane.f32.xlu1 %v3432_v60  ;;  %v3460_v0 = vadd.f32 %v3459_v52, %v2386_v43  ;;  %v1481_v60 = vld [vmem:[%s4580_s28 + $0xd80] sm:$0xff]  ;;  %v9091_v37 = vunpack.c.l.bf16 %v7307_v5  ;;  %v9092_v13 = vunpack.c.l.bf16 %v7341_v22  ;;  %v2413_v42 = vunpack.c.l.bf16 %v1475_v12  ;;  %v7438_v52 = vpop.xlane.xlu1 %2651 }
 0x2a7   : > { %v3447_v33 = vadd.f32 %v3446_v35, %v9090_v58  ;;  %v3474_v6 = vadd.f32 %v3473_v41, %v2399_v46  ;;  %v7436_v35 = vld [vmem:[%s4580_s28 + $0xd60] sm:$0xff]  ;;  %v7440_v9 = vpop.xlane.xlu0 %2668  ;;  %v7443_v58 = vld [vmem:[%s4580_s28 + $0xd68] sm:$0xff]  ;;  %v2414_v47 = vunpack.c.h.bf16 %v1475_v12  ;;  %v2415_v56 = vunpack.c.l.bf16 %v7426_v23 }
 0x2a8   : > { %v3461_v43 = vadd.f32 %v3460_v0, %v9092_v13  ;;  %v3487_v1 = vadd.f32 %v3486_v63, %v2411_v32  ;;  %v9094_v0 = vunpack.c.h.bf16 %v7341_v22  ;;  %v2426_v39 = vunpack.c.h.bf16 %v1481_v60  ;;  %v7460_v22 = vld [vmem:[%s4580_s28 + $0xd78] sm:$0xff] }
 0x2a9   : > { %v3448_v45 = vadd.f32 %v3447_v33, %v9091_v37  ;;  %v2425_v37 = vunpack.c.l.bf16 %v1481_v60  ;;  %v9093_v33 = vunpack.c.h.bf16 %v7307_v5  ;;  %v3475_v13 = vadd.f32 %v3474_v6, %v2400_v26 }
 0x2aa   : > { %v3462_v41 = vadd.f32 %v3461_v43, %v9094_v0  ;;  %v2416_v38 = vunpack.c.h.bf16 %v7426_v23  ;;  %v2417_v12 = vunpack.c.l.bf16 %v7436_v35  ;;  %v3488_v63 = vadd.f32 %v3487_v1, %v2412_v20  ;;  %v1483_v43 = vld [vmem:[%s4580_s28 + $0xd90] sm:$0xff]  ;;  %v7464_v6 = vpop.xlane.xlu1 %2685 }
 0x2ab   : > { %v3449_v46 = vadd.f32 %v3448_v45, %v9093_v33  ;;  %v9095_v32 = vunpack.c.l.bf16 %v7348_v34  ;;  %v3476_v45 = vadd.f32 %v3475_v13, %v2401_v48  ;;  %v2427_v60 = vunpack.c.l.bf16 %v1482_v57  ;;  %v7466_v23 = vpop.xlane.xlu0 %2702 }
 0x2ac   : > { %v3489_v48 = vadd.f32 %v3488_v63, %v2413_v42  ;;  %v2428_v26 = vunpack.c.h.bf16 %v1482_v57  ;;  %v3503_v44 = vadd.f32 %v2426_v39, %v2425_v37  ;;  %v2429_v1 = vunpack.c.l.bf16 %v1483_v43  ;;  %v7491_v39 = vld [vmem:[%s4580_s28 + $0xda8] sm:$0xff] }
 0x2ad   : > { %3450 = vadd.xlane.f32.xlu0 %v3449_v46  ;;  %v3463_v5 = vadd.f32 %v3462_v41, %v9095_v32  ;;  %v9096_v46 = vunpack.c.h.bf16 %v7348_v34  ;;  %v9097_v41 = vunpack.c.h.bf16 %v7373_v30  ;;  %v7476_v32 = vld [vmem:[%s4580_s28 + $0xd98] sm:$0xff]  ;;  %v7481_v29 = vpop.eup %4312  ;;  %v9099_v34 = vunpack.c.l.bf16 %v7356_v11 }
 0x2ae   : > { %v3490_v51 = vadd.f32 %v3489_v48, %v2414_v47  ;;  %9098 = vst [vmem:[#allocation111_spill] sm:$0xff] %v7481_v29  ;;  %v9100_v30 = vunpack.c.l.bf16 %v7384_v2  ;;  %v2430_v57 = vunpack.c.h.bf16 %v1483_v43  ;;  %v3504_v37 = vadd.f32 %v3503_v44, %v2427_v60  ;;  %v7497_v47 = vpop.eup %4314  ;;  %v7507_v60 = vld [vmem:[%s4580_s28 + $0xdb0] sm:$0xff] }
 0x2af   : > { %v3464_v0 = vadd.f32 %v3463_v5, %v9096_v46  ;;  %v3477_v13 = vadd.f32 %v3476_v45, %v9097_v41  ;;  %v7488_v5 = vld [vmem:[%s4580_s28 + $0xda0] sm:$0xff]  ;;  %v7493_v45 = vpop.xlane.xlu1 %2719  ;;  %v7495_v46 = vpop.xlane.xlu0 %2736  ;;  %9102 = vst [vmem:[#allocation113_spill] sm:$0xff] %v7497_v47  ;;  %v2432_v41 = vunpack.c.h.bf16 %v7476_v32  ;;  %v9104_v43 = vunpack.c.h.bf16 %v7384_v2 }
 0x2b0   : > { %9101 = vst [vmem:[#allocation112_spill] sm:$0xff] %v7495_v46  ;;  %v3491_v48 = vadd.f32 %v3490_v51, %v2415_v56  ;;  %v3505_v33 = vadd.f32 %v3504_v37, %v2428_v26  ;;  %v2442_v29 = vunpack.c.h.bf16 %v1489_v25  ;;  %v2433_v51 = vunpack.c.l.bf16 %v7488_v5 }
 0x2b1   : > { %v3465_v42 = vadd.f32 %v3464_v0, %v9099_v34  ;;  %v3478_v63 = vadd.f32 %v3477_v13, %v9100_v30  ;;  %v2431_v0 = vunpack.c.l.bf16 %v7476_v32  ;;  %v1490_v34 = vld [vmem:[%s4580_s28 + $0xdc8] sm:$0xff]  ;;  %v2441_v13 = vunpack.c.l.bf16 %v1489_v25  ;;  %v1497_v32 = vld [vmem:[%s4580_s28 + $0xe00] sm:$0xff] }
 0x2b2   : > { %v9103_v30 = vunpack.c.h.bf16 %v7356_v11  ;;  %v3492_v46 = vadd.f32 %v3491_v48, %v2416_v38  ;;  %v2434_v56 = vunpack.c.h.bf16 %v7488_v5  ;;  %v9105_v11 = vunpack.c.l.bf16 %v7401_v40  ;;  %v1491_v48 = vld [vmem:[%s4580_s28 + $0xdd0] sm:$0xff] }
 0x2b3   : > { %v3479_v44 = vadd.f32 %v3478_v63, %v9104_v43  ;;  %v3506_v26 = vadd.f32 %v3505_v33, %v2429_v1  ;;  %v2443_v25 = vunpack.c.l.bf16 %v1490_v34  ;;  %v7518_v38 = vpop.xlane.xlu1 %2753  ;;  %v7520_v63 = vpop.xlane.xlu0 %2770  ;;  %4316 = vrcp.f32 %v7124_v3  ;;  %v7529_v33 = vld [vmem:[%s4580_s28 + $0xdd8] sm:$0xff] }
 0x2b4   : > { %v3466_v20 = vadd.f32 %v3465_v42, %v9103_v30  ;;  %v7515_v30 = vld [vmem:[%s4580_s28 + $0xdb8] sm:$0xff]  ;;  %9106 = vst [vmem:[#allocation114_spill] sm:$0xff] %v7518_v38  ;;  %9107 = vst [vmem:[#allocation115_spill] sm:$0xff] %v7520_v63  ;;  %v3493_v37 = vadd.f32 %v3492_v46, %v2417_v12  ;;  %v9108_v43 = vunpack.c.h.bf16 %v7401_v40  ;;  %v2444_v1 = vunpack.c.h.bf16 %v1490_v34 }
 0x2b5   : > { %v3480_v42 = vadd.f32 %v3479_v44, %v9105_v11  ;;  %v3507_v11 = vadd.f32 %v3506_v26, %v2430_v57  ;;  %v3520_v2 = vadd.f32 %v2442_v29, %v2441_v13  ;;  %v9109_v12 = vunpack.c.h.bf16 %v7436_v35 }
 0x2b6   : > { %3467 = vadd.xlane.f32.xlu1 %v3466_v20  ;;  %4318 = vrcp.f32 %v7126_v27  ;;  %v9110_v3 = vunpack.c.l.bf16 %v7404_v7  ;;  %v2445_v34 = vunpack.c.l.bf16 %v1491_v48  ;;  %v9112_v35 = vunpack.c.l.bf16 %v7443_v58  ;;  %v1498_v27 = vld [vmem:[%s4580_s28 + $0xe08] sm:$0xff] }
 0x2b7   : > { %v3481_v44 = vadd.f32 %v3480_v42, %v9108_v43  ;;  %v3494_v46 = vadd.f32 %v3493_v37, %v9109_v12  ;;  %v3508_v57 = vadd.f32 %v3507_v11, %v2431_v0  ;;  %v7540_v42 = vld [vmem:[%s4580_s28 + $0xde0] sm:$0xff]  ;;  %v3521_v29 = vadd.f32 %v3520_v2, %v2443_v25  ;;  %v7542_v13 = vpop.xlane.xlu1 %2787  ;;  %v7547_v37 = vld [vmem:[%s4580_s28 + $0xde8] sm:$0xff]  ;;  %v7556_v5 = vpop.xlane.xlu0 %2804 }
 0x2b8   : > { %9111 = vst [vmem:[#allocation116_spill] sm:$0xff] %v7542_v13  ;;  %v2446_v43 = vunpack.c.h.bf16 %v1491_v48  ;;  %v2447_v12 = vunpack.c.l.bf16 %v7529_v33  ;;  %v2457_v20 = vunpack.c.l.bf16 %v1497_v32  ;;  %v2458_v25 = vunpack.c.h.bf16 %v1497_v32  ;;  %9114 = vst [vmem:[#allocation117_spill] sm:$0xff] %v7556_v5 }
 0x2b9   : > { %v3482_v40 = vadd.f32 %v3481_v44, %v9110_v3  ;;  %v3495_v26 = vadd.f32 %v3494_v46, %v9112_v35  ;;  %v9113_v44 = vunpack.c.h.bf16 %v7404_v7  ;;  %v3509_v11 = vadd.f32 %v3508_v57, %v2432_v41  ;;  %v7554_v3 = vld [vmem:[%s4580_s28 + $0xdf0] sm:$0xff]  ;;  %v7564_v41 = vld [vmem:[%s4580_s28 + $0xdf8] sm:$0xff] }
 0x2ba   : > { %v3522_v2 = vadd.f32 %v3521_v29, %v2444_v1  ;;  %v9115_v46 = vunpack.c.h.bf16 %v7443_v58  ;;  %v2448_v48 = vunpack.c.h.bf16 %v7529_v33  ;;  %v2449_v47 = vunpack.c.l.bf16 %v7540_v42 }
 0x2bb   : > { %v3483_v0 = vadd.f32 %v3482_v40, %v9113_v44  ;;  %v2450_v13 = vunpack.c.h.bf16 %v7540_v42  ;;  %v3510_v7 = vadd.f32 %v3509_v11, %v2433_v51  ;;  %v1499_v40 = vld [vmem:[%s4580_s28 + $0xe10] sm:$0xff]  ;;  %v2459_v57 = vunpack.c.l.bf16 %v1498_v27  ;;  %v7568_v29 = vpop.xlane.xlu1 %2821  ;;  %v7576_v11 = vld [vmem:[%s4580_s28 + $0xe18] sm:$0xff] }
 0x2bc   : > { %v3496_v35 = vadd.f32 %v3495_v26, %v9115_v46  ;;  %v3523_v32 = vadd.f32 %v3522_v2, %v2445_v34  ;;  %9116 = vst [vmem:[#allocation118_spill] sm:$0xff] %v7568_v29  ;;  %v9117_v58 = vunpack.c.l.bf16 %v7452_v10  ;;  %v7579_v34 = vld [vmem:[%s4580_s28 + $0xe20] sm:$0xff]  ;;  %v2460_v2 = vunpack.c.h.bf16 %v1498_v27 }
 0x2bd   : > { %3484 = vadd.xlane.f32.xlu0 %v3483_v0  ;;  %v3511_v51 = vadd.f32 %v3510_v7, %v2434_v56  ;;  %v3537_v46 = vadd.f32 %v2458_v25, %v2457_v20  ;;  %v7581_v1 = vpop.eup %4316  ;;  %v2461_v44 = vunpack.c.l.bf16 %v1499_v40  ;;  %v9120_v56 = vunpack.c.l.bf16 %v7491_v39  ;;  %v1505_v25 = vld [vmem:[%s4580_s28 + $0xe40] sm:$0xff] }
 0x2be   : > { %v3497_v33 = vadd.f32 %v3496_v35, %v9117_v58  ;;  %v3524_v0 = vadd.f32 %v3523_v32, %v2446_v43  ;;  %9118 = vst [vmem:[#allocation119_spill] sm:$0xff] %v7581_v1  ;;  %v9119_v35 = vunpack.c.h.bf16 %v7452_v10  ;;  %v7590_v32 = vld [vmem:[%s4580_s28 + $0xe28] sm:$0xff]  ;;  %v2462_v20 = vunpack.c.h.bf16 %v1499_v40  ;;  %v7593_v1 = vpop.xlane.xlu0 %2838 }
 0x2bf   : > { %v3512_v43 = vadd.f32 %v3511_v51, %v9120_v56  ;;  %v3538_v27 = vadd.f32 %v3537_v46, %v2459_v57  ;;  %9121 = vst [vmem:[#allocation120_spill] sm:$0xff] %v7593_v1  ;;  %v2463_v42 = vunpack.c.l.bf16 %v7576_v11  ;;  %v2464_v26 = vunpack.c.h.bf16 %v7576_v11  ;;  %v7605_v57 = vld [vmem:[%s4580_s28 + $0xe30] sm:$0xff]  ;;  %v7608_v46 = vld [vmem:[%s4580_s28 + $0xe38] sm:$0xff] }
 0x2c0   : > { %v3498_v58 = vadd.f32 %v3497_v33, %v9119_v35  ;;  %v3525_v7 = vadd.f32 %v3524_v0, %v2447_v12  ;;  %v7595_v10 = vpop.eup %4318  ;;  %v9123_v33 = vunpack.c.l.bf16 %v7460_v22  ;;  %v2465_v51 = vunpack.c.l.bf16 %v7579_v34 }
 0x2c1   : > { %9122 = vst [vmem:[#allocation121_spill] sm:$0xff] %v7595_v10  ;;  %v9124_v12 = vunpack.c.h.bf16 %v7491_v39  ;;  %v3539_v10 = vadd.f32 %v3538_v27, %v2460_v2  ;;  %v9126_v11 = vunpack.c.h.bf16 %v7460_v22  ;;  %v2473_v39 = vunpack.c.l.bf16 %v1505_v25  ;;  %v1507_v27 = vld [vmem:[%s4580_s28 + $0xe50] sm:$0xff] }
 0x2c2   : > { %v3499_v35 = vadd.f32 %v3498_v58, %v9123_v33  ;;  %v3526_v40 = vadd.f32 %v3525_v7, %v2448_v48  ;;  %v1506_v58 = vld [vmem:[%s4580_s28 + $0xe48] sm:$0xff]  ;;  %v7612_v33 = vpop.xlane.xlu1 %2855  ;;  %v9127_v48 = vunpack.c.l.bf16 %v7507_v60  ;;  %v9128_v29 = vunpack.c.h.bf16 %v7507_v60 }
 0x2c3   : > { %v3513_v0 = vadd.f32 %v3512_v43, %v9124_v12  ;;  %9125 = vst [vmem:[#allocation122_spill] sm:$0xff] %v7612_v33  ;;  %v2474_v43 = vunpack.c.h.bf16 %v1505_v25  ;;  %v3540_v2 = vadd.f32 %v3539_v10, %v2461_v44  ;;  %v2475_v25 = vunpack.c.l.bf16 %v1506_v58  ;;  %v7631_v10 = vld [vmem:[%s4580_s28 + $0xe60] sm:$0xff] }
 0x2c4   : > { %v3500_v1 = vadd.f32 %v3499_v35, %v9126_v11  ;;  %v3527_v12 = vadd.f32 %v3526_v40, %v2449_v47  ;;  %v7625_v11 = vld [vmem:[%s4580_s28 + $0xe58] sm:$0xff]  ;;  %v7634_v40 = vpop.xlane.xlu0 %2872  ;;  %v2476_v22 = vunpack.c.h.bf16 %v1506_v58  ;;  %v2477_v35 = vunpack.c.l.bf16 %v1507_v27  ;;  %v7647_v47 = vld [vmem:[%s4580_s28 + $0xe70] sm:$0xff] }
 0x2c5   : > { %v3514_v7 = vadd.f32 %v3513_v0, %v9127_v48  ;;  %v3541_v44 = vadd.f32 %v3540_v2, %v2462_v20  ;;  %9129 = vst [vmem:[#allocation123_spill] sm:$0xff] %v7634_v40  ;;  %v2478_v33 = vunpack.c.h.bf16 %v1507_v27  ;;  %v3554_v56 = vadd.f32 %v2474_v43, %v2473_v39  ;;  %v1514_v27 = vld [vmem:[%s4580_s28 + $0xe88] sm:$0xff]  ;;  %v7657_v40 = vld [vmem:[%s4580_s28 + $0xe78] sm:$0xff] }
 0x2c6   : > { %3501 = vadd.xlane.f32.xlu1 %v3500_v1  ;;  %v3528_v48 = vadd.f32 %v3527_v12, %v2450_v13  ;;  %v1513_v1 = vld [vmem:[%s4580_s28 + $0xe80] sm:$0xff]  ;;  %v9130_v5 = vunpack.c.l.bf16 %v7515_v30  ;;  %v9131_v13 = vunpack.c.l.bf16 %v7547_v37  ;;  %v7641_v12 = vld [vmem:[%s4580_s28 + $0xe68] sm:$0xff]  ;;  %v2479_v20 = vunpack.c.l.bf16 %v7625_v11  ;;  %v7644_v2 = vpop.xlane.xlu1 %2889 }
 0x2c7   : > { %v3515_v0 = vadd.f32 %v3514_v7, %v9128_v29  ;;  %v3542_v7 = vadd.f32 %v3541_v44, %v2463_v42  ;;  %9132 = vst [vmem:[#allocation124_spill] sm:$0xff] %v7644_v2  ;;  %v2480_v58 = vunpack.c.h.bf16 %v7625_v11  ;;  %v3555_v43 = vadd.f32 %v3554_v56, %v2475_v25  ;;  %v1521_v11 = vld [vmem:[%s4580_s28 + $0xec0] sm:$0xff] }
 0x2c8   : > { %v3529_v29 = vadd.f32 %v3528_v48, %v9131_v13  ;;  %v9134_v48 = vunpack.c.h.bf16 %v7547_v37  ;;  %v2490_v2 = vunpack.c.h.bf16 %v1513_v1  ;;  %v9135_v39 = vunpack.c.l.bf16 %v7554_v3 }
 0x2c9   : > { %v3516_v60 = vadd.f32 %v3515_v0, %v9130_v5  ;;  %v2489_v5 = vunpack.c.l.bf16 %v1513_v1  ;;  %v9133_v0 = vunpack.c.h.bf16 %v7515_v30  ;;  %v3543_v13 = vadd.f32 %v3542_v7, %v2464_v26  ;;  %v1515_v26 = vld [vmem:[%s4580_s28 + $0xe90] sm:$0xff]  ;;  %v7669_v7 = vpop.xlane.xlu0 %2906 }
 0x2ca   : > { %v3530_v44 = vadd.f32 %v3529_v29, %v9134_v48  ;;  %v3556_v25 = vadd.f32 %v3555_v43, %v2476_v22  ;;  %v7667_v29 = vld [vmem:[%s4580_s28 + $0xe98] sm:$0xff]  ;;  %v2491_v1 = vunpack.c.l.bf16 %v1514_v27  ;;  %9136 = vst [vmem:[#allocation125_spill] sm:$0xff] %v7669_v7  ;;  %v2492_v37 = vunpack.c.h.bf16 %v1514_v27  ;;  %v7693_v27 = vld [vmem:[%s4580_s28 + $0xeb0] sm:$0xff] }
 0x2cb   : > { %v3517_v42 = vadd.f32 %v3516_v60, %v9133_v0  ;;  %v3544_v60 = vadd.f32 %v3543_v13, %v2465_v51  ;;  %v7679_v13 = vld [vmem:[%s4580_s28 + $0xea0] sm:$0xff]  ;;  %v3571_v56 = vadd.f32 %v2490_v2, %v2489_v5  ;;  %v7682_v0 = vpop.xlane.xlu1 %2923  ;;  %v2493_v63 = vunpack.c.l.bf16 %v1515_v26 }
 0x2cc   : > { %v3531_v30 = vadd.f32 %v3530_v44, %v9135_v39  ;;  %v3557_v43 = vadd.f32 %v3556_v25, %v2477_v35  ;;  %v9137_v39 = vunpack.c.h.bf16 %v7554_v3  ;;  %9139 = vst [vmem:[#allocation126_spill] sm:$0xff] %v7682_v0  ;;  %v2494_v22 = vunpack.c.h.bf16 %v1515_v26  ;;  %v7704_v0 = vld [vmem:[%s4580_s28 + $0xeb8] sm:$0xff]  ;;  %v7725_v26 = vld [vmem:[%s4580_s28 + $0xee0] sm:$0xff] }
 0x2cd   : > { %3518 = vadd.xlane.f32.xlu0 %v3517_v42  ;;  %v9138_v42 = vunpack.c.h.bf16 %v7579_v34  ;;  %v2495_v35 = vunpack.c.l.bf16 %v7667_v29  ;;  %v9140_v3 = vunpack.c.l.bf16 %v7564_v41  ;;  %v9141_v34 = vunpack.c.l.bf16 %v7590_v32 }
 0x2ce   : > { %v3532_v51 = vadd.f32 %v3531_v30, %v9137_v39  ;;  %v3558_v48 = vadd.f32 %v3557_v43, %v2478_v33  ;;  %v2496_v2 = vunpack.c.h.bf16 %v7667_v29  ;;  %v3572_v5 = vadd.f32 %v3571_v56, %v2491_v1  ;;  %v1522_v39 = vld [vmem:[%s4580_s28 + $0xec8] sm:$0xff]  ;;  %v7706_v56 = vpop.xlane.xlu0 %2940 }
 0x2cf   : > { %v3545_v44 = vadd.f32 %v3544_v60, %v9138_v42  ;;  %v7690_v60 = vld [vmem:[%s4580_s28 + $0xea8] sm:$0xff]  ;;  %v2497_v43 = vunpack.c.l.bf16 %v7679_v13  ;;  %v2505_v42 = vunpack.c.l.bf16 %v1521_v11  ;;  %v2506_v29 = vunpack.c.h.bf16 %v1521_v11  ;;  %9144 = vst [vmem:[#allocation127_spill] sm:$0xff] %v7706_v56 }
 0x2d0   : > { %v3533_v25 = vadd.f32 %v3532_v51, %v9140_v3  ;;  %v3559_v33 = vadd.f32 %v3558_v48, %v2479_v20  ;;  %v9142_v51 = vunpack.c.h.bf16 %v7564_v41  ;;  %v3573_v7 = vadd.f32 %v3572_v5, %v2492_v37  ;;  %v1523_v41 = vld [vmem:[%s4580_s28 + $0xed0] sm:$0xff] }
 0x2d1   : > { %v3546_v30 = vadd.f32 %v3545_v44, %v9141_v34  ;;  %v9143_v44 = vunpack.c.h.bf16 %v7590_v32  ;;  %v9145_v32 = vunpack.c.l.bf16 %v7605_v57  ;;  %v2507_v5 = vunpack.c.l.bf16 %v1522_v39 }
 0x2d2   : > { %v3534_v3 = vadd.f32 %v3533_v25, %v9142_v51  ;;  %v3560_v20 = vadd.f32 %v3559_v33, %v2480_v58  ;;  %v3574_v11 = vadd.f32 %v3573_v7, %v2493_v63  ;;  %v7718_v58 = vpop.xlane.xlu1 %2957  ;;  %v9147_v33 = vunpack.c.l.bf16 %v7631_v10  ;;  %v7730_v7 = vld [vmem:[%s4580_s28 + $0xee8] sm:$0xff] }
 0x2d3   : > { %v3547_v34 = vadd.f32 %v3546_v30, %v9143_v44  ;;  %v7716_v30 = vld [vmem:[%s4580_s28 + $0xed8] sm:$0xff]  ;;  %9146 = vst [vmem:[#allocation128_spill] sm:$0xff] %v7718_v58  ;;  %v2509_v48 = vunpack.c.l.bf16 %v1523_v41  ;;  %v3588_v1 = vadd.f32 %v2506_v29, %v2505_v42  ;;  %v1529_v58 = vld [vmem:[%s4580_s28 + $0xf00] sm:$0xff]  ;;  %v2510_v44 = vunpack.c.h.bf16 %v1523_v41  ;;  %v7743_v29 = vpop.xlane.xlu0 %2974 }
 0x2d4   : > { %3535 = vadd.xlane.f32.xlu1 %v3534_v3  ;;  %v3561_v51 = vadd.f32 %v3560_v20, %v9147_v33  ;;  %v3575_v63 = vadd.f32 %v3574_v11, %v2494_v22  ;;  %v9149_v20 = vunpack.c.h.bf16 %v7631_v10  ;;  %v2511_v3 = vunpack.c.l.bf16 %v7716_v30  ;;  %9151 = vst [vmem:[#allocation129_spill] sm:$0xff] %v7743_v29  ;;  %v7748_v41 = vld [vmem:[%s4580_s28 + $0xef8] sm:$0xff] }
 0x2d5   : > { %v3548_v25 = vadd.f32 %v3547_v34, %v9145_v32  ;;  %v2508_v34 = vunpack.c.h.bf16 %v1522_v39  ;;  %v9148_v32 = vunpack.c.h.bf16 %v7605_v57  ;;  %v2512_v56 = vunpack.c.h.bf16 %v7716_v30 }
 0x2d6   : > { %v3562_v33 = vadd.f32 %v3561_v51, %v9149_v20  ;;  %v9150_v39 = vunpack.c.l.bf16 %v7608_v46  ;;  %v3576_v22 = vadd.f32 %v3575_v63, %v2495_v35  ;;  %v3589_v42 = vadd.f32 %v3588_v1, %v2507_v5  ;;  %v1530_v20 = vld [vmem:[%s4580_s28 + $0xf08] sm:$0xff]  ;;  %v7756_v5 = vld [vmem:[%s4580_s28 + $0xf10] sm:$0xff]  ;;  %v7758_v29 = vpop.xlane.xlu1 %2991 }
 0x2d7   : > { %v3549_v37 = vadd.f32 %v3548_v25, %v9148_v32  ;;  %v7740_v25 = vld [vmem:[%s4580_s28 + $0xef0] sm:$0xff]  ;;  %v9152_v10 = vunpack.c.l.bf16 %v7641_v12  ;;  %v9153_v35 = vunpack.c.h.bf16 %v7608_v46  ;;  %v2522_v11 = vunpack.c.h.bf16 %v1529_v58  ;;  %9154 = vst [vmem:[#allocation130_spill] sm:$0xff] %v7758_v29  ;;  %v7785_v32 = vpop.xlane.xlu0 %3008 }
 0x2d8   : > { %v3590_v1 = vadd.f32 %v3589_v42, %v2508_v34  ;;  %v2523_v42 = vunpack.c.l.bf16 %v1530_v20  ;;  %v2525_v30 = vunpack.c.l.bf16 %v7756_v5  ;;  %9158 = vst [vmem:[#allocation131_spill] sm:$0xff] %v7785_v32  ;;  %v7895_v29 = vld [vmem:[%s4580_s28 + $0xfb0] sm:$0xff] }
 0x2d9   : > { %v3550_v57 = vadd.f32 %v3549_v37, %v9150_v39  ;;  %v3563_v51 = vadd.f32 %v3562_v33, %v9152_v10  ;;  %v2521_v37 = vunpack.c.l.bf16 %v1529_v58  ;;  %v3577_v39 = vadd.f32 %v3576_v22, %v2496_v2  ;;  %v7767_v22 = vld [vmem:[%s4580_s28 + $0xf18] sm:$0xff]  ;;  %v7770_v58 = vld [vmem:[%s4580_s28 + $0xf20] sm:$0xff] }
 0x2da   : > { %v9155_v33 = vunpack.c.h.bf16 %v7641_v12  ;;  %v3591_v34 = vadd.f32 %v3590_v1, %v2509_v48  ;;  %v9156_v12 = vunpack.c.l.bf16 %v7647_v47  ;;  %v7779_v48 = vld [vmem:[%s4580_s28 + $0xf28] sm:$0xff]  ;;  %v7782_v1 = vld [vmem:[%s4580_s28 + $0xf30] sm:$0xff]  ;;  %v2526_v2 = vunpack.c.h.bf16 %v7756_v5  ;;  %v7799_v5 = vpop.xlane.xlu1 %3025 }
 0x2db   : > { %v3551_v63 = vadd.f32 %v3550_v57, %v9153_v35  ;;  %v3578_v57 = vadd.f32 %v3577_v39, %v2497_v43  ;;  %v3605_v46 = vadd.f32 %v2522_v11, %v2521_v37  ;;  %v2528_v35 = vunpack.c.h.bf16 %v7767_v22  ;;  %9161 = vst [vmem:[#allocation132_spill] sm:$0xff] %v7799_v5  ;;  %v7811_v5 = vld [vmem:[%s4580_s28 + $0xf50] sm:$0xff]  ;;  %v1545_v11 = vld [vmem:[%s4580_s28 + $0xf80] sm:$0xff] }
 0x2dc   : > { %v3564_v10 = vadd.f32 %v3563_v51, %v9155_v33  ;;  %v2524_v33 = vunpack.c.h.bf16 %v1530_v20  ;;  %v3592_v39 = vadd.f32 %v3591_v34, %v2510_v44  ;;  %v2527_v20 = vunpack.c.l.bf16 %v7767_v22 }
 0x2dd   : > { %3552 = vadd.xlane.f32.xlu0 %v3551_v63  ;;  %v9157_v63 = vunpack.c.h.bf16 %v7679_v13  ;;  %v9160_v44 = vunpack.c.l.bf16 %v7690_v60  ;;  %v3606_v37 = vadd.f32 %v3605_v46, %v2523_v42  ;;  %v1538_v42 = vld [vmem:[%s4580_s28 + $0xf48] sm:$0xff]  ;;  %v7817_v13 = vld [vmem:[%s4580_s28 + $0xf58] sm:$0xff]  ;;  %v2553_v38 = vunpack.c.l.bf16 %v1545_v11 }
 0x2de   : > { %v3565_v51 = vadd.f32 %v3564_v10, %v9156_v12  ;;  %v9159_v10 = vunpack.c.h.bf16 %v7647_v47  ;;  %v3593_v34 = vadd.f32 %v3592_v39, %v2511_v3  ;;  %v1537_v47 = vld [vmem:[%s4580_s28 + $0xf40] sm:$0xff]  ;;  %v9163_v3 = vunpack.c.h.bf16 %v7690_v60 }
 0x2df   : > { %v3579_v43 = vadd.f32 %v3578_v57, %v9157_v63  ;;  %v7795_v63 = vld [vmem:[%s4580_s28 + $0xf38] sm:$0xff]  ;;  %v3607_v46 = vadd.f32 %v3606_v37, %v2524_v33  ;;  %v2538_v32 = vunpack.c.h.bf16 %v1537_v47  ;;  %v9165_v60 = vunpack.c.l.bf16 %v7693_v27  ;;  %v7839_v33 = vld [vmem:[%s4580_s28 + $0xf70] sm:$0xff] }
 0x2e0   : > { %v3566_v12 = vadd.f32 %v3565_v51, %v9159_v10  ;;  %v9162_v51 = vunpack.c.l.bf16 %v7657_v40  ;;  %v2541_v10 = vunpack.c.l.bf16 %v7811_v5 }
 0x2e1   : > { %v3580_v57 = vadd.f32 %v3579_v43, %v9160_v44  ;;  %v3594_v44 = vadd.f32 %v3593_v34, %v2512_v56  ;;  %v2537_v43 = vunpack.c.l.bf16 %v1537_v47  ;;  %v3608_v37 = vadd.f32 %v3607_v46, %v2525_v30 }
 0x2e2   : > { %v3567_v22 = vadd.f32 %v3566_v12, %v9162_v51  ;;  %v9164_v12 = vunpack.c.h.bf16 %v7657_v40  ;;  %v7827_v40 = vpop.xlane.xlu0 %3042  ;;  %v2540_v47 = vunpack.c.h.bf16 %v1538_v42 }
 0x2e3   : > { %v3581_v39 = vadd.f32 %v3580_v57, %v9163_v3  ;;  %v9166_v57 = vunpack.c.l.bf16 %v7725_v26  ;;  %v7825_v3 = vld [vmem:[%s4580_s28 + $0xf60] sm:$0xff]  ;;  %9167 = vst [vmem:[#allocation133_spill] sm:$0xff] %v7827_v40  ;;  %v3609_v46 = vadd.f32 %v3608_v37, %v2526_v2  ;;  %v7843_v40 = vpop.xlane.xlu1 %3059 }
 0x2e4   : > { %v3568_v51 = vadd.f32 %v3567_v22, %v9164_v12  ;;  %v7830_v22 = vld [vmem:[%s4580_s28 + $0xf68] sm:$0xff]  ;;  %v2539_v12 = vunpack.c.l.bf16 %v1538_v42  ;;  %9170 = vst [vmem:[#allocation134_spill] sm:$0xff] %v7843_v40 }
 0x2e5   : > { %v3582_v56 = vadd.f32 %v3581_v39, %v9165_v60  ;;  %v3595_v34 = vadd.f32 %v3594_v44, %v9166_v57  ;;  %v2542_v39 = vunpack.c.h.bf16 %v7811_v5  ;;  %v9168_v44 = vunpack.c.h.bf16 %v7693_v27  ;;  %v1546_v27 = vld [vmem:[%s4580_s28 + $0xf88] sm:$0xff] }
 0x2e6   : > { %3569 = vadd.xlane.f32.xlu1 %v3568_v51  ;;  %v9169_v57 = vunpack.c.h.bf16 %v7725_v26  ;;  %v2543_v51 = vunpack.c.l.bf16 %v7817_v13  ;;  %v3622_v5 = vadd.f32 %v2538_v32, %v2537_v43  ;;  %v9171_v26 = vunpack.c.l.bf16 %v7704_v0  ;;  %v7870_v42 = vpop.xlane.xlu0 %3076 }
 0x2e7   : > { %v3583_v60 = vadd.f32 %v3582_v56, %v9168_v44  ;;  %v9172_v56 = vunpack.c.l.bf16 %v7730_v7  ;;  %v3610_v37 = vadd.f32 %v3609_v46, %v2527_v20  ;;  %v7853_v44 = vld [vmem:[%s4580_s28 + $0xf78] sm:$0xff]  ;;  %v9173_v32 = vunpack.c.h.bf16 %v7704_v0  ;;  %v7864_v46 = vld [vmem:[%s4580_s28 + $0xf90] sm:$0xff]  ;;  %9175 = vst [vmem:[#allocation135_spill] sm:$0xff] %v7870_v42 }
 0x2e8   : > { %v3596_v30 = vadd.f32 %v3595_v34, %v9169_v57  ;;  %v3623_v40 = vadd.f32 %v3622_v5, %v2539_v12  ;;  %v2556_v5 = vunpack.c.h.bf16 %v1546_v27  ;;  %v7885_v12 = vpop.xlane.xlu1 %3093 }
 0x2e9   : > { %v3584_v2 = vadd.f32 %v3583_v60, %v9171_v26  ;;  %v9174_v60 = vunpack.c.h.bf16 %v7730_v7  ;;  %v3611_v20 = vadd.f32 %v3610_v37, %v2528_v35  ;;  %v7867_v26 = vld [vmem:[%s4580_s28 + $0xf98] sm:$0xff]  ;;  %v9176_v7 = vunpack.c.l.bf16 %v7740_v25  ;;  %9178 = vst [vmem:[#allocation136_spill] sm:$0xff] %v7885_v12 }
 0x2ea   : > { %v3597_v34 = vadd.f32 %v3596_v30, %v9172_v56  ;;  %v2554_v56 = vunpack.c.h.bf16 %v1545_v11  ;;  %v7880_v11 = vld [vmem:[%s4580_s28 + $0xfa0] sm:$0xff]  ;;  %v7930_v12 = vld [vmem:[%s4580_s28 + $0xfd8] sm:$0xff] }
 0x2eb   : > { %v3585_v43 = vadd.f32 %v3584_v2, %v9173_v32  ;;  %v3624_v2 = vadd.f32 %v3623_v40, %v2540_v47  ;;  %v7883_v32 = vld [vmem:[%s4580_s28 + $0xfa8] sm:$0xff]  ;;  %v2557_v40 = vunpack.c.l.bf16 %v7864_v46  ;;  %v2558_v47 = vunpack.c.h.bf16 %v7864_v46 }
 0x2ec   : > { %v3598_v30 = vadd.f32 %v3597_v34, %v9174_v60  ;;  %v9177_v34 = vunpack.c.l.bf16 %v7770_v58  ;;  %v2555_v60 = vunpack.c.l.bf16 %v1546_v27  ;;  %v3639_v57 = vadd.f32 %v2554_v56, %v2553_v38  ;;  %v7912_v38 = vld [vmem:[%s4580_s28 + $0xfb8] sm:$0xff] }
 0x2ed   : > { %3586 = vadd.xlane.f32.xlu0 %v3585_v43  ;;  %v3625_v0 = vadd.f32 %v3624_v2, %v2541_v10  ;;  %v2559_v43 = vunpack.c.l.bf16 %v7867_v26  ;;  %v1553_v10 = vld [vmem:[%s4580_s28 + $0xfc0] sm:$0xff]  ;;  %v9185_v56 = vunpack.c.h.bf16 %v7779_v48 }
 0x2ee   : > { %v3599_v35 = vadd.f32 %v3598_v30, %v9176_v7  ;;  %v3612_v37 = vadd.f32 %v3611_v20, %v9177_v34  ;;  %v9179_v30 = vunpack.c.h.bf16 %v7740_v25  ;;  %v9180_v7 = vunpack.c.h.bf16 %v7770_v58 }
 0x2ef   : > { %v3626_v46 = vadd.f32 %v3625_v0, %v2542_v39  ;;  %v9181_v58 = vunpack.c.l.bf16 %v7748_v41  ;;  %v3640_v27 = vadd.f32 %v3639_v57, %v2555_v60  ;;  %v7916_v39 = vld [vmem:[%s4580_s28 + $0xfc8] sm:$0xff]  ;;  %v7918_v0 = vpop.xlane.xlu0 %3110 }
 0x2f0   : > { %v3600_v20 = vadd.f32 %v3599_v35, %v9179_v30  ;;  %v3613_v34 = vadd.f32 %v3612_v37, %v9180_v7  ;;  %v9182_v30 = vunpack.c.l.bf16 %v7779_v48  ;;  %9183 = vst [vmem:[#allocation137_spill] sm:$0xff] %v7918_v0  ;;  %v2570_v0 = vunpack.c.h.bf16 %v1553_v10 }
 0x2f1   : > { %v3627_v25 = vadd.f32 %v3626_v46, %v2543_v51  ;;  %v3641_v60 = vadd.f32 %v3640_v27, %v2556_v5  ;;  %v7933_v51 = vpop.xlane.xlu1 %3127  ;;  %v9186_v46 = vunpack.c.h.bf16 %v7817_v13  ;;  %v2571_v48 = vunpack.c.l.bf16 %v7916_v39 }
 0x2f2   : > { %v3601_v37 = vadd.f32 %v3600_v20, %v9181_v58  ;;  %v3614_v7 = vadd.f32 %v3613_v34, %v9182_v30  ;;  %v7923_v20 = vld [vmem:[%s4580_s28 + $0xfd0] sm:$0xff]  ;;  %v2569_v58 = vunpack.c.l.bf16 %v1553_v10  ;;  %v9184_v34 = vunpack.c.h.bf16 %v7748_v41  ;;  %v7940_v41 = vld [vmem:[%s4580_s28 + $0xfe0] sm:$0xff] }
 0x2f3   : > { %v3628_v2 = vadd.f32 %v3627_v25, %v9186_v46  ;;  %v9187_v5 = vunpack.c.l.bf16 %v7782_v1  ;;  %v3642_v10 = vadd.f32 %v3641_v60, %v2557_v40  ;;  %v2573_v13 = vunpack.c.l.bf16 %v7923_v20  ;;  %v7966_v42 = vpop.xlane.xlu0 %3144 }
 0x2f4   : > { %v3602_v30 = vadd.f32 %v3601_v37, %v9184_v34  ;;  %v3615_v57 = vadd.f32 %v3614_v7, %v9185_v56  ;;  %v7946_v37 = vld [vmem:[%s4580_s28 + $0xfe8] sm:$0xff]  ;;  %v2572_v7 = vunpack.c.h.bf16 %v7916_v39  ;;  %v9188_v25 = vunpack.c.l.bf16 %v7825_v3 }
 0x2f5   : > { %v2574_v34 = vunpack.c.h.bf16 %v7923_v20  ;;  %v2575_v46 = vunpack.c.l.bf16 %v7930_v12  ;;  %v9189_v40 = vunpack.c.h.bf16 %v7782_v1  ;;  %v3643_v60 = vadd.f32 %v3642_v10, %v2558_v47 }
 0x2f6   : > { %3603 = vadd.xlane.f32.xlu1 %v3602_v30  ;;  %v3616_v27 = vadd.f32 %v3615_v57, %v9187_v5  ;;  %v3629_v56 = vadd.f32 %v3628_v2, %v9188_v25  ;;  %v7963_v2 = vld [vmem:[%s4580_s28 + $0xff0] sm:$0xff]  ;;  %v2577_v5 = vunpack.c.l.bf16 %v7940_v41  ;;  %v3656_v25 = vadd.f32 %v2570_v0, %v2569_v58  ;;  %v7981_v58 = vld [vmem:[%s4580_s28 + $0xff8] sm:$0xff] }
 0x2f7   : > { %v9190_v35 = vunpack.c.h.bf16 %v7825_v3  ;;  %v7978_v0 = vadd.f32 %v3643_v60, %v2559_v43  ;;  %v8178_v43 = vpop.xlane.xlu1 %3161  ;;  %v9194_v47 = vunpack.c.h.bf16 %v7867_v26  ;;  %v9196_v26 = vunpack.c.l.bf16 %v7880_v11 }
 0x2f8   : > { %v3617_v57 = vadd.f32 %v3616_v27, %v9189_v40  ;;  %v9191_v27 = vunpack.c.l.bf16 %v7795_v63  ;;  %v934_v20 = vmul.f32 %v5828_v53, %v4918_v55 }
 0x2f9   : > { %v7970_v30 = vadd.f32 %v3629_v56, %v9190_v35  ;;  %v7984_v35 = vadd.f32 %v3656_v25, %v2571_v48  ;;  %v4467_v56 = vmov 0.0   ;;  %v9192_v48 = vunpack.c.l.bf16 %v7830_v22 }
 0x2fa   : > { %v7976_v10 = vadd.f32 %v3617_v57, %v9191_v27  ;;  %216 = vst.msk [vmem:[%s7958_s6] sm:$0xff] %vm215_vm0, %v4467_v56  ;;  %217 = vst.msk [vmem:[%s7958_s6 + $0x8] sm:$0xff] %vm215_vm0, %v4467_v56  ;;  %v2581_v57 = vunpack.c.l.bf16 %v7963_v2  ;;  %v922_v25 = vmul.f32 %v5758_v14, %v4860_v19  ;;  %v9193_v27 = vunpack.c.h.bf16 %v7795_v63 }
 0x2fb   : > { %218 = vst.msk [vmem:[%s7958_s6 + $0x10] sm:$0xff] %vm215_vm0, %v4467_v56  ;;  %219 = vst.msk [vmem:[%s7958_s6 + $0x18] sm:$0xff] %vm215_vm0, %v4467_v56  ;;  %v3631_v40 = vadd.f32 %v7970_v30, %v9192_v48  ;;  %v3658_v1 = vadd.f32 %v7984_v35, %v2572_v7  ;;  %v924_v30 = vmul.f32 %v5770_v49, %v4878_v54  ;;  %v9195_v48 = vunpack.c.h.bf16 %v7830_v22  ;;  %v8211_v22 = vpop.xlane.xlu0 %3178 }
 0x2fc   : > { %220 = vst.msk [vmem:[%s7958_s6 + $0x20] sm:$0xff] %vm215_vm0, %v4467_v56  ;;  %221 = vst.msk [vmem:[%s7958_s6 + $0x28] sm:$0xff] %vm215_vm0, %v4467_v56  ;;  %v3619_v3 = vadd.f32 %v7976_v10, %v9193_v27  ;;  %v2583_v19 = vunpack.c.l.bf16 %v7981_v58  ;;  %v3737_v14 = vmul.f32 %v7389_v16, %v922_v25  ;;  %v926_v63 = vmul.f32 %v5780_v8, %v4863_v31 }
 0x2fd   : > { %222 = vst.msk [vmem:[%s7958_s6 + $0x30] sm:$0xff] %vm215_vm0, %v4467_v56  ;;  %223 = vst.msk [vmem:[%s7958_s6 + $0x38] sm:$0xff] %vm215_vm0, %v4467_v56  ;;  %v3632_v60 = vadd.f32 %v3631_v40, %v9195_v48  ;;  %v3659_v7 = vadd.f32 %v3658_v1, %v2573_v13  ;;  %v3738_v54 = vmul.f32 %v7414_v59, %v924_v30  ;;  %v9197_v16 = vunpack.c.l.bf16 %v7839_v33 }
 0x2fe   : > { %224 = vst.msk [vmem:[%s7958_s6 + $0x40] sm:$0xff] %vm215_vm0, %v4467_v56  ;;  %225 = vst.msk [vmem:[%s7958_s6 + $0x48] sm:$0xff] %vm215_vm0, %v4467_v56  ;;  %3620 = vadd.xlane.f32.xlu0 %v3619_v3  ;;  %v928_v49 = vmul.f32 %v5795_v4, %v4880_v17  ;;  %v2584_v8 = vunpack.c.h.bf16 %v7981_v58  ;;  %v930_v10 = vmul.f32 %v5804_v24, %v4897_v18  ;;  %v9198_v13 = vunpack.c.h.bf16 %v7880_v11 }
 0x2ff   : > { %226 = vst.msk [vmem:[%s7958_s6 + $0x50] sm:$0xff] %vm215_vm0, %v4467_v56  ;;  %227 = vst.msk [vmem:[%s7958_s6 + $0x58] sm:$0xff] %vm215_vm0, %v4467_v56  ;;  %v3633_v31 = vadd.f32 %v3632_v60, %v9197_v16  ;;  %v3660_v59 = vadd.f32 %v3659_v7, %v2574_v34  ;;  %v932_v4 = vmul.f32 %v5819_v36, %v4900_v21  ;;  %v9200_v21 = vunpack.c.l.bf16 %v7883_v32  ;;  %v8259_v7 = vpop.xlane.xlu0 %3212  ;;  %v9206_v16 = vld [vmem:[#allocation60_spill] sm:$0xff] }
 0x300   : > { %228 = vst.msk [vmem:[%s7958_s6 + $0x60] sm:$0xff] %vm215_vm0, %v4467_v56  ;;  %229 = vst.msk [vmem:[%s7958_s6 + $0x68] sm:$0xff] %vm215_vm0, %v4467_v56  ;;  %v3740_v17 = vmul.f32 %v7438_v52, %v928_v49  ;;  %v3741_v11 = vmul.f32 %v7440_v9, %v930_v10  ;;  %v936_v52 = vmul.f32 %v5841_v28, %v4922_v62  ;;  %v9201_v9 = vunpack.c.l.bf16 %v7853_v44  ;;  %v9205_v49 = vld [vmem:[#allocation5_spill] sm:$0xff] }
 0x301   : > { %230 = vst.msk [vmem:[%s7958_s6 + $0x70] sm:$0xff] %vm215_vm0, %v4467_v56  ;;  %231 = vst.msk [vmem:[%s7958_s6 + $0x78] sm:$0xff] %vm215_vm0, %v4467_v56  ;;  %v3673_v35 = vld [vmem:[%s7958_s6] sm:$0xff]  ;;  %v3674_v18 = vld [vmem:[%s7958_s6 + $0x8] sm:$0xff]  ;;  %v9202_v30 = vunpack.c.h.bf16 %v7883_v32 }
 0x302   : > { %232 = vst.msk [vmem:[%s7958_s6 + $0x80] sm:$0xff] %vm215_vm0, %v4467_v56  ;;  %233 = vst.msk [vmem:[%s7958_s6 + $0x88] sm:$0xff] %vm215_vm0, %v4467_v56  ;;  %v3675_v24 = vld [vmem:[%s7958_s6 + $0x10] sm:$0xff]  ;;  %v3801_v34 = vadd.f32 %v3737_v14, %v3673_v35  ;;  %v3802_v40 = vadd.f32 %v3738_v54, %v3674_v18  ;;  %v3676_v60 = vld [vmem:[%s7958_s6 + $0x18] sm:$0xff]  ;;  %v9204_v54 = vunpack.c.h.bf16 %v7853_v44 }
 0x303   : > { %234 = vst.msk [vmem:[%s7958_s6 + $0x90] sm:$0xff] %vm215_vm0, %v4467_v56  ;;  %235 = vst.msk [vmem:[%s7958_s6 + $0x98] sm:$0xff] %vm215_vm0, %v4467_v56  ;;  %v3677_v25 = vld [vmem:[%s7958_s6 + $0x20] sm:$0xff]  ;;  %v3804_v62 = vadd.f32 %v3740_v17, %v3676_v60  ;;  %v3678_v27 = vld [vmem:[%s7958_s6 + $0x28] sm:$0xff] }
 0x304   : > { %236 = vst.msk [vmem:[%s7958_s6 + $0xa0] sm:$0xff] %vm215_vm0, %v4467_v56  ;;  %237 = vst.msk [vmem:[%s7958_s6 + $0xa8] sm:$0xff] %vm215_vm0, %v4467_v56  ;;  %v3805_v28 = vadd.f32 %v3741_v11, %v3677_v25  ;;  %v9211_v35 = vld [vmem:[#allocation61_spill] sm:$0xff]  ;;  %v9213_v11 = vunpack.c.h.bf16 %v7940_v41  ;;  %v9218_v41 = vld [vmem:[#allocation115_spill] sm:$0xff] }
 0x305   : > { %238 = vst.msk [vmem:[%s7958_s6 + $0xb0] sm:$0xff] %vm215_vm0, %v4467_v56  ;;  %239 = vst.msk [vmem:[%s7958_s6 + $0xb8] sm:$0xff] %vm215_vm0, %v4467_v56 }
 0x306   : > { %240 = vst.msk [vmem:[%s7958_s6 + $0xc0] sm:$0xff] %vm215_vm0, %v4467_v56  ;;  %241 = vst.msk [vmem:[%s7958_s6 + $0xc8] sm:$0xff] %vm215_vm0, %v4467_v56 }
 0x307   : > { %242 = vst.msk [vmem:[%s7958_s6 + $0xd0] sm:$0xff] %vm215_vm0, %v4467_v56  ;;  %243 = vst.msk [vmem:[%s7958_s6 + $0xd8] sm:$0xff] %vm215_vm0, %v4467_v56 }
 0x308   : > { %244 = vst.msk [vmem:[%s7958_s6 + $0xe0] sm:$0xff] %vm215_vm0, %v4467_v56  ;;  %245 = vst.msk [vmem:[%s7958_s6 + $0xe8] sm:$0xff] %vm215_vm0, %v4467_v56 }
 0x309   : > { %246 = vst.msk [vmem:[%s7958_s6 + $0xf0] sm:$0xff] %vm215_vm0, %v4467_v56  ;;  %247 = vst.msk [vmem:[%s7958_s6 + $0xf8] sm:$0xff] %vm215_vm0, %v4467_v56 }
 0x30a   : > { %248 = vst.msk [vmem:[%s7958_s6 + $0x100] sm:$0xff] %vm215_vm0, %v4467_v56  ;;  %249 = vst.msk [vmem:[%s7958_s6 + $0x108] sm:$0xff] %vm215_vm0, %v4467_v56 }
 0x30b   : > { %250 = vst.msk [vmem:[%s7958_s6 + $0x110] sm:$0xff] %vm215_vm0, %v4467_v56  ;;  %251 = vst.msk [vmem:[%s7958_s6 + $0x118] sm:$0xff] %vm215_vm0, %v4467_v56 }
 0x30c   : > { %252 = vst.msk [vmem:[%s7958_s6 + $0x120] sm:$0xff] %vm215_vm0, %v4467_v56  ;;  %253 = vst.msk [vmem:[%s7958_s6 + $0x128] sm:$0xff] %vm215_vm0, %v4467_v56 }
 0x30d   : > { %254 = vst.msk [vmem:[%s7958_s6 + $0x130] sm:$0xff] %vm215_vm0, %v4467_v56  ;;  %255 = vst.msk [vmem:[%s7958_s6 + $0x138] sm:$0xff] %vm215_vm0, %v4467_v56 }
 0x30e   : > { %256 = vst.msk [vmem:[%s7958_s6 + $0x140] sm:$0xff] %vm215_vm0, %v4467_v56  ;;  %257 = vst.msk [vmem:[%s7958_s6 + $0x148] sm:$0xff] %vm215_vm0, %v4467_v56 }
 0x30f   : > { %258 = vst.msk [vmem:[%s7958_s6 + $0x150] sm:$0xff] %vm215_vm0, %v4467_v56  ;;  %259 = vst.msk [vmem:[%s7958_s6 + $0x158] sm:$0xff] %vm215_vm0, %v4467_v56 }
 0x310   : > { %260 = vst.msk [vmem:[%s7958_s6 + $0x160] sm:$0xff] %vm215_vm0, %v4467_v56  ;;  %261 = vst.msk [vmem:[%s7958_s6 + $0x168] sm:$0xff] %vm215_vm0, %v4467_v56 }
 0x311   : > { %262 = vst.msk [vmem:[%s7958_s6 + $0x170] sm:$0xff] %vm215_vm0, %v4467_v56  ;;  %263 = vst.msk [vmem:[%s7958_s6 + $0x178] sm:$0xff] %vm215_vm0, %v4467_v56 }
 0x312   : > { %264 = vst.msk [vmem:[%s7958_s6 + $0x180] sm:$0xff] %vm215_vm0, %v4467_v56  ;;  %265 = vst.msk [vmem:[%s7958_s6 + $0x188] sm:$0xff] %vm215_vm0, %v4467_v56 }
 0x313   : > { %266 = vst.msk [vmem:[%s7958_s6 + $0x190] sm:$0xff] %vm215_vm0, %v4467_v56  ;;  %267 = vst.msk [vmem:[%s7958_s6 + $0x198] sm:$0xff] %vm215_vm0, %v4467_v56 }
 0x314   : > { %268 = vst.msk [vmem:[%s7958_s6 + $0x1a0] sm:$0xff] %vm215_vm0, %v4467_v56  ;;  %269 = vst.msk [vmem:[%s7958_s6 + $0x1a8] sm:$0xff] %vm215_vm0, %v4467_v56 }
 0x315   : > { %270 = vst.msk [vmem:[%s7958_s6 + $0x1b0] sm:$0xff] %vm215_vm0, %v4467_v56  ;;  %271 = vst.msk [vmem:[%s7958_s6 + $0x1b8] sm:$0xff] %vm215_vm0, %v4467_v56 }
 0x316   : > { %272 = vst.msk [vmem:[%s7958_s6 + $0x1c0] sm:$0xff] %vm215_vm0, %v4467_v56  ;;  %273 = vst.msk [vmem:[%s7958_s6 + $0x1c8] sm:$0xff] %vm215_vm0, %v4467_v56 }
 0x317   : > { %274 = vst.msk [vmem:[%s7958_s6 + $0x1d0] sm:$0xff] %vm215_vm0, %v4467_v56  ;;  %275 = vst.msk [vmem:[%s7958_s6 + $0x1d8] sm:$0xff] %vm215_vm0, %v4467_v56 }
 0x318   : > { %276 = vst.msk [vmem:[%s7958_s6 + $0x1e0] sm:$0xff] %vm215_vm0, %v4467_v56  ;;  %277 = vst.msk [vmem:[%s7958_s6 + $0x1e8] sm:$0xff] %vm215_vm0, %v4467_v56 }
 0x319   : > { %278 = vst.msk [vmem:[%s7958_s6 + $0x1f0] sm:$0xff] %vm215_vm0, %v4467_v56  ;;  %279 = vst.msk [vmem:[%s7958_s6 + $0x1f8] sm:$0xff] %vm215_vm0, %v4467_v56  ;;  %v3645_v56 = vadd.f32 %v7978_v0, %v9194_v47  ;;  %v3739_v47 = vmul.f32 %v7416_v50, %v926_v63  ;;  %v8226_v0 = vpop.xlane.xlu1 %3195  ;;  %v9199_v50 = vunpack.c.h.bf16 %v7839_v33  ;;  %v3661_v33 = vadd.f32 %v3660_v59, %v2575_v46 }
 0x31a   : > { %v9203_v46 = vunpack.c.h.bf16 %v7930_v12  ;;  %3865 = vst.msk [vmem:[%s7958_s6] sm:$0xff] %vm215_vm0, %v3801_v34  ;;  %3866 = vst.msk [vmem:[%s7958_s6 + $0x8] sm:$0xff] %vm215_vm0, %v3802_v40  ;;  %v3742_v63 = vmul.f32 %v7464_v6, %v932_v4  ;;  %v3744_v12 = vmul.f32 %v7493_v45, %v936_v52  ;;  %v938_v6 = vmul.f32 %v5853_v61, %v4936_v15  ;;  %v3682_v45 = vld [vmem:[%s7958_s6 + $0x48] sm:$0xff]  ;;  %v9208_v61 = vld [vmem:[#allocation112_spill] sm:$0xff] }
 0x31b   : > { %v3646_v39 = vadd.f32 %v3645_v56, %v9196_v26  ;;  %v3634_v3 = vadd.f32 %v3633_v31, %v9199_v50  ;;  %v3803_v53 = vadd.f32 %v3739_v47, %v3675_v24  ;;  %v3679_v56 = vld [vmem:[%s7958_s6 + $0x30] sm:$0xff]  ;;  %v3743_v26 = vmul.f32 %v7466_v23, %v934_v20  ;;  %3868 = vst.msk [vmem:[%s7958_s6 + $0x18] sm:$0xff] %vm215_vm0, %v3804_v62  ;;  %v9209_v4 = vld [vmem:[#allocation114_spill] sm:$0xff]  ;;  %v9216_v34 = vld [vmem:[#allocation8_spill] sm:$0xff] }
 0x31c   : > { %v3662_v14 = vadd.f32 %v3661_v33, %v9203_v46  ;;  %3869 = vst.msk [vmem:[%s7958_s6 + $0x20] sm:$0xff] %vm215_vm0, %v3805_v28  ;;  %v940_v23 = vmul.f32 %v9206_v16, %v9205_v49  ;;  %v9207_v31 = vunpack.c.l.bf16 %v7895_v29  ;;  %v3806_v10 = vadd.f32 %v3742_v63, %v3678_v27  ;;  %v3683_v52 = vld [vmem:[%s7958_s6 + $0x50] sm:$0xff]  ;;  %v9219_v62 = vld [vmem:[#allocation9_spill] sm:$0xff]  ;;  %v9220_v28 = vld [vmem:[#allocation64_spill] sm:$0xff] }
 0x31d   : > { %v3647_v1 = vadd.f32 %v3646_v39, %v9198_v13  ;;  %v3635_v55 = vadd.f32 %v3634_v3, %v9201_v9  ;;  %v3680_v39 = vld [vmem:[%s7958_s6 + $0x38] sm:$0xff]  ;;  %3867 = vst.msk [vmem:[%s7958_s6 + $0x10] sm:$0xff] %vm215_vm0, %v3803_v53  ;;  %v3807_v13 = vadd.f32 %v3743_v26, %v3679_v56  ;;  %v8280_v59 = vpop.xlane.xlu1 %3229  ;;  %v3745_v17 = vmul.f32 %v9208_v61, %v938_v6  ;;  %v9210_v3 = vld [vmem:[#allocation6_spill] sm:$0xff]  ;;  %v9217_v40 = vld [vmem:[#allocation63_spill] sm:$0xff] }
 0x31e   : > { %v3663_v47 = vadd.f32 %v3662_v14, %v2577_v5  ;;  %v3808_v15 = vadd.f32 %v3744_v12, %v3680_v39  ;;  %v3746_v50 = vmul.f32 %v9209_v4, %v940_v23  ;;  %v942_v18 = vmul.f32 %v9211_v35, %v9210_v3  ;;  %3870 = vst.msk [vmem:[%s7958_s6 + $0x28] sm:$0xff] %vm215_vm0, %v3806_v10  ;;  %v3685_v53 = vld [vmem:[%s7958_s6 + $0x60] sm:$0xff]  ;;  %v9223_v14 = vld [vmem:[#allocation116_spill] sm:$0xff]  ;;  %v9225_v6 = vld [vmem:[#allocation118_spill] sm:$0xff] }
 0x31f   : > { %v3648_v36 = vadd.f32 %v3647_v1, %v9200_v21  ;;  %v3636_v32 = vadd.f32 %v3635_v55, %v9204_v54  ;;  %v3681_v1 = vld [vmem:[%s7958_s6 + $0x40] sm:$0xff]  ;;  %v9212_v5 = vunpack.c.h.bf16 %v7895_v29  ;;  %3871 = vst.msk [vmem:[%s7958_s6 + $0x30] sm:$0xff] %vm215_vm0, %v3807_v13  ;;  %v9214_v21 = vld [vmem:[#allocation7_spill] sm:$0xff]  ;;  %v946_v60 = vmul.f32 %v9217_v40, %v9216_v34  ;;  %v3684_v55 = vld [vmem:[%s7958_s6 + $0x58] sm:$0xff] }
 0x320   : > { %v3664_v20 = vadd.f32 %v3663_v47, %v9213_v11  ;;  %3872 = vst.msk [vmem:[%s7958_s6 + $0x38] sm:$0xff] %vm215_vm0, %v3808_v15  ;;  %v3809_v29 = vadd.f32 %v3745_v17, %v3681_v1  ;;  %v3810_v25 = vadd.f32 %v3746_v50, %v3682_v45  ;;  %v3747_v9 = vmul.f32 %v9218_v41, %v942_v18  ;;  %v9224_v26 = vld [vmem:[#allocation117_spill] sm:$0xff]  ;;  %v3686_v54 = vld [vmem:[%s7958_s6 + $0x68] sm:$0xff]  ;;  %v3687_v4 = vld [vmem:[%s7958_s6 + $0x70] sm:$0xff] }
 0x321   : > { %v3649_v48 = vadd.f32 %v3648_v36, %v9202_v30  ;;  %3637 = vadd.xlane.f32.xlu1 %v3636_v32  ;;  %v9215_v36 = vld [vmem:[#allocation62_spill] sm:$0xff]  ;;  %v948_v27 = vmul.f32 %v9220_v28, %v9219_v62  ;;  %v9221_v56 = vunpack.c.l.bf16 %v7912_v38  ;;  %v3749_v39 = vmul.f32 %v9224_v26, %v946_v60  ;;  %v8313_v32 = vpop.xlane.xlu0 %3246  ;;  %v9227_v23 = vld [vmem:[#allocation65_spill] sm:$0xff]  ;;  %v3688_v50 = vld [vmem:[%s7958_s6 + $0x78] sm:$0xff]  ;;  %v8330_v3 = vpop.xlane.xlu1 %3263 }
 0x322   : > { %v944_v33 = vmul.f32 %v9215_v36, %v9214_v21  ;;  %3873 = vst.msk [vmem:[%s7958_s6 + $0x40] sm:$0xff] %vm215_vm0, %v3809_v29  ;;  %3874 = vst.msk [vmem:[%s7958_s6 + $0x48] sm:$0xff] %vm215_vm0, %v3810_v25  ;;  %v3811_v12 = vadd.f32 %v3747_v9, %v3683_v52  ;;  %v9226_v16 = vld [vmem:[#allocation10_spill] sm:$0xff]  ;;  %v9230_v13 = vunpack.c.h.bf16 %v7912_v38  ;;  %v9231_v45 = vunpack.c.h.bf16 %v7946_v37  ;;  %v9232_v18 = vld [vmem:[#allocation120_spill] sm:$0xff] }
 0x323   : > { %v3650_v44 = vadd.f32 %v3649_v48, %v9207_v31  ;;  %v9222_v48 = vunpack.c.l.bf16 %v7946_v37  ;;  %v3750_v49 = vmul.f32 %v9225_v6, %v948_v27  ;;  %v950_v31 = vmul.f32 %v9227_v23, %v9226_v16  ;;  %v9229_v47 = vld [vmem:[#allocation66_spill] sm:$0xff]  ;;  %v9234_v11 = vld [vmem:[#allocation12_spill] sm:$0xff]  ;;  %v9235_v37 = vld [vmem:[#allocation67_spill] sm:$0xff] }
 0x324   : > { %v3748_v63 = vmul.f32 %v9223_v14, %v944_v33  ;;  %v3813_v17 = vadd.f32 %v3749_v39, %v3685_v53  ;;  %3875 = vst.msk [vmem:[%s7958_s6 + $0x50] sm:$0xff] %vm215_vm0, %v3811_v12  ;;  %v9233_v38 = vld [vmem:[#allocation122_spill] sm:$0xff]  ;;  %v3689_v21 = vld [vmem:[%s7958_s6 + $0x80] sm:$0xff]  ;;  %v9237_v33 = vld [vmem:[#allocation68_spill] sm:$0xff]  ;;  %v9245_v14 = vunpack.c.h.bf16 %v7963_v2 }
 0x325   : > { %v3651_v24 = vadd.f32 %v3650_v44, %v9212_v5  ;;  %v3665_v46 = vadd.f32 %v3664_v20, %v9222_v48  ;;  %v9228_v44 = vld [vmem:[#allocation11_spill] sm:$0xff]  ;;  %v3814_v35 = vadd.f32 %v3750_v49, %v3686_v54  ;;  %v3751_v5 = vmul.f32 %v9232_v18, %v950_v31  ;;  %v9236_v36 = vld [vmem:[#allocation13_spill] sm:$0xff]  ;;  %v9238_v40 = vld [vmem:[#allocation14_spill] sm:$0xff]  ;;  %v8365_v23 = vpop.xlane.xlu0 %3280 }
 0x326   : > { %v952_v10 = vmul.f32 %v9229_v47, %v9228_v44  ;;  %v3812_v61 = vadd.f32 %v3748_v63, %v3684_v55  ;;  %v954_v20 = vmul.f32 %v9235_v37, %v9234_v11  ;;  %3877 = vst.msk [vmem:[%s7958_s6 + $0x60] sm:$0xff] %vm215_vm0, %v3813_v17  ;;  %v956_v34 = vmul.f32 %v9237_v33, %v9236_v36  ;;  %v9239_v60 = vld [vmem:[#allocation69_spill] sm:$0xff]  ;;  %v9240_v25 = vld [vmem:[#allocation15_spill] sm:$0xff]  ;;  %v9241_v41 = vld [vmem:[#allocation70_spill] sm:$0xff] }
 0x327   : > { %v3652_v30 = vadd.f32 %v3651_v24, %v9221_v56  ;;  %v3666_v15 = vadd.f32 %v3665_v46, %v9231_v45  ;;  %v958_v29 = vmul.f32 %v9239_v60, %v9238_v40  ;;  %v960_v9 = vmul.f32 %v9241_v41, %v9240_v25  ;;  %3878 = vst.msk [vmem:[%s7958_s6 + $0x68] sm:$0xff] %vm215_vm0, %v3814_v35  ;;  %v9242_v53 = vld [vmem:[#allocation123_spill] sm:$0xff]  ;;  %v3690_v28 = vld [vmem:[%s7958_s6 + $0x88] sm:$0xff]  ;;  %v3692_v56 = vld [vmem:[%s7958_s6 + $0x98] sm:$0xff] }
 0x328   : > { %v3752_v24 = vmul.f32 %v9233_v38, %v952_v10  ;;  %3876 = vst.msk [vmem:[%s7958_s6 + $0x58] sm:$0xff] %vm215_vm0, %v3812_v61  ;;  %v3753_v62 = vmul.f32 %v9242_v53, %v954_v20  ;;  %v3691_v27 = vld [vmem:[%s7958_s6 + $0x90] sm:$0xff]  ;;  %v9246_v26 = vld [vmem:[#allocation124_spill] sm:$0xff]  ;;  %v9247_v54 = vld [vmem:[#allocation125_spill] sm:$0xff] }
 0x329   : > { %v3653_v1 = vadd.f32 %v3652_v30, %v9230_v13  ;;  %v3667_v52 = vadd.f32 %v3666_v15, %v2581_v57  ;;  %v3815_v57 = vadd.f32 %v3751_v5, %v3687_v4  ;;  %v9243_v30 = vld [vmem:[#allocation16_spill] sm:$0xff]  ;;  %v9244_v48 = vld [vmem:[#allocation71_spill] sm:$0xff]  ;;  %v3754_v39 = vmul.f32 %v9246_v26, %v956_v34  ;;  %v9248_v6 = vld [vmem:[#allocation126_spill] sm:$0xff]  ;;  %v8380_v5 = vpop.xlane.xlu1 %3297 }
 0x32a   : > { %v3816_v55 = vadd.f32 %v3752_v24, %v3688_v50  ;;  %v962_v46 = vmul.f32 %v9244_v48, %v9243_v30  ;;  %v3755_v12 = vmul.f32 %v9247_v54, %v958_v29  ;;  %v3756_v49 = vmul.f32 %v9248_v6, %v960_v9  ;;  %v3693_v16 = vld [vmem:[%s7958_s6 + $0xa0] sm:$0xff]  ;;  %v9249_v44 = vld [vmem:[#allocation127_spill] sm:$0xff]  ;;  %v9251_v10 = vld [vmem:[#allocation72_spill] sm:$0xff] }
 0x32b   : > { %3654 = vadd.xlane.f32.xlu0 %v3653_v1  ;;  %v3668_v63 = vadd.f32 %v3667_v52, %v9245_v14  ;;  %3879 = vst.msk [vmem:[%s7958_s6 + $0x70] sm:$0xff] %vm215_vm0, %v3815_v57  ;;  %v3817_v31 = vadd.f32 %v3753_v62, %v3689_v21  ;;  %v9250_v47 = vld [vmem:[#allocation17_spill] sm:$0xff]  ;;  %v9252_v1 = vld [vmem:[#allocation18_spill] sm:$0xff]  ;;  %v3818_v17 = vadd.f32 %v3754_v39, %v3690_v28  ;;  %v3695_v18 = vld [vmem:[%s7958_s6 + $0xb0] sm:$0xff] }
 0x32c   : > { %3880 = vst.msk [vmem:[%s7958_s6 + $0x78] sm:$0xff] %vm215_vm0, %v3816_v55  ;;  %v3757_v2 = vmul.f32 %v9249_v44, %v962_v46  ;;  %v964_v13 = vmul.f32 %v9251_v10, %v9250_v47  ;;  %v9253_v45 = vld [vmem:[#allocation73_spill] sm:$0xff]  ;;  %v3819_v4 = vadd.f32 %v3755_v12, %v3691_v27  ;;  %v3820_v50 = vadd.f32 %v3756_v49, %v3692_v56  ;;  %v3694_v35 = vld [vmem:[%s7958_s6 + $0xa8] sm:$0xff]  ;;  %v9254_v24 = vld [vmem:[#allocation128_spill] sm:$0xff]  ;;  %v8417_v44 = vpop.xlane.xlu0 %3314 }
 0x32d   : > { %v966_v15 = vmul.f32 %v9253_v45, %v9252_v1  ;;  %v3669_v61 = vadd.f32 %v3668_v63, %v2583_v19  ;;  %3881 = vst.msk [vmem:[%s7958_s6 + $0x80] sm:$0xff] %vm215_vm0, %v3817_v31  ;;  %v9255_v37 = vld [vmem:[#allocation129_spill] sm:$0xff]  ;;  %v9256_v52 = vld [vmem:[#allocation19_spill] sm:$0xff]  ;;  %v9257_v19 = vld [vmem:[#allocation74_spill] sm:$0xff] }
 0x32e   : > { %v3821_v38 = vadd.f32 %v3757_v2, %v3693_v16  ;;  %v3758_v11 = vmul.f32 %v9254_v24, %v964_v13  ;;  %v968_v21 = vmul.f32 %v9257_v19, %v9256_v52  ;;  %3882 = vst.msk [vmem:[%s7958_s6 + $0x88] sm:$0xff] %vm215_vm0, %v3818_v17  ;;  %3883 = vst.msk [vmem:[%s7958_s6 + $0x90] sm:$0xff] %vm215_vm0, %v3819_v4  ;;  %v3696_v33 = vld [vmem:[%s7958_s6 + $0xb8] sm:$0xff]  ;;  %v9259_v40 = vld [vmem:[#allocation75_spill] sm:$0xff] }
 0x32f   : > { %v3759_v20 = vmul.f32 %v9255_v37, %v966_v15  ;;  %v3670_v36 = vadd.f32 %v3669_v61, %v2584_v8  ;;  %3884 = vst.msk [vmem:[%s7958_s6 + $0x98] sm:$0xff] %vm215_vm0, %v3820_v50  ;;  %v9258_v34 = vld [vmem:[#allocation20_spill] sm:$0xff]  ;;  %v9260_v29 = vld [vmem:[#allocation21_spill] sm:$0xff]  ;;  %v9262_v9 = vld [vmem:[#allocation22_spill] sm:$0xff] }
 0x330   : > { %v970_v60 = vmul.f32 %v9259_v40, %v9258_v34  ;;  %v9261_v25 = vld [vmem:[#allocation76_spill] sm:$0xff]  ;;  %v9263_v57 = vld [vmem:[#allocation77_spill] sm:$0xff]  ;;  %3885 = vst.msk [vmem:[%s7958_s6 + $0xa0] sm:$0xff] %vm215_vm0, %v3821_v38  ;;  %v3822_v58 = vadd.f32 %v3758_v11, %v3694_v35  ;;  %v9264_v53 = vld [vmem:[#allocation130_spill] sm:$0xff] }
 0x331   : > { %v972_v41 = vmul.f32 %v9261_v25, %v9260_v29  ;;  %v974_v55 = vmul.f32 %v9263_v57, %v9262_v9  ;;  %v3823_v8 = vadd.f32 %v3759_v20, %v3695_v18  ;;  %v3760_v62 = vmul.f32 %v9264_v53, %v968_v21  ;;  %v3697_v28 = vld [vmem:[%s7958_s6 + $0xc0] sm:$0xff]  ;;  %v3698_v27 = vld [vmem:[%s7958_s6 + $0xc8] sm:$0xff]  ;;  %v3699_v56 = vld [vmem:[%s7958_s6 + $0xd0] sm:$0xff]  ;;  %3671 = vadd.xlane.f32.xlu1 %v3670_v36  ;;  %v8432_v20 = vpop.xlane.xlu1 %3331 }
 0x332   : > { %v9265_v30 = vld [vmem:[#allocation23_spill] sm:$0xff]  ;;  %v9266_v48 = vld [vmem:[#allocation78_spill] sm:$0xff]  ;;  %v9268_v26 = vld [vmem:[#allocation132_spill] sm:$0xff]  ;;  %3886 = vst.msk [vmem:[%s7958_s6 + $0xa8] sm:$0xff] %vm215_vm0, %v3822_v58 }
 0x333   : > { %v976_v46 = vmul.f32 %v9266_v48, %v9265_v30  ;;  %v9267_v14 = vld [vmem:[#allocation131_spill] sm:$0xff]  ;;  %v3762_v39 = vmul.f32 %v9268_v26, %v972_v41  ;;  %v9269_v54 = vld [vmem:[#allocation133_spill] sm:$0xff]  ;;  %v3700_v6 = vld [vmem:[%s7958_s6 + $0xd8] sm:$0xff]  ;;  %3887 = vst.msk [vmem:[%s7958_s6 + $0xb0] sm:$0xff] %vm215_vm0, %v3823_v8  ;;  %v3824_v2 = vadd.f32 %v3760_v62, %v3696_v33 }
 0x334   : > { %v3761_v63 = vmul.f32 %v9267_v14, %v970_v60  ;;  %v3763_v12 = vmul.f32 %v9269_v54, %v974_v55  ;;  %v9270_v49 = vld [vmem:[#allocation24_spill] sm:$0xff]  ;;  %v9271_v16 = vld [vmem:[#allocation79_spill] sm:$0xff]  ;;  %v9272_v47 = vld [vmem:[#allocation134_spill] sm:$0xff] }
 0x335   : > { %v978_v31 = vmul.f32 %v9271_v16, %v9270_v49  ;;  %v3764_v10 = vmul.f32 %v9272_v47, %v976_v46  ;;  %v3701_v13 = vld [vmem:[%s7958_s6 + $0xe0] sm:$0xff]  ;;  %v9274_v45 = vld [vmem:[#allocation80_spill] sm:$0xff]  ;;  %v9275_v61 = vld [vmem:[#allocation26_spill] sm:$0xff]  ;;  %v3826_v35 = vadd.f32 %v3762_v39, %v3698_v27  ;;  %3888 = vst.msk [vmem:[%s7958_s6 + $0xb8] sm:$0xff] %vm215_vm0, %v3824_v2  ;;  %v3349_v2 = vpop.xlane.xlu0 %3348 }
 0x336   : > { %v9273_v1 = vld [vmem:[#allocation25_spill] sm:$0xff]  ;;  %v3825_v50 = vadd.f32 %v3761_v63, %v3697_v28  ;;  %v3827_v18 = vadd.f32 %v3763_v12, %v3699_v56  ;;  %v9277_v38 = vld [vmem:[#allocation135_spill] sm:$0xff]  ;;  %v3702_v11 = vld [vmem:[%s7958_s6 + $0xe8] sm:$0xff] }
 0x337   : > { %v980_v15 = vmul.f32 %v9274_v45, %v9273_v1  ;;  %v9276_v17 = vld [vmem:[#allocation81_spill] sm:$0xff]  ;;  %v3765_v24 = vmul.f32 %v9277_v38, %v978_v31  ;;  %v3703_v37 = vld [vmem:[%s7958_s6 + $0xf0] sm:$0xff]  ;;  %v3828_v52 = vadd.f32 %v3764_v10, %v3700_v6  ;;  %v9278_v19 = vld [vmem:[#allocation136_spill] sm:$0xff]  ;;  %3890 = vst.msk [vmem:[%s7958_s6 + $0xc8] sm:$0xff] %vm215_vm0, %v3826_v35 }
 0x338   : > { %v982_v4 = vmul.f32 %v9276_v17, %v9275_v61  ;;  %v9279_v36 = vld [vmem:[#allocation137_spill] sm:$0xff]  ;;  %v9280_v34 = vld [vmem:[#allocation27_spill] sm:$0xff]  ;;  %v9281_v40 = vld [vmem:[#allocation82_spill] sm:$0xff]  ;;  %3889 = vst.msk [vmem:[%s7958_s6 + $0xc0] sm:$0xff] %vm215_vm0, %v3825_v50 }
 0x339   : > { %v3766_v21 = vmul.f32 %v9278_v19, %v980_v15  ;;  %v984_v60 = vmul.f32 %v9281_v40, %v9280_v34  ;;  %3891 = vst.msk [vmem:[%s7958_s6 + $0xd0] sm:$0xff] %vm215_vm0, %v3827_v18  ;;  %v3829_v29 = vadd.f32 %v3765_v24, %v3701_v13  ;;  %v3704_v25 = vld [vmem:[%s7958_s6 + $0xf8] sm:$0xff]  ;;  %v9283_v9 = vld [vmem:[#allocation83_spill] sm:$0xff]  ;;  %v9284_v55 = vld [vmem:[#allocation29_spill] sm:$0xff] }
 0x33a   : > { %v3767_v33 = vmul.f32 %v9279_v36, %v982_v4  ;;  %v9282_v41 = vld [vmem:[#allocation28_spill] sm:$0xff]  ;;  %v9286_v53 = vld [vmem:[#allocation30_spill] sm:$0xff]  ;;  %v9287_v62 = vld [vmem:[#allocation85_spill] sm:$0xff]  ;;  %3892 = vst.msk [vmem:[%s7958_s6 + $0xd8] sm:$0xff] %vm215_vm0, %v3828_v52 }
 0x33b   : > { %v986_v57 = vmul.f32 %v9283_v9, %v9282_v41  ;;  %v9285_v58 = vld [vmem:[#allocation84_spill] sm:$0xff]  ;;  %v990_v28 = vmul.f32 %v9287_v62, %v9286_v53  ;;  %v3830_v27 = vadd.f32 %v3766_v21, %v3702_v11  ;;  %v3768_v30 = vmul.f32 %v7933_v51, %v984_v60  ;;  %v3705_v48 = vld [vmem:[%s7958_s6 + $0x100] sm:$0xff]  ;;  %v3706_v46 = vld [vmem:[%s7958_s6 + $0x108] sm:$0xff]  ;;  %3893 = vst.msk [vmem:[%s7958_s6 + $0xe0] sm:$0xff] %vm215_vm0, %v3829_v29 }
 0x33c   : > { %v988_v8 = vmul.f32 %v9285_v58, %v9284_v55  ;;  %v3831_v56 = vadd.f32 %v3767_v33, %v3703_v37  ;;  %v3707_v14 = vld [vmem:[%s7958_s6 + $0x110] sm:$0xff]  ;;  %v9289_v26 = vld [vmem:[#allocation86_spill] sm:$0xff]  ;;  %v3708_v49 = vld [vmem:[%s7958_s6 + $0x118] sm:$0xff] }
 0x33d   : > { %v9288_v63 = vld [vmem:[#allocation31_spill] sm:$0xff]  ;;  %v3769_v54 = vmul.f32 %v7966_v42, %v986_v57  ;;  %v3771_v6 = vmul.f32 %v8211_v22, %v990_v28  ;;  %v9290_v16 = vld [vmem:[#allocation32_spill] sm:$0xff]  ;;  %3894 = vst.msk [vmem:[%s7958_s6 + $0xe8] sm:$0xff] %vm215_vm0, %v3830_v27  ;;  %v3832_v47 = vadd.f32 %v3768_v30, %v3704_v25  ;;  %v3709_v42 = vld [vmem:[%s7958_s6 + $0x120] sm:$0xff] }
 0x33e   : > { %v992_v39 = vmul.f32 %v9289_v26, %v9288_v63  ;;  %v3770_v12 = vmul.f32 %v8178_v43, %v988_v8  ;;  %v9291_v51 = vld [vmem:[#allocation87_spill] sm:$0xff]  ;;  %3895 = vst.msk [vmem:[%s7958_s6 + $0xf0] sm:$0xff] %vm215_vm0, %v3831_v56  ;;  %v9292_v43 = vld [vmem:[#allocation33_spill] sm:$0xff]  ;;  %v9293_v13 = vld [vmem:[#allocation88_spill] sm:$0xff]  ;;  %v3383_v63 = vpop.xlane.xlu0 %3382 }
 0x33f   : > { %v994_v31 = vmul.f32 %v9291_v51, %v9290_v16  ;;  %v996_v22 = vmul.f32 %v9293_v13, %v9292_v43  ;;  %v9294_v1 = vld [vmem:[#allocation34_spill] sm:$0xff]  ;;  %v9295_v45 = vld [vmem:[#allocation89_spill] sm:$0xff]  ;;  %v3833_v61 = vadd.f32 %v3769_v54, %v3705_v48  ;;  %v3835_v4 = vadd.f32 %v3771_v6, %v3707_v14  ;;  %v3711_v18 = vld [vmem:[%s7958_s6 + $0x130] sm:$0xff]  ;;  %3896 = vst.msk [vmem:[%s7958_s6 + $0xf8] sm:$0xff] %vm215_vm0, %v3832_v47 }
 0x340   : > { %v3772_v10 = vmul.f32 %v8226_v0, %v992_v39  ;;  %v998_v15 = vmul.f32 %v9295_v45, %v9294_v1  ;;  %v3834_v17 = vadd.f32 %v3770_v12, %v3706_v46  ;;  %v3710_v35 = vld [vmem:[%s7958_s6 + $0x128] sm:$0xff]  ;;  %v3366_v0 = vpop.xlane.xlu1 %3365  ;;  %v9296_v37 = vld [vmem:[#allocation35_spill] sm:$0xff]  ;;  %v9297_v52 = vld [vmem:[#allocation92_spill] sm:$0xff] }
 0x341   : > { %v3773_v50 = vmul.f32 %v8259_v7, %v994_v31  ;;  %v3774_v24 = vmul.f32 %v8280_v59, %v996_v22  ;;  %v1000_v19 = vmul.f32 %v9297_v52, %v9296_v37  ;;  %3897 = vst.msk [vmem:[%s7958_s6 + $0x100] sm:$0xff] %vm215_vm0, %v3833_v61  ;;  %3899 = vst.msk [vmem:[%s7958_s6 + $0x110] sm:$0xff] %vm215_vm0, %v3835_v4  ;;  %v3712_v21 = vld [vmem:[%s7958_s6 + $0x138] sm:$0xff]  ;;  %v9299_v33 = vld [vmem:[#allocation93_spill] sm:$0xff] }
 0x342   : > { %v3836_v38 = vadd.f32 %v3772_v10, %v3708_v49  ;;  %v3775_v11 = vmul.f32 %v8313_v32, %v998_v15  ;;  %3898 = vst.msk [vmem:[%s7958_s6 + $0x108] sm:$0xff] %vm215_vm0, %v3834_v17  ;;  %v9298_v36 = vld [vmem:[#allocation36_spill] sm:$0xff]  ;;  %v9300_v34 = vld [vmem:[#allocation37_spill] sm:$0xff]  ;;  %v9302_v60 = vld [vmem:[#allocation38_spill] sm:$0xff] }
 0x343   : > { %v3837_v7 = vadd.f32 %v3773_v50, %v3709_v42  ;;  %v1002_v59 = vmul.f32 %v9299_v33, %v9298_v36  ;;  %v9301_v40 = vld [vmem:[#allocation100_spill] sm:$0xff]  ;;  %v9303_v29 = vld [vmem:[#allocation101_spill] sm:$0xff]  ;;  %v3838_v41 = vadd.f32 %v3774_v24, %v3710_v35  ;;  %v3776_v57 = vmul.f32 %v8330_v3, %v1000_v19  ;;  %v3714_v58 = vld [vmem:[%s7958_s6 + $0x148] sm:$0xff] }
 0x344   : > { %v1004_v32 = vmul.f32 %v9301_v40, %v9300_v34  ;;  %v1006_v25 = vmul.f32 %v9303_v29, %v9302_v60  ;;  %3900 = vst.msk [vmem:[%s7958_s6 + $0x118] sm:$0xff] %vm215_vm0, %v3836_v38  ;;  %v3839_v9 = vadd.f32 %v3775_v11, %v3711_v18  ;;  %v3713_v55 = vld [vmem:[%s7958_s6 + $0x140] sm:$0xff]  ;;  %v3715_v8 = vld [vmem:[%s7958_s6 + $0x150] sm:$0xff]  ;;  %v9305_v62 = vld [vmem:[#allocation108_spill] sm:$0xff]  ;;  %v3400_v43 = vpop.xlane.xlu1 %3399  ;;  %v3417_v11 = vpop.xlane.xlu0 %3416 }
 0x345   : > { %v9304_v53 = vld [vmem:[#allocation39_spill] sm:$0xff]  ;;  %3901 = vst.msk [vmem:[%s7958_s6 + $0x120] sm:$0xff] %vm215_vm0, %v3837_v7  ;;  %v3777_v27 = vmul.f32 %v8365_v23, %v1002_v59  ;;  %v3716_v48 = vld [vmem:[%s7958_s6 + $0x158] sm:$0xff]  ;;  %v9307_v3 = vld [vmem:[#allocation110_spill] sm:$0xff]  ;;  %v3840_v26 = vadd.f32 %v3776_v57, %v3712_v21 }
 0x346   : > { %v1008_v28 = vmul.f32 %v9305_v62, %v9304_v53  ;;  %v3778_v56 = vmul.f32 %v8380_v5, %v1004_v32  ;;  %v3779_v30 = vmul.f32 %v8417_v44, %v1006_v25  ;;  %v9306_v46 = vld [vmem:[#allocation40_spill] sm:$0xff]  ;;  %3902 = vst.msk [vmem:[%s7958_s6 + $0x128] sm:$0xff] %vm215_vm0, %v3838_v41  ;;  %3903 = vst.msk [vmem:[%s7958_s6 + $0x130] sm:$0xff] %vm215_vm0, %v3839_v9  ;;  %v3717_v23 = vld [vmem:[%s7958_s6 + $0x160] sm:$0xff] }
 0x347   : > { %v1010_v14 = vmul.f32 %v9307_v3, %v9306_v46  ;;  %v9308_v54 = vld [vmem:[#allocation41_spill] sm:$0xff]  ;;  %v9309_v5 = vld [vmem:[#allocation111_spill] sm:$0xff]  ;;  %v9310_v44 = vld [vmem:[#allocation42_spill] sm:$0xff]  ;;  %v3841_v16 = vadd.f32 %v3777_v27, %v3713_v55  ;;  %3904 = vst.msk [vmem:[%s7958_s6 + $0x138] sm:$0xff] %vm215_vm0, %v3840_v26 }
 0x348   : > { %v3780_v39 = vmul.f32 %v8432_v20, %v1008_v28  ;;  %v1012_v12 = vmul.f32 %v9309_v5, %v9308_v54  ;;  %v9311_v6 = vld [vmem:[#allocation113_spill] sm:$0xff]  ;;  %v3842_v51 = vadd.f32 %v3778_v56, %v3714_v58  ;;  %v3843_v31 = vadd.f32 %v3779_v30, %v3715_v8  ;;  %v3718_v10 = vld [vmem:[%s7958_s6 + $0x168] sm:$0xff]  ;;  %v3719_v42 = vld [vmem:[%s7958_s6 + $0x170] sm:$0xff]  ;;  %v3434_v59 = vpop.xlane.xlu1 %3433  ;;  %v3451_v9 = vpop.xlane.xlu0 %3450 }
 0x349   : > { %v1014_v49 = vmul.f32 %v9311_v6, %v9310_v44  ;;  %v3781_v47 = vmul.f32 %v3349_v2, %v1010_v14  ;;  %v9312_v1 = vld [vmem:[#allocation43_spill] sm:$0xff]  ;;  %v9314_v61 = vld [vmem:[#allocation90_spill] sm:$0xff]  ;;  %3905 = vst.msk [vmem:[%s7958_s6 + $0x140] sm:$0xff] %vm215_vm0, %v3841_v16  ;;  %v3720_v17 = vld [vmem:[%s7958_s6 + $0x178] sm:$0xff] }
 0x34a   : > { %v3844_v20 = vadd.f32 %v3780_v39, %v3716_v48  ;;  %v3782_v13 = vmul.f32 %v3366_v0, %v1012_v12  ;;  %v9313_v45 = vld [vmem:[#allocation119_spill] sm:$0xff]  ;;  %4320 = vrcp.f32 %v9314_v61  ;;  %3906 = vst.msk [vmem:[%s7958_s6 + $0x148] sm:$0xff] %vm215_vm0, %v3842_v51  ;;  %3907 = vst.msk [vmem:[%s7958_s6 + $0x150] sm:$0xff] %vm215_vm0, %v3843_v31  ;;  %v9315_v0 = vld [vmem:[#allocation44_spill] sm:$0xff] }
 0x34b   : > { %v3783_v22 = vmul.f32 %v3383_v63, %v1014_v49  ;;  %v1016_v15 = vmul.f32 %v9313_v45, %v9312_v1  ;;  %v3845_v2 = vadd.f32 %v3781_v47, %v3717_v23  ;;  %v9316_v38 = vld [vmem:[#allocation121_spill] sm:$0xff]  ;;  %v9317_v19 = vld [vmem:[#allocation91_spill] sm:$0xff]  ;;  %v3722_v34 = vld [vmem:[%s7958_s6 + $0x188] sm:$0xff] }
 0x34c   : > { %3908 = vst.msk [vmem:[%s7958_s6 + $0x158] sm:$0xff] %vm215_vm0, %v3844_v20  ;;  %v3846_v4 = vadd.f32 %v3782_v13, %v3718_v10  ;;  %v1018_v24 = vmul.f32 %v9316_v38, %v9315_v0  ;;  %v3721_v37 = vld [vmem:[%s7958_s6 + $0x180] sm:$0xff]  ;;  %4322 = vrcp.f32 %v9317_v19  ;;  %v9319_v40 = vld [vmem:[#allocation94_spill] sm:$0xff]  ;;  %v3723_v57 = vld [vmem:[%s7958_s6 + $0x190] sm:$0xff]  ;;  %v3468_v27 = vpop.xlane.xlu1 %3467  ;;  %v3485_v26 = vpop.xlane.xlu0 %3484 }
 0x34d   : > { %v3847_v50 = vadd.f32 %v3783_v22, %v3719_v42  ;;  %v3784_v35 = vmul.f32 %v3400_v43, %v1016_v15  ;;  %3909 = vst.msk [vmem:[%s7958_s6 + $0x160] sm:$0xff] %vm215_vm0, %v3845_v2  ;;  %v9318_v36 = vld [vmem:[#allocation45_spill] sm:$0xff]  ;;  %4324 = vrcp.f32 %v9319_v40  ;;  %v9320_v25 = vld [vmem:[#allocation46_spill] sm:$0xff]  ;;  %v9321_v58 = vld [vmem:[#allocation95_spill] sm:$0xff] }
 0x34e   : > { %3910 = vst.msk [vmem:[%s7958_s6 + $0x168] sm:$0xff] %vm215_vm0, %v3846_v4  ;;  %v3785_v52 = vmul.f32 %v3417_v11, %v1018_v24  ;;  %4326 = vrcp.f32 %v9321_v58  ;;  %v9322_v62 = vld [vmem:[#allocation47_spill] sm:$0xff]  ;;  %v3724_v56 = vld [vmem:[%s7958_s6 + $0x198] sm:$0xff]  ;;  %v3725_v39 = vld [vmem:[%s7958_s6 + $0x1a0] sm:$0xff] }
 0x34f   : > { %3911 = vst.msk [vmem:[%s7958_s6 + $0x170] sm:$0xff] %vm215_vm0, %v3847_v50  ;;  %v3848_v18 = vadd.f32 %v3784_v35, %v3720_v17  ;;  %v9323_v48 = vld [vmem:[#allocation96_spill] sm:$0xff]  ;;  %v9325_v54 = vld [vmem:[#allocation97_spill] sm:$0xff]  ;;  %v3726_v16 = vld [vmem:[%s7958_s6 + $0x1a8] sm:$0xff] }
 0x350   : > { %v3849_v7 = vadd.f32 %v3785_v52, %v3721_v37  ;;  %4328 = vrcp.f32 %v9323_v48  ;;  %v9324_v14 = vld [vmem:[#allocation48_spill] sm:$0xff]  ;;  %v9326_v44 = vld [vmem:[#allocation49_spill] sm:$0xff]  ;;  %v9327_v51 = vld [vmem:[#allocation98_spill] sm:$0xff] }
 0x351   : > { %3912 = vst.msk [vmem:[%s7958_s6 + $0x178] sm:$0xff] %vm215_vm0, %v3848_v18  ;;  %4330 = vrcp.f32 %v9325_v54  ;;  %v9328_v42 = vld [vmem:[#allocation50_spill] sm:$0xff]  ;;  %v3727_v13 = vld [vmem:[%s7958_s6 + $0x1b0] sm:$0xff]  ;;  %v3728_v4 = vld [vmem:[%s7958_s6 + $0x1b8] sm:$0xff] }
 0x352   : > { %3913 = vst.msk [vmem:[%s7958_s6 + $0x180] sm:$0xff] %vm215_vm0, %v3849_v7  ;;  %4332 = vrcp.f32 %v9327_v51  ;;  %v9329_v1 = vld [vmem:[#allocation99_spill] sm:$0xff]  ;;  %v9331_v35 = vld [vmem:[#allocation102_spill] sm:$0xff]  ;;  %v9332_v38 = vld [vmem:[#allocation52_spill] sm:$0xff] }
 0x353   : > { %v3502_v49 = vpop.xlane.xlu1 %3501  ;;  %4334 = vrcp.f32 %v9329_v1  ;;  %v9330_v61 = vld [vmem:[#allocation51_spill] sm:$0xff]  ;;  %v3729_v37 = vld [vmem:[%s7958_s6 + $0x1c0] sm:$0xff]  ;;  %v9335_v40 = vld [vmem:[#allocation104_spill] sm:$0xff] }
 0x354   : > { %v4321_v21 = vpop.eup %4320  ;;  %4336 = vrcp.f32 %v9331_v35  ;;  %v9333_v19 = vld [vmem:[#allocation103_spill] sm:$0xff]  ;;  %v9337_v58 = vld [vmem:[#allocation105_spill] sm:$0xff]  ;;  %v9339_v48 = vld [vmem:[#allocation106_spill] sm:$0xff] }
 0x355   : > { %v1020_v33 = vmul.f32 %v4321_v21, %v9318_v36  ;;  %4338 = vrcp.f32 %v9333_v19  ;;  %v9334_v36 = vld [vmem:[#allocation53_spill] sm:$0xff]  ;;  %v9341_v54 = vld [vmem:[#allocation107_spill] sm:$0xff] }
 0x356   : > { %v4323_v60 = vpop.eup %4322  ;;  %4340 = vrcp.f32 %v9335_v40  ;;  %v9343_v51 = vld [vmem:[#allocation109_spill] sm:$0xff] }
 0x357   : > { %v3786_v32 = vmul.f32 %v3434_v59, %v1020_v33  ;;  %v1022_v41 = vmul.f32 %v4323_v60, %v9320_v25  ;;  %v4325_v53 = vpop.eup %4324  ;;  %v9336_v25 = vld [vmem:[#allocation54_spill] sm:$0xff]  ;;  %4342 = vrcp.f32 %v9337_v58 }
 0x358   : > { %v1024_v28 = vmul.f32 %v4325_v53, %v9322_v62  ;;  %v4327_v3 = vpop.eup %4326  ;;  %v9338_v62 = vld [vmem:[#allocation55_spill] sm:$0xff]  ;;  %4344 = vrcp.f32 %v9339_v48 }
 0x359   : > { %v3850_v29 = vadd.f32 %v3786_v32, %v3722_v34  ;;  %v3787_v55 = vmul.f32 %v3451_v9, %v1022_v41  ;;  %v1026_v63 = vmul.f32 %v4327_v3, %v9324_v14  ;;  %v3730_v34 = vld [vmem:[%s7958_s6 + $0x1c8] sm:$0xff]  ;;  %v9340_v14 = vld [vmem:[#allocation56_spill] sm:$0xff]  ;;  %4346 = vrcp.f32 %v9341_v54 }
 0x35a   : > { %v3788_v30 = vmul.f32 %v3468_v27, %v1024_v28  ;;  %v4329_v12 = vpop.eup %4328  ;;  %v3519_v20 = vpop.xlane.xlu0 %3518  ;;  %4348 = vrcp.f32 %v9343_v51 }
 0x35b   : > { %3914 = vst.msk [vmem:[%s7958_s6 + $0x188] sm:$0xff] %vm215_vm0, %v3850_v29  ;;  %v3851_v8 = vadd.f32 %v3787_v55, %v3723_v57  ;;  %v3789_v23 = vmul.f32 %v3485_v26, %v1026_v63  ;;  %v1028_v6 = vmul.f32 %v4329_v12, %v9326_v44  ;;  %v4331_v47 = vpop.eup %4330  ;;  %v3731_v57 = vld [vmem:[%s7958_s6 + $0x1d0] sm:$0xff]  ;;  %v9342_v44 = vld [vmem:[#allocation57_spill] sm:$0xff] }
 0x35c   : > { %v3852_v46 = vadd.f32 %v3788_v30, %v3724_v56  ;;  %v1030_v43 = vmul.f32 %v4331_v47, %v9328_v42  ;;  %v4333_v15 = vpop.eup %4332  ;;  %v3732_v56 = vld [vmem:[%s7958_s6 + $0x1d8] sm:$0xff]  ;;  %v9344_v42 = vld [vmem:[#allocation58_spill] sm:$0xff] }
 0x35d   : > { %3915 = vst.msk [vmem:[%s7958_s6 + $0x190] sm:$0xff] %vm215_vm0, %v3851_v8  ;;  %v3853_v5 = vadd.f32 %v3789_v23, %v3725_v39  ;;  %v3790_v31 = vmul.f32 %v3502_v49, %v1028_v6  ;;  %v1032_v2 = vmul.f32 %v4333_v15, %v9330_v61  ;;  %v4335_v0 = vpop.eup %4334  ;;  %v3733_v39 = vld [vmem:[%s7958_s6 + $0x1e0] sm:$0xff]  ;;  %v9345_v15 = vld [vmem:[#allocation59_spill] sm:$0xff] }
 0x35e   : > { %3916 = vst.msk [vmem:[%s7958_s6 + $0x198] sm:$0xff] %vm215_vm0, %v3852_v46  ;;  %v3791_v22 = vmul.f32 %v3519_v20, %v1030_v43  ;;  %v1034_v24 = vmul.f32 %v4335_v0, %v9332_v38  ;;  %v4337_v21 = vpop.eup %4336 }
 0x35f   : > { %3917 = vst.msk [vmem:[%s7958_s6 + $0x1a0] sm:$0xff] %vm215_vm0, %v3853_v5  ;;  %v3854_v10 = vadd.f32 %v3790_v31, %v3726_v16  ;;  %v1036_v33 = vmul.f32 %v4337_v21, %v9334_v36  ;;  %v4339_v60 = vpop.eup %4338  ;;  %v3734_v16 = vld [vmem:[%s7958_s6 + $0x1e8] sm:$0xff] }
 0x360   : > { %v3855_v45 = vadd.f32 %v3791_v22, %v3727_v13  ;;  %v1038_v41 = vmul.f32 %v4339_v60, %v9336_v25  ;;  %v4341_v53 = vpop.eup %4340  ;;  %v3735_v13 = vld [vmem:[%s7958_s6 + $0x1f0] sm:$0xff] }
 0x361   : > { %3918 = vst.msk [vmem:[%s7958_s6 + $0x1a8] sm:$0xff] %vm215_vm0, %v3854_v10  ;;  %v3536_v17 = vpop.xlane.xlu1 %3535  ;;  %v1040_v28 = vmul.f32 %v4341_v53, %v9338_v62  ;;  %v4343_v3 = vpop.eup %4342 }
 0x362   : > { %3919 = vst.msk [vmem:[%s7958_s6 + $0x1b0] sm:$0xff] %vm215_vm0, %v3855_v45  ;;  %v3792_v50 = vmul.f32 %v3536_v17, %v1032_v2  ;;  %v1042_v63 = vmul.f32 %v4343_v3, %v9340_v14  ;;  %v4345_v12 = vpop.eup %4344  ;;  %v3736_v17 = vld [vmem:[%s7958_s6 + $0x1f8] sm:$0xff] }
 0x363   : > { %v1044_v6 = vmul.f32 %v4345_v12, %v9342_v44  ;;  %v4347_v47 = vpop.eup %4346 }
 0x364   : > { %v3856_v18 = vadd.f32 %v3792_v50, %v3728_v4  ;;  %v1046_v43 = vmul.f32 %v4347_v47, %v9344_v42  ;;  %v4349_v45 = vpop.eup %4348 }
 0x365   : > { %v1048_v61 = vmul.f32 %v4349_v45, %v9345_v15 }
 0x366   : > { %3920 = vst.msk [vmem:[%s7958_s6 + $0x1b8] sm:$0xff] %vm215_vm0, %v3856_v18 }
 0x36a   : > { %v3553_v11 = vpop.xlane.xlu0 %3552 }
 0x36b   : > { %v3793_v52 = vmul.f32 %v3553_v11, %v1034_v24 }
 0x36d   : > { %v3857_v7 = vadd.f32 %v3793_v52, %v3729_v37 }
 0x36f   : > { %3921 = vst.msk [vmem:[%s7958_s6 + $0x1c0] sm:$0xff] %vm215_vm0, %v3857_v7 }
 0x373   : > { %v3570_v59 = vpop.xlane.xlu1 %3569 }
 0x374   : > { %v3794_v32 = vmul.f32 %v3570_v59, %v1036_v33 }
 0x376   : > { %v3858_v29 = vadd.f32 %v3794_v32, %v3730_v34 }
 0x378   : > { %3922 = vst.msk [vmem:[%s7958_s6 + $0x1c8] sm:$0xff] %vm215_vm0, %v3858_v29 }
 0x37a   : > { %v3587_v9 = vpop.xlane.xlu0 %3586 }
 0x37b   : > { %v3795_v55 = vmul.f32 %v3587_v9, %v1038_v41 }
 0x37d   : > { %v3859_v8 = vadd.f32 %v3795_v55, %v3731_v57 }
 0x37f   : > { %3923 = vst.msk [vmem:[%s7958_s6 + $0x1d0] sm:$0xff] %vm215_vm0, %v3859_v8 }
 0x383   : > { %v3604_v27 = vpop.xlane.xlu1 %3603 }
 0x384   : > { %v3796_v30 = vmul.f32 %v3604_v27, %v1040_v28 }
 0x386   : > { %v3860_v46 = vadd.f32 %v3796_v30, %v3732_v56 }
 0x388   : > { %3924 = vst.msk [vmem:[%s7958_s6 + $0x1d8] sm:$0xff] %vm215_vm0, %v3860_v46 }
 0x38b   : > { %v3621_v26 = vpop.xlane.xlu0 %3620 }
 0x38c   : > { %v3797_v23 = vmul.f32 %v3621_v26, %v1042_v63 }
 0x38e   : > { %v3861_v5 = vadd.f32 %v3797_v23, %v3733_v39 }
 0x390   : > { %3925 = vst.msk [vmem:[%s7958_s6 + $0x1e0] sm:$0xff] %vm215_vm0, %v3861_v5 }
 0x3ae   : > { %v3638_v49 = vpop.xlane.xlu1 %3637 }
 0x3af   : > { %v3798_v31 = vmul.f32 %v3638_v49, %v1044_v6 }
 0x3b1   : > { %v3862_v10 = vadd.f32 %v3798_v31, %v3734_v16 }
 0x3b3   : > { %3926 = vst.msk [vmem:[%s7958_s6 + $0x1e8] sm:$0xff] %vm215_vm0, %v3862_v10 }
 0x3b8   : > { %v3655_v20 = vpop.xlane.xlu0 %3654 }
 0x3b9   : > { %v3799_v22 = vmul.f32 %v3655_v20, %v1046_v43 }
 0x3bb   : > { %v3863_v1 = vadd.f32 %v3799_v22, %v3735_v13 }
 0x3bd   : > { %3927 = vst.msk [vmem:[%s7958_s6 + $0x1f0] sm:$0xff] %vm215_vm0, %v3863_v1 }
 0x3be   : > { %v3672_v2 = vpop.xlane.xlu1 %3671 }
 0x3bf   : > { %v3800_v4 = vmul.f32 %v3672_v2, %v1048_v61 }
 0x3c1   : > { %v3864_v50 = vadd.f32 %v3800_v4, %v3736_v17 }
 0x3c3   : > { %3928 = vst.msk [vmem:[%s7958_s6 + $0x1f8] sm:$0xff] %vm215_vm0, %v3864_v50 }
 0x3c4 PF: > { %s15_s14 = sadd.s32 1, %s4462_s14   ;;  %s9346_s9 = smov %s4446_s10 }
 0x3c5   : > { %p12_p9 = scmp.ge.s32.totalorder %s15_s14, 4   ;;  %s9347_s10 = smov %s4450_s11 }
 0x3c6   : > { %s9348_s11 = smov %s4532_s21  ;;  %s9349_s12 = smov %s4458_s13 }
 0x3c7   : > { %s9350_s13 = smov %s9352_s16  ;;  %14 = sbr.rel (!%p12_p9) target bundleno = 4 (0x4), region = 75 }
 0x3ce   :  { %3950 = vsyncpa [#allocation3], 1 }
 0x3cf   :  { %3952 = vsyncpa [#allocation3 + $0x1], 1 }

</bundles_post_ra>
